<compile_context>
chip_gen: v6e
topology: v6e:2x2x1
jax: 0.10.0
libtpu: 0.0.40
codegen_flags: <defaults>
</compile_context>

<pallas_src>
import jax
import jax.numpy as jnp
from jax.experimental import pallas as pl
from jax.experimental.pallas import tpu as pltpu  # noqa: F401  (kept for parity / future tuning)


# ------------------------- fused RNN + classifier kernel ----------------------
def rnn_fc_kernel(x_ref, wih_ref, whh_ref, b_ref,
                  w1_ref, b1_ref, w2_ref, b2_ref, w3_ref, b3_ref,
                  out_ref):
    B, S, D = x_ref.shape
    H = whh_ref.shape[0]

    # --- hoisted input projection: one (B*S, D) @ (D, H) matmul + bias ----------
    x = x_ref[...]                                   # (B, S, D)
    pre = jnp.dot(x.reshape(B * S, D), wih_ref[...],
                  preferred_element_type=jnp.float32) + b_ref[...]   # (B*S, H)
    pre = pre.reshape(B, S, H)                       # layout-equivalent split of leading dim

    whh = whh_ref[...]                               # hoisted read (no per-iter reload expr)

    # --- recurrence: h_t = tanh(pre_t + h_{t-1} @ W_hh), fully unrolled ---------
    # S is small & static; a Python loop gives static slices and full LLO visibility.
    h = jnp.zeros((B, H), jnp.float32)
    for t in range(S):
        h = jnp.tanh(pre[:, t, :] +
                     jnp.dot(h, whh, preferred_element_type=jnp.float32))

    # --- classifier head fused as epilogue (Dropout = identity at inference) ----
    z = jnp.dot(h, w1_ref[...], preferred_element_type=jnp.float32) + b1_ref[...]
    z = jnp.dot(z, w2_ref[...], preferred_element_type=jnp.float32) + b2_ref[...]
    z = jnp.dot(z, w3_ref[...], preferred_element_type=jnp.float32) + b3_ref[...]

    # Softmax over the class axis (PyTorch dim=1 on a [B, C] tensor).
    z = z - jnp.max(z, axis=-1, keepdims=True)
    e = jnp.exp(z)
    out_ref[...] = (e / jnp.sum(e, axis=-1, keepdims=True)).astype(out_ref.dtype)


def rnn_model_forward(tokens_bsd, params, *, num_classes):
    # tokens_bsd: [B, S, D] (batch_first, like PyTorch last_hidden_state)
    B = tokens_bsd.shape[0]
    return pl.pallas_call(
        rnn_fc_kernel,
        out_shape=jax.ShapeDtypeStruct((B, num_classes), tokens_bsd.dtype),
        # Grid-less call: every operand is a full-array VMEM block (total < 1 MiB here,
        # comfortably inside even v7x's 64 MiB VMEM).
    )(
        tokens_bsd,
        params["w_ih_t"], params["w_hh_t"], params["b_rnn"],
        params["w1"], params["b1"],
        params["w2"], params["b2"],
        params["w3"], params["b3"],
    )


# ------------------------------ pure-JAX reference ----------------------------
def reference_forward(tokens_bsd, params):
    B, S, D = tokens_bsd.shape
    H = params["w_hh_t"].shape[0]

    def step(h, x_t):
        h = jnp.tanh(x_t @ params["w_ih_t"] + h @ params["w_hh_t"] + params["b_rnn"][0])
        return h, None

    h0 = jnp.zeros((B, H), jnp.float32)
    h, _ = jax.lax.scan(step, h0, jnp.transpose(tokens_bsd, (1, 0, 2)))
    z = h @ params["w1"] + params["b1"][0]
    z = z @ params["w2"] + params["b2"][0]
    z = z @ params["w3"] + params["b3"][0]
    return jax.nn.softmax(z, axis=1)


# ----------------------------------- main -------------------------------------
if __name__ == "__main__":
    B, S, D = 2, 8, 64          # batch, seq, input_size (base_model hidden dim)
    HIDDEN = 320
    NUM_CLASSES = 5

    key = jax.random.PRNGKey(0)
    ks = jax.random.split(key, 12)

    def unif(k, shape, fan):
        bound = 1.0 / jnp.sqrt(jnp.float32(fan))
        return jax.random.uniform(k, shape, jnp.float32, -bound, bound)

    # Deterministic synthetic parameters (PyTorch-style init ranges, pre-transposed).
    params = {
        # nn.RNN: PyTorch W_ih is (H, D), W_hh is (H, H); stored transposed for x @ W.
        "w_ih_t": unif(ks[0], (D, HIDDEN), HIDDEN),
        "w_hh_t": unif(ks[1], (HIDDEN, HIDDEN), HIDDEN),
        "b_rnn": (unif(ks[2], (1, HIDDEN), HIDDEN)
                  + unif(ks[3], (1, HIDDEN), HIDDEN)),           # b_ih + b_hh
        # fc: Linear(320,80) -> Linear(80,20) -> Linear(20,num_classes), pre-transposed.
        "w1": unif(ks[4], (HIDDEN, 80), HIDDEN), "b1": unif(ks[5], (1, 80), HIDDEN),
        "w2": unif(ks[6], (80, 20), 80),         "b2": unif(ks[7], (1, 20), 80),
        "w3": unif(ks[8], (20, NUM_CLASSES), 20), "b3": unif(ks[9], (1, NUM_CLASSES), 20),
    }

    tokens = jax.random.normal(ks[10], (B, S, D), jnp.float32)  # base_model last_hidden_state

    out = rnn_model_forward(tokens, params, num_classes=NUM_CLASSES)
    out = jax.block_until_ready(out)

    ref = reference_forward(tokens, params)
    assert out.shape == (B, NUM_CLASSES)
    assert jnp.allclose(out, ref, atol=1e-5, rtol=1e-5), (out, ref)

    print("KERNEL_OK")
</pallas_src>

<mosaic_0001>
module attributes {stable_mosaic.version = 11 : i64} {
  func.func @rnn_fc_kernel(%arg0: memref<2x8x64xf32, #tpu.memory_space<vmem>>, %arg1: memref<64x320xf32, #tpu.memory_space<vmem>>, %arg2: memref<320x320xf32, #tpu.memory_space<vmem>>, %arg3: memref<1x320xf32, #tpu.memory_space<vmem>>, %arg4: memref<320x80xf32, #tpu.memory_space<vmem>>, %arg5: memref<1x80xf32, #tpu.memory_space<vmem>>, %arg6: memref<80x20xf32, #tpu.memory_space<vmem>>, %arg7: memref<1x20xf32, #tpu.memory_space<vmem>>, %arg8: memref<20x5xf32, #tpu.memory_space<vmem>>, %arg9: memref<1x5xf32, #tpu.memory_space<vmem>>, %arg10: memref<2x5xf32, #tpu.memory_space<vmem>>) attributes {dimension_semantics = [], scalar_prefetch = 0 : i64, scratch_operands = 0 : i64, tpu.core_type = #tpu.core_type<tc>} {
    %c0 = arith.constant 0 : index
    %c0_0 = arith.constant 0 : index
    %c0_1 = arith.constant 0 : index
    %0 = vector.load %arg0[%c0, %c0_0, %c0_1] : memref<2x8x64xf32, #tpu.memory_space<vmem>>, vector<2x8x64xf32>
    %1 = vector.shape_cast %0 : vector<2x8x64xf32> to vector<16x64xf32>
    %c0_2 = arith.constant 0 : index
    %c0_3 = arith.constant 0 : index
    %2 = vector.load %arg1[%c0_2, %c0_3] : memref<64x320xf32, #tpu.memory_space<vmem>>, vector<64x320xf32>
    %cst = arith.constant dense<0.000000e+00> : vector<16x320xf32>
    %3 = tpu.matmul %1, %2, %cst {dimension_numbers = #tpu.dot_dimension_numbers<[1], [0], [0], [1], [0, 0, 1, 1], [], []>} : vector<16x64xf32>, vector<64x320xf32>, vector<16x320xf32> -> vector<16x320xf32>
    %c0_4 = arith.constant 0 : index
    %c0_5 = arith.constant 0 : index
    %4 = vector.load %arg3[%c0_4, %c0_5] : memref<1x320xf32, #tpu.memory_space<vmem>>, vector<1x320xf32>
    %5 = vector.broadcast %4 : vector<1x320xf32> to vector<16x320xf32>
    %6 = arith.addf %3, %5 : vector<16x320xf32>
    %7 = vector.shape_cast %6 : vector<16x320xf32> to vector<2x8x320xf32>
    %c0_6 = arith.constant 0 : index
    %c0_7 = arith.constant 0 : index
    %8 = vector.load %arg2[%c0_6, %c0_7] : memref<320x320xf32, #tpu.memory_space<vmem>>, vector<320x320xf32>
    %cst_8 = arith.constant 0.000000e+00 : f32
    %9 = vector.broadcast %cst_8 : f32 to vector<2x320xf32>
    %10 = vector.extract_strided_slice %7 {offsets = [0, 0, 0], sizes = [2, 1, 320], strides = [1, 1, 1]} : vector<2x8x320xf32> to vector<2x1x320xf32>
    %11 = vector.shape_cast %10 : vector<2x1x320xf32> to vector<2x320xf32>
    %cst_9 = arith.constant dense<0.000000e+00> : vector<2x320xf32>
    %12 = tpu.matmul %9, %8, %cst_9 {dimension_numbers = #tpu.dot_dimension_numbers<[1], [0], [0], [1], [0, 0, 1, 1], [], []>} : vector<2x320xf32>, vector<320x320xf32>, vector<2x320xf32> -> vector<2x320xf32>
    %13 = arith.addf %11, %12 : vector<2x320xf32>
    %14 = math.tanh %13 : vector<2x320xf32>
    %15 = vector.extract_strided_slice %7 {offsets = [0, 1, 0], sizes = [2, 1, 320], strides = [1, 1, 1]} : vector<2x8x320xf32> to vector<2x1x320xf32>
    %16 = vector.shape_cast %15 : vector<2x1x320xf32> to vector<2x320xf32>
    %cst_10 = arith.constant dense<0.000000e+00> : vector<2x320xf32>
    %17 = tpu.matmul %14, %8, %cst_10 {dimension_numbers = #tpu.dot_dimension_numbers<[1], [0], [0], [1], [0, 0, 1, 1], [], []>} : vector<2x320xf32>, vector<320x320xf32>, vector<2x320xf32> -> vector<2x320xf32>
    %18 = arith.addf %16, %17 : vector<2x320xf32>
    %19 = math.tanh %18 : vector<2x320xf32>
    %20 = vector.extract_strided_slice %7 {offsets = [0, 2, 0], sizes = [2, 1, 320], strides = [1, 1, 1]} : vector<2x8x320xf32> to vector<2x1x320xf32>
    %21 = vector.shape_cast %20 : vector<2x1x320xf32> to vector<2x320xf32>
    %cst_11 = arith.constant dense<0.000000e+00> : vector<2x320xf32>
    %22 = tpu.matmul %19, %8, %cst_11 {dimension_numbers = #tpu.dot_dimension_numbers<[1], [0], [0], [1], [0, 0, 1, 1], [], []>} : vector<2x320xf32>, vector<320x320xf32>, vector<2x320xf32> -> vector<2x320xf32>
    %23 = arith.addf %21, %22 : vector<2x320xf32>
    %24 = math.tanh %23 : vector<2x320xf32>
    %25 = vector.extract_strided_slice %7 {offsets = [0, 3, 0], sizes = [2, 1, 320], strides = [1, 1, 1]} : vector<2x8x320xf32> to vector<2x1x320xf32>
    %26 = vector.shape_cast %25 : vector<2x1x320xf32> to vector<2x320xf32>
    %cst_12 = arith.constant dense<0.000000e+00> : vector<2x320xf32>
    %27 = tpu.matmul %24, %8, %cst_12 {dimension_numbers = #tpu.dot_dimension_numbers<[1], [0], [0], [1], [0, 0, 1, 1], [], []>} : vector<2x320xf32>, vector<320x320xf32>, vector<2x320xf32> -> vector<2x320xf32>
    %28 = arith.addf %26, %27 : vector<2x320xf32>
    %29 = math.tanh %28 : vector<2x320xf32>
    %30 = vector.extract_strided_slice %7 {offsets = [0, 4, 0], sizes = [2, 1, 320], strides = [1, 1, 1]} : vector<2x8x320xf32> to vector<2x1x320xf32>
    %31 = vector.shape_cast %30 : vector<2x1x320xf32> to vector<2x320xf32>
    %cst_13 = arith.constant dense<0.000000e+00> : vector<2x320xf32>
    %32 = tpu.matmul %29, %8, %cst_13 {dimension_numbers = #tpu.dot_dimension_numbers<[1], [0], [0], [1], [0, 0, 1, 1], [], []>} : vector<2x320xf32>, vector<320x320xf32>, vector<2x320xf32> -> vector<2x320xf32>
    %33 = arith.addf %31, %32 : vector<2x320xf32>
    %34 = math.tanh %33 : vector<2x320xf32>
    %35 = vector.extract_strided_slice %7 {offsets = [0, 5, 0], sizes = [2, 1, 320], strides = [1, 1, 1]} : vector<2x8x320xf32> to vector<2x1x320xf32>
    %36 = vector.shape_cast %35 : vector<2x1x320xf32> to vector<2x320xf32>
    %cst_14 = arith.constant dense<0.000000e+00> : vector<2x320xf32>
    %37 = tpu.matmul %34, %8, %cst_14 {dimension_numbers = #tpu.dot_dimension_numbers<[1], [0], [0], [1], [0, 0, 1, 1], [], []>} : vector<2x320xf32>, vector<320x320xf32>, vector<2x320xf32> -> vector<2x320xf32>
    %38 = arith.addf %36, %37 : vector<2x320xf32>
    %39 = math.tanh %38 : vector<2x320xf32>
    %40 = vector.extract_strided_slice %7 {offsets = [0, 6, 0], sizes = [2, 1, 320], strides = [1, 1, 1]} : vector<2x8x320xf32> to vector<2x1x320xf32>
    %41 = vector.shape_cast %40 : vector<2x1x320xf32> to vector<2x320xf32>
    %cst_15 = arith.constant dense<0.000000e+00> : vector<2x320xf32>
    %42 = tpu.matmul %39, %8, %cst_15 {dimension_numbers = #tpu.dot_dimension_numbers<[1], [0], [0], [1], [0, 0, 1, 1], [], []>} : vector<2x320xf32>, vector<320x320xf32>, vector<2x320xf32> -> vector<2x320xf32>
    %43 = arith.addf %41, %42 : vector<2x320xf32>
    %44 = math.tanh %43 : vector<2x320xf32>
    %45 = vector.extract_strided_slice %7 {offsets = [0, 7, 0], sizes = [2, 1, 320], strides = [1, 1, 1]} : vector<2x8x320xf32> to vector<2x1x320xf32>
    %46 = vector.shape_cast %45 : vector<2x1x320xf32> to vector<2x320xf32>
    %cst_16 = arith.constant dense<0.000000e+00> : vector<2x320xf32>
    %47 = tpu.matmul %44, %8, %cst_16 {dimension_numbers = #tpu.dot_dimension_numbers<[1], [0], [0], [1], [0, 0, 1, 1], [], []>} : vector<2x320xf32>, vector<320x320xf32>, vector<2x320xf32> -> vector<2x320xf32>
    %48 = arith.addf %46, %47 : vector<2x320xf32>
    %49 = math.tanh %48 : vector<2x320xf32>
    %c0_17 = arith.constant 0 : index
    %c0_18 = arith.constant 0 : index
    %50 = vector.load %arg4[%c0_17, %c0_18] : memref<320x80xf32, #tpu.memory_space<vmem>>, vector<320x80xf32>
    %cst_19 = arith.constant dense<0.000000e+00> : vector<2x80xf32>
    %51 = tpu.matmul %49, %50, %cst_19 {dimension_numbers = #tpu.dot_dimension_numbers<[1], [0], [0], [1], [0, 0, 1, 1], [], []>} : vector<2x320xf32>, vector<320x80xf32>, vector<2x80xf32> -> vector<2x80xf32>
    %c0_20 = arith.constant 0 : index
    %c0_21 = arith.constant 0 : index
    %52 = vector.load %arg5[%c0_20, %c0_21] : memref<1x80xf32, #tpu.memory_space<vmem>>, vector<1x80xf32>
    %53 = vector.broadcast %52 : vector<1x80xf32> to vector<2x80xf32>
    %54 = arith.addf %51, %53 : vector<2x80xf32>
    %c0_22 = arith.constant 0 : index
    %c0_23 = arith.constant 0 : index
    %55 = vector.load %arg6[%c0_22, %c0_23] : memref<80x20xf32, #tpu.memory_space<vmem>>, vector<80x20xf32>
    %cst_24 = arith.constant dense<0.000000e+00> : vector<2x20xf32>
    %56 = tpu.matmul %54, %55, %cst_24 {dimension_numbers = #tpu.dot_dimension_numbers<[1], [0], [0], [1], [0, 0, 1, 1], [], []>} : vector<2x80xf32>, vector<80x20xf32>, vector<2x20xf32> -> vector<2x20xf32>
    %c0_25 = arith.constant 0 : index
    %c0_26 = arith.constant 0 : index
    %57 = vector.load %arg7[%c0_25, %c0_26] : memref<1x20xf32, #tpu.memory_space<vmem>>, vector<1x20xf32>
    %58 = vector.broadcast %57 : vector<1x20xf32> to vector<2x20xf32>
    %59 = arith.addf %56, %58 : vector<2x20xf32>
    %c0_27 = arith.constant 0 : index
    %c0_28 = arith.constant 0 : index
    %60 = vector.load %arg8[%c0_27, %c0_28] : memref<20x5xf32, #tpu.memory_space<vmem>>, vector<20x5xf32>
    %cst_29 = arith.constant dense<0.000000e+00> : vector<2x5xf32>
    %61 = tpu.matmul %59, %60, %cst_29 {dimension_numbers = #tpu.dot_dimension_numbers<[1], [0], [0], [1], [0, 0, 1, 1], [], []>} : vector<2x20xf32>, vector<20x5xf32>, vector<2x5xf32> -> vector<2x5xf32>
    %c0_30 = arith.constant 0 : index
    %c0_31 = arith.constant 0 : index
    %62 = vector.load %arg9[%c0_30, %c0_31] : memref<1x5xf32, #tpu.memory_space<vmem>>, vector<1x5xf32>
    %63 = vector.broadcast %62 : vector<1x5xf32> to vector<2x5xf32>
    %64 = arith.addf %61, %63 : vector<2x5xf32>
    %cst_32 = arith.constant dense<0xFF800000> : vector<2xf32>
    %65 = vector.multi_reduction <maximumf>, %64, %cst_32 [1] : vector<2x5xf32> to vector<2xf32>
    %66 = vector.shape_cast %65 : vector<2xf32> to vector<2x1xf32>
    %67 = vector.broadcast %66 : vector<2x1xf32> to vector<2x5xf32>
    %68 = arith.subf %64, %67 : vector<2x5xf32>
    %69 = math.exp %68 : vector<2x5xf32>
    %cst_33 = arith.constant dense<0.000000e+00> : vector<2xf32>
    %70 = vector.multi_reduction <add>, %69, %cst_33 [1] : vector<2x5xf32> to vector<2xf32>
    %71 = vector.shape_cast %70 : vector<2xf32> to vector<2x1xf32>
    %72 = vector.broadcast %71 : vector<2x1xf32> to vector<2x5xf32>
    %73 = arith.divf %69, %72 : vector<2x5xf32>
    %c0_34 = arith.constant 0 : index
    %c0_35 = arith.constant 0 : index
    %74 = vector.load %arg10[%c0_34, %c0_35] : memref<2x5xf32, #tpu.memory_space<vmem>>, vector<2x5xf32>
    tpu.vector_store %arg10[%c0_34, %c0_35], %73 {strides = array<i32>} : memref<2x5xf32, #tpu.memory_space<vmem>>, vector<2x5xf32>,
    return
  }
}

</mosaic_0001>

<bundles_post_ra>
// kernel: tpu_custom_call.1
= control target key start
LH: loop header
LB: loop body
LE: loop exit
PB: predicated region body
PF: predicated region fallthrough
CT: control target
= control target key end

     0   :  { %15 = vsyncpa [#allocation3], 0  ;;  %s6601_s0 = inlined_call_operand.vmem [shape: f32[2,8,64], index: 0, kind: input, shape index: {}]   ;;  %s6602_s1 = inlined_call_operand.vmem [shape: f32[64,320], index: 1, kind: input, shape index: {}]   ;;  %s6603_s2 = inlined_call_operand.hbm [shape: f32[320,320], index: 2, kind: input, shape index: {}]   ;;  %s6604_s3 = inlined_call_operand.vmem [shape: f32[1,320], index: 3, kind: input, shape index: {}]   ;;  %s6605_s4 = inlined_call_operand.vmem [shape: f32[320,80], index: 4, kind: input, shape index: {}]   ;;  %s6606_s5 = inlined_call_operand.vmem [shape: f32[1,80], index: 5, kind: input, shape index: {}]   ;;  %s6607_s6 = inlined_call_operand.vmem [shape: f32[80,20], index: 6, kind: input, shape index: {}]   ;;  %s6608_s7 = inlined_call_operand.vmem [shape: f32[1,20], index: 7, kind: input, shape index: {}]   ;;  %s6609_s8 = inlined_call_operand.vmem [shape: f32[20,5], index: 8, kind: input, shape index: {}]   ;;  %s6610_s9 = inlined_call_operand.vmem [shape: f32[1,5], index: 9, kind: input, shape index: {}]   ;;  %s6611_s10 = inlined_call_operand.hbm [shape: f32[2,5], index: 10, kind: output, shape index: {}]  }
   0x1   :  { %16 = vsyncpa [#allocation4], 0  ;;  %s4440_s13 = smov [#allocation2]  }
   0x2   :  { %s26_s14 = sshll.u32 %s4440_s13, 4  ;;  %s27_s14 = int_to_ptr.vmem [resolvable:$true] %s26_s14 }
   0x3   :  { %s4404_s15 = scalar_lea.vmem %s27_s14, 15360  ;;  %p4409_p1 = scmp.lt.s32.totalorder %s27_s14, %s27_s14 }
   0x4   :  { %p4405_p0 = scmp.ne.s32.totalorder %s27_s14, %s4404_s15  ;;  %p4410_p2 = scmp.lt.s32.totalorder %s4404_s15, %s4404_s15 }
   0x6   :  { %p4411_p3 = por %p4410_p2, %p4409_p1 }
   0x8   :  { %p4412_p4 = pnand %p4411_p3, %p4405_p0 }
   0xa   :  { %4415 = shalt.err (!%p4412_p4)
}
   0xb   :  { %s4441_s16 = smov 384   ;;  %s4442_s17 = smov 24  }
   0xc   :  { %32 = dma.hbm_to_vmem [thread:$0]  %s6603_s2, 15360, %s27_s14, [#allocation3], %s4441_s16, %s4441_s16, %s4442_s17  }
   0xd   :  { %4436 = dma.done.wait [#allocation3], 15360  }
   0xe   :  { %4437 = vsyncadd [#allocation3], 4294951936  ;;  %v6612_v0 = vmov 0.0   ;;  %v74_v1 = vld [vmem:[%s6602_s1 + $0xb0] sm:$0xff]  ;;  %v75_v2 = vld [vmem:[%s6602_s1 + $0xb8] sm:$0xff]  ;;  %vm93_vm0 = vcmask 523264  }
   0xf   :  { %164 = vmatprep.mubr.f32.mxu0 %v6612_v0  ;;  %v73_v3 = vld [vmem:[%s6602_s1 + $0xa8] sm:$0xff]  ;;  %116 = vmatprep.subr.mxu0 %v74_v1  ;;  %v71_v4 = vld [vmem:[%s6602_s1 + $0x98] sm:$0xff]  ;;  %v72_v5 = vld [vmem:[%s6602_s1 + $0xa0] sm:$0xff]  ;;  %vm4444_vm1 = vmmov 0   ;;  %vm688_vm2 = vcmask 1041409   ;;  %vm3280_vm3 = vcmask 1043456  }
  0x10   :  { %3828 = vmatprep.subr.mxu1 %v75_v2  ;;  %v70_v6 = vld [vmem:[%s6602_s1 + $0x90] sm:$0xff]  ;;  %117 = vmatpush1.msra.mxu0 %v73_v3  ;;  %v68_v7 = vld [vmem:[%s6602_s1 + $0x80] sm:$0xff]  ;;  %v69_v8 = vld [vmem:[%s6602_s1 + $0x88] sm:$0xff]  ;;  %vm3192_vm4 = vcmask 654336   ;;  %vm3276_vm5 = vcmask 162816   ;;  %vm3354_vm6 = vcmask 33792  }
  0x11   :  { %3829 = vmatpush3.msra.mxu1 %v75_v2  ;;  %118 = vmatprep.subr.mxu0 %v71_v4  ;;  %v67_v9 = vld [vmem:[%s6602_s1 + $0x78] sm:$0xff]  ;;  %v65_v10 = vld [vmem:[%s6602_s1 + $0x68] sm:$0xff]  ;;  %v66_v11 = vld [vmem:[%s6602_s1 + $0x70] sm:$0xff] }
  0x12   :  { %3830 = vmatprep.subr.mxu1 %v72_v5  ;;  %119 = vmatpush1.msra.mxu0 %v70_v6  ;;  %v64_v12 = vld [vmem:[%s6602_s1 + $0x60] sm:$0xff]  ;;  %v62_v13 = vld [vmem:[%s6602_s1 + $0x50] sm:$0xff]  ;;  %v63_v14 = vld [vmem:[%s6602_s1 + $0x58] sm:$0xff] }
  0x13   :  { %3831 = vmatpush3.msra.mxu1 %v72_v5  ;;  %120 = vmatprep.subr.mxu0 %v68_v7  ;;  %v61_v15 = vld [vmem:[%s6602_s1 + $0x48] sm:$0xff]  ;;  %v59_v16 = vld [vmem:[%s6602_s1 + $0x38] sm:$0xff]  ;;  %v60_v17 = vld [vmem:[%s6602_s1 + $0x40] sm:$0xff] }
  0x14   :  { %3832 = vmatprep.subr.mxu1 %v69_v8  ;;  %121 = vmatpush1.msra.mxu0 %v67_v9  ;;  %v58_v18 = vld [vmem:[%s6602_s1 + $0x30] sm:$0xff]  ;;  %v56_v19 = vld [vmem:[%s6602_s1 + $0x20] sm:$0xff]  ;;  %v57_v20 = vld [vmem:[%s6602_s1 + $0x28] sm:$0xff] }
  0x15   :  { %3833 = vmatpush3.msra.mxu1 %v69_v8  ;;  %122 = vmatprep.subr.mxu0 %v65_v10  ;;  %v55_v21 = vld [vmem:[%s6602_s1 + $0x18] sm:$0xff]  ;;  %v53_v22 = vld [vmem:[%s6602_s1 + $0x8] sm:$0xff]  ;;  %v54_v23 = vld [vmem:[%s6602_s1 + $0x10] sm:$0xff] }
  0x16   :  { %3834 = vmatprep.subr.mxu1 %v66_v11  ;;  %123 = vmatpush1.msra.mxu0 %v64_v12  ;;  %v52_v24 = vld [vmem:[%s6602_s1] sm:$0xff]  ;;  %v4580_v26 = vld [vmem:[#allocation2 + $0x170] sm:$0xff]  ;;  %v4585_v27 = vld [vmem:[%s6601_s0 + $0x8] sm:$0xff] }
  0x17   :  { %3835 = vmatpush3.msra.mxu1 %v66_v11  ;;  %124 = vmatprep.subr.mxu0 %v62_v13  ;;  %v50_v25 = vld [vmem:[%s6601_s0] sm:$0xff]  ;;  %v4587_v28 = vld [vmem:[#allocation2 + $0x3b0] sm:$0xff]  ;;  %v4589_v29 = vld [vmem:[#allocation2 + $0x3a8] sm:$0xff] }
  0x18   :  { %3836 = vmatprep.subr.mxu1 %v63_v14  ;;  %125 = vmatpush1.msra.mxu0 %v61_v15  ;;  %6924 = vst [vmem:[#allocation8_spill] sm:$0xff] %v4587_v28  ;;  %6925 = vst [vmem:[#allocation9_spill] sm:$0xff] %v4589_v29  ;;  %v4593_v30 = vld [vmem:[#allocation2 + $0x168] sm:$0xff]  ;;  %v4595_v31 = vld [vmem:[#allocation2 + $0x398] sm:$0xff] }
  0x19   :  { %3837 = vmatpush3.msra.mxu1 %v63_v14  ;;  %126 = vmatprep.subr.mxu0 %v59_v16  ;;  %6926 = vst [vmem:[#allocation10_spill] sm:$0xff] %v4595_v31  ;;  %v4600_v32 = vld [vmem:[#allocation2 + $0x158] sm:$0xff]  ;;  %v4602_v33 = vld [vmem:[#allocation2 + $0x390] sm:$0xff]  ;;  %v4608_v35 = vld [vmem:[#allocation2 + $0x380] sm:$0xff] }
  0x1a   :  { %3838 = vmatprep.subr.mxu1 %v60_v17  ;;  %127 = vmatpush1.msra.mxu0 %v58_v18  ;;  %6927 = vst [vmem:[#allocation11_spill] sm:$0xff] %v4602_v33  ;;  %v4606_v34 = vld [vmem:[#allocation2 + $0x150] sm:$0xff]  ;;  %6928 = vst [vmem:[#allocation12_spill] sm:$0xff] %v4608_v35  ;;  %v4612_v36 = vld [vmem:[#allocation2 + $0x140] sm:$0xff] }
  0x1b   :  { %3839 = vmatpush3.msra.mxu1 %v60_v17  ;;  %128 = vmatprep.subr.mxu0 %v56_v19  ;;  %v4614_v37 = vld [vmem:[#allocation2 + $0x378] sm:$0xff]  ;;  %v4620_v39 = vld [vmem:[#allocation2 + $0x368] sm:$0xff]  ;;  %v4626_v41 = vld [vmem:[#allocation2 + $0x360] sm:$0xff] }
  0x1c   :  { %3840 = vmatprep.subr.mxu1 %v57_v20  ;;  %129 = vmatpush1.msra.mxu0 %v55_v21  ;;  %6929 = vst [vmem:[#allocation13_spill] sm:$0xff] %v4614_v37  ;;  %v4618_v38 = vld [vmem:[#allocation2 + $0x138] sm:$0xff]  ;;  %6930 = vst [vmem:[#allocation14_spill] sm:$0xff] %v4620_v39  ;;  %v4624_v40 = vld [vmem:[#allocation2 + $0x128] sm:$0xff] }
  0x1d   :  { %3841 = vmatpush3.msra.mxu1 %v57_v20  ;;  %130 = vmatprep.subr.mxu0 %v53_v22  ;;  %6931 = vst [vmem:[#allocation15_spill] sm:$0xff] %v4626_v41  ;;  %v4630_v42 = vld [vmem:[#allocation2 + $0x120] sm:$0xff]  ;;  %v4632_v43 = vld [vmem:[#allocation2 + $0x350] sm:$0xff]  ;;  %v4638_v45 = vld [vmem:[#allocation2 + $0x348] sm:$0xff] }
  0x1e   :  { %3842 = vmatprep.subr.mxu1 %v54_v23  ;;  %131 = vmatpush1.msra.mxu0 %v52_v24  ;;  %6932 = vst [vmem:[#allocation16_spill] sm:$0xff] %v4632_v43  ;;  %v4636_v44 = vld [vmem:[#allocation2 + $0x110] sm:$0xff]  ;;  %6933 = vst [vmem:[#allocation17_spill] sm:$0xff] %v4638_v45  ;;  %v4642_v46 = vld [vmem:[#allocation2 + $0x108] sm:$0xff] }
  0x1f   :  { %3843 = vmatpush3.msra.mxu1 %v54_v23  ;;  %3844 = vmatprep.mubr.msk.f32.mxu1 %vm93_vm0, %v50_v25  ;;  %v4644_v47 = vld [vmem:[#allocation2 + $0x338] sm:$0xff]  ;;  %v4650_v49 = vld [vmem:[#allocation2 + $0x330] sm:$0xff]  ;;  %v4656_v51 = vld [vmem:[#allocation2 + $0x320] sm:$0xff] }
  0x20   :  { %375 = vmatprep.subr.mxu0 %v4580_v26  ;;  %3845 = vmatmul.mubr.msk.f32.vlgmr.msra.gmra.mxu1 %vm93_vm0, %v4585_v27  ;;  %6934 = vst [vmem:[#allocation18_spill] sm:$0xff] %v4644_v47  ;;  %v4648_v48 = vld [vmem:[#allocation2 + $0xf8] sm:$0xff]  ;;  %6935 = vst [vmem:[#allocation19_spill] sm:$0xff] %v4650_v49  ;;  %v4654_v50 = vld [vmem:[#allocation2 + $0xf0] sm:$0xff] }
  0x21   :  { %462 = vmatprep.subr.mxu1 %v4587_v28  ;;  %3382 = vmatmul.mubr.msk.f32.vlgmr.msra.gmra.mxu0 %vm93_vm0, %v50_v25  ;;  %6936 = vst [vmem:[#allocation20_spill] sm:$0xff] %v4656_v51  ;;  %v4660_v52 = vld [vmem:[#allocation2 + $0xe0] sm:$0xff]  ;;  %v4662_v53 = vld [vmem:[#allocation2 + $0x318] sm:$0xff]  ;;  %v4668_v55 = vld [vmem:[#allocation2 + $0x308] sm:$0xff] }
  0x22   :  { %463 = vmatpush1.msra.mxu1 %v4589_v29  ;;  %376 = vmatpush1.msra.mxu0 %v4593_v30  ;;  %6937 = vst [vmem:[#allocation21_spill] sm:$0xff] %v4662_v53  ;;  %v4666_v54 = vld [vmem:[#allocation2 + $0xd8] sm:$0xff]  ;;  %6938 = vst [vmem:[#allocation22_spill] sm:$0xff] %v4668_v55  ;;  %v4672_v56 = vld [vmem:[#allocation2 + $0xc8] sm:$0xff] }
  0x23   :  { %464 = vmatprep.subr.mxu1 %v4595_v31  ;;  %377 = vmatprep.subr.mxu0 %v4600_v32  ;;  %v4674_v57 = vld [vmem:[#allocation2 + $0x300] sm:$0xff]  ;;  %v4682_v59 = vld [vmem:[#allocation2 + $0xb0] sm:$0xff]  ;;  %v4686_v60 = vld [vmem:[#allocation2 + $0x2f8] sm:$0xff] }
  0x24   :  { %465 = vmatpush1.msra.mxu1 %v4602_v33  ;;  %378 = vmatpush1.msra.mxu0 %v4606_v34  ;;  %6939 = vst [vmem:[#allocation23_spill] sm:$0xff] %v4674_v57  ;;  %v4678_v58 = vld [vmem:[#allocation2 + $0xc0] sm:$0xff]  ;;  %6940 = vst [vmem:[#allocation24_spill] sm:$0xff] %v4686_v60  ;;  %v4688_v61 = vld [vmem:[#allocation2 + $0xa8] sm:$0xff] }
  0x25   :  { %466 = vmatprep.subr.mxu1 %v4608_v35  ;;  %379 = vmatprep.subr.mxu0 %v4612_v36  ;;  %v4692_v62 = vld [vmem:[#allocation2 + $0x178] sm:$0xff]  ;;  %v4698_v1 = vld [vmem:[#allocation2 + $0x2e0] sm:$0xff]  ;;  %v4700_v2 = vld [vmem:[#allocation2 + $0x90] sm:$0xff] }
  0x26   :  { %467 = vmatpush1.msra.mxu1 %v4614_v37  ;;  %380 = vmatpush1.msra.mxu0 %v4618_v38  ;;  %6941 = vst [vmem:[#allocation25_spill] sm:$0xff] %v4692_v62  ;;  %v4694_v63 = vld [vmem:[#allocation2 + $0x98] sm:$0xff]  ;;  %6942 = vst [vmem:[#allocation26_spill] sm:$0xff] %v4698_v1  ;;  %v4704_v3 = vld [vmem:[#allocation2 + $0x160] sm:$0xff] }
  0x27   :  { %468 = vmatprep.subr.mxu1 %v4620_v39  ;;  %381 = vmatprep.subr.mxu0 %v4624_v40  ;;  %6943 = vst [vmem:[#allocation27_spill] sm:$0xff] %v4704_v3  ;;  %v4706_v4 = vld [vmem:[#allocation2 + $0x80] sm:$0xff]  ;;  %v4710_v5 = vld [vmem:[#allocation2 + $0x2c8] sm:$0xff]  ;;  %v4712_v6 = vld [vmem:[#allocation2 + $0x78] sm:$0xff] }
  0x28   :  { %469 = vmatpush1.msra.mxu1 %v4626_v41  ;;  %382 = vmatpush1.msra.mxu0 %v4630_v42  ;;  %6944 = vst [vmem:[#allocation28_spill] sm:$0xff] %v4710_v5  ;;  %v4716_v7 = vld [vmem:[#allocation2 + $0x148] sm:$0xff]  ;;  %v4722_v9 = vld [vmem:[#allocation2 + $0x2b0] sm:$0xff]  ;;  %v4724_v10 = vld [vmem:[#allocation2 + $0x60] sm:$0xff] }
  0x29   :  { %470 = vmatprep.subr.mxu1 %v4632_v43  ;;  %383 = vmatprep.subr.mxu0 %v4636_v44  ;;  %6945 = vst [vmem:[#allocation29_spill] sm:$0xff] %v4716_v7  ;;  %v4718_v8 = vld [vmem:[#allocation2 + $0x68] sm:$0xff]  ;;  %6946 = vst [vmem:[#allocation30_spill] sm:$0xff] %v4722_v9  ;;  %v4728_v11 = vld [vmem:[#allocation2 + $0x130] sm:$0xff] }
  0x2a   :  { %471 = vmatpush1.msra.mxu1 %v4638_v45  ;;  %384 = vmatpush1.msra.mxu0 %v4642_v46  ;;  %6947 = vst [vmem:[#allocation31_spill] sm:$0xff] %v4728_v11  ;;  %v4730_v12 = vld [vmem:[#allocation2 + $0x50] sm:$0xff]  ;;  %v4734_v13 = vld [vmem:[#allocation2 + $0x298] sm:$0xff]  ;;  %v4736_v14 = vld [vmem:[#allocation2 + $0x48] sm:$0xff] }
  0x2b   :  { %472 = vmatprep.subr.mxu1 %v4644_v47  ;;  %385 = vmatprep.subr.mxu0 %v4648_v48  ;;  %6948 = vst [vmem:[#allocation32_spill] sm:$0xff] %v4734_v13  ;;  %v4740_v15 = vld [vmem:[#allocation2 + $0x118] sm:$0xff]  ;;  %v4746_v17 = vld [vmem:[#allocation2 + $0x280] sm:$0xff]  ;;  %v4748_v18 = vld [vmem:[#allocation2 + $0x30] sm:$0xff] }
  0x2c   :  { %473 = vmatpush1.msra.mxu1 %v4650_v49  ;;  %386 = vmatpush1.msra.mxu0 %v4654_v50  ;;  %6949 = vst [vmem:[#allocation33_spill] sm:$0xff] %v4740_v15  ;;  %v4742_v16 = vld [vmem:[#allocation2 + $0x38] sm:$0xff]  ;;  %6950 = vst [vmem:[#allocation34_spill] sm:$0xff] %v4746_v17  ;;  %v4752_v19 = vld [vmem:[#allocation2 + $0x100] sm:$0xff] }
  0x2d   :  { %474 = vmatprep.subr.mxu1 %v4656_v51  ;;  %387 = vmatprep.subr.mxu0 %v4660_v52  ;;  %6951 = vst [vmem:[#allocation35_spill] sm:$0xff] %v4752_v19  ;;  %v4754_v20 = vld [vmem:[#allocation2 + $0x20] sm:$0xff]  ;;  %v4758_v21 = vld [vmem:[#allocation2 + $0x268] sm:$0xff]  ;;  %v4760_v22 = vld [vmem:[#allocation2 + $0x18] sm:$0xff] }
  0x2e   :  { %475 = vmatpush1.msra.mxu1 %v4662_v53  ;;  %388 = vmatpush1.msra.mxu0 %v4666_v54  ;;  %6952 = vst [vmem:[#allocation36_spill] sm:$0xff] %v4758_v21  ;;  %v4764_v23 = vld [vmem:[#allocation2 + $0xe8] sm:$0xff]  ;;  %v4770_v25 = vld [vmem:[#allocation2 + $0x250] sm:$0xff] }
  0x2f   :  { %476 = vmatprep.subr.mxu1 %v4668_v55  ;;  %389 = vmatprep.subr.mxu0 %v4672_v56  ;;  %6953 = vst [vmem:[#allocation37_spill] sm:$0xff] %v4764_v23  ;;  %v4766_v24 = vld [vmem:[#allocation2 + $0x8] sm:$0xff]  ;;  %6954 = vst [vmem:[#allocation38_spill] sm:$0xff] %v4770_v25 }
  0x30   :  { %477 = vmatpush1.msra.mxu1 %v4674_v57  ;;  %390 = vmatpush1.msra.mxu0 %v4678_v58 }
  0x31   :  { %510 = vmatprep.mubr.f32.mxu1 %v6612_v0  ;;  %391 = vmatprep.subr.mxu0 %v4682_v59 }
  0x32   :  { %511 = vmatmul.mubr.f32.vlgmr.msra.gmra.mxu1 %v6612_v0  ;;  %3417 = vmatprep.subr.mxu1 %v4686_v60  ;;  %v4772_v0 = vld [vmem:[#allocation2] sm:$0xff] }
  0x33   :  { %392 = vmatpush1.msra.mxu0 %v4688_v61  ;;  %3418 = vmatpush3.msra.mxu1 %v4692_v62  ;;  %v4824_v62 = vld [vmem:[#allocation2 + $0x70] sm:$0xff] }
  0x34   :  { %393 = vmatprep.subr.mxu0 %v4694_v63  ;;  %3419 = vmatprep.subr.mxu1 %v4698_v1  ;;  %v4818_v1 = vld [vmem:[#allocation2 + $0x1f0] sm:$0xff]  ;;  %6969 = vst [vmem:[#allocation53_spill] sm:$0xff] %v4824_v62 }
  0x35   :  { %394 = vmatpush1.msra.mxu0 %v4700_v2  ;;  %3420 = vmatpush3.msra.mxu1 %v4704_v3  ;;  %v4812_v3 = vld [vmem:[#allocation2 + $0x88] sm:$0xff]  ;;  %6967 = vst [vmem:[#allocation51_spill] sm:$0xff] %v4818_v1 }
  0x36   :  { %395 = vmatprep.subr.mxu0 %v4706_v4  ;;  %3421 = vmatprep.subr.mxu1 %v4710_v5  ;;  %v4806_v5 = vld [vmem:[#allocation2 + $0x208] sm:$0xff]  ;;  %6965 = vst [vmem:[#allocation49_spill] sm:$0xff] %v4812_v3 }
  0x37   :  { %396 = vmatpush1.msra.mxu0 %v4712_v6  ;;  %3422 = vmatpush3.msra.mxu1 %v4716_v7  ;;  %v4800_v7 = vld [vmem:[#allocation2 + $0xa0] sm:$0xff]  ;;  %6963 = vst [vmem:[#allocation47_spill] sm:$0xff] %v4806_v5 }
  0x38   :  { %397 = vmatprep.subr.mxu0 %v4718_v8  ;;  %3423 = vmatprep.subr.mxu1 %v4722_v9  ;;  %v4794_v9 = vld [vmem:[#allocation2 + $0x220] sm:$0xff]  ;;  %6961 = vst [vmem:[#allocation45_spill] sm:$0xff] %v4800_v7 }
  0x39   :  { %398 = vmatpush1.msra.mxu0 %v4724_v10  ;;  %3424 = vmatpush3.msra.mxu1 %v4728_v11  ;;  %v4788_v11 = vld [vmem:[#allocation2 + $0xb8] sm:$0xff]  ;;  %6959 = vst [vmem:[#allocation43_spill] sm:$0xff] %v4794_v9 }
  0x3a   :  { %399 = vmatprep.subr.mxu0 %v4730_v12  ;;  %3425 = vmatprep.subr.mxu1 %v4734_v13  ;;  %v4782_v13 = vld [vmem:[#allocation2 + $0x238] sm:$0xff]  ;;  %6957 = vst [vmem:[#allocation41_spill] sm:$0xff] %v4788_v11 }
  0x3b   :  { %400 = vmatpush1.msra.mxu0 %v4736_v14  ;;  %3426 = vmatpush3.msra.mxu1 %v4740_v15  ;;  %v4776_v15 = vld [vmem:[#allocation2 + $0xd0] sm:$0xff]  ;;  %6956 = vst [vmem:[#allocation40_spill] sm:$0xff] %v4782_v13 }
  0x3c   :  { %401 = vmatprep.subr.mxu0 %v4742_v16  ;;  %3427 = vmatprep.subr.mxu1 %v4746_v17  ;;  %6955 = vst [vmem:[#allocation39_spill] sm:$0xff] %v4776_v15  ;;  %v4778_v17 = vld [vmem:[#allocation2 + $0x2f0] sm:$0xff] }
  0x3d   :  { %402 = vmatpush1.msra.mxu0 %v4748_v18  ;;  %3428 = vmatpush3.msra.mxu1 %v4752_v19  ;;  %v4784_v19 = vld [vmem:[#allocation2 + $0x2e8] sm:$0xff] }
  0x3e   :  { %403 = vmatprep.subr.mxu0 %v4754_v20  ;;  %3429 = vmatprep.subr.mxu1 %v4758_v21  ;;  %v4790_v21 = vld [vmem:[#allocation2 + $0x2d8] sm:$0xff] }
  0x3f   :  { %404 = vmatpush1.msra.mxu0 %v4760_v22  ;;  %3430 = vmatpush3.msra.mxu1 %v4764_v23  ;;  %6958 = vst [vmem:[#allocation42_spill] sm:$0xff] %v4790_v21  ;;  %v4796_v23 = vld [vmem:[#allocation2 + $0x2d0] sm:$0xff] }
  0x40   :  { %405 = vmatprep.subr.mxu0 %v4766_v24  ;;  %3431 = vmatprep.subr.mxu1 %v4770_v25  ;;  %6960 = vst [vmem:[#allocation44_spill] sm:$0xff] %v4796_v23  ;;  %v4802_v25 = vld [vmem:[#allocation2 + $0x2c0] sm:$0xff] }
  0x41   :  { %406 = vmatpush1.msra.mxu0 %v4772_v0  ;;  %3432 = vmatpush3.msra.mxu1 %v4776_v15  ;;  %6962 = vst [vmem:[#allocation46_spill] sm:$0xff] %v4802_v25  ;;  %v4808_v15 = vld [vmem:[#allocation2 + $0x2b8] sm:$0xff] }
  0x42   :  { %407 = vmatprep.subr.mxu0 %v4778_v17  ;;  %3433 = vmatprep.subr.mxu1 %v4782_v13  ;;  %6964 = vst [vmem:[#allocation48_spill] sm:$0xff] %v4808_v15  ;;  %v4814_v13 = vld [vmem:[#allocation2 + $0x2a8] sm:$0xff] }
  0x43   :  { %408 = vmatpush2.msra.mxu0 %v4784_v19  ;;  %3434 = vmatpush3.msra.mxu1 %v4788_v11  ;;  %6966 = vst [vmem:[#allocation50_spill] sm:$0xff] %v4814_v13  ;;  %v4820_v11 = vld [vmem:[#allocation2 + $0x2a0] sm:$0xff] }
  0x44   :  { %409 = vmatprep.subr.mxu0 %v4790_v21  ;;  %3435 = vmatprep.subr.mxu1 %v4794_v9  ;;  %6968 = vst [vmem:[#allocation52_spill] sm:$0xff] %v4820_v11  ;;  %v4826_v9 = vld [vmem:[#allocation2 + $0x290] sm:$0xff] }
  0x45   :  { %410 = vmatpush2.msra.mxu0 %v4796_v23  ;;  %3436 = vmatpush3.msra.mxu1 %v4800_v7  ;;  %6970 = vst [vmem:[#allocation54_spill] sm:$0xff] %v4826_v9  ;;  %v4830_v23 = vld [vmem:[#allocation2 + $0x1d8] sm:$0xff]  ;;  %v4832_v7 = vld [vmem:[#allocation2 + $0x288] sm:$0xff] }
  0x46   :  { %411 = vmatprep.subr.mxu0 %v4802_v25  ;;  %3437 = vmatprep.subr.mxu1 %v4806_v5  ;;  %6971 = vst [vmem:[#allocation55_spill] sm:$0xff] %v4830_v23  ;;  %6972 = vst [vmem:[#allocation56_spill] sm:$0xff] %v4832_v7  ;;  %v4836_v25 = vld [vmem:[#allocation2 + $0x58] sm:$0xff] }
  0x47   :  { %412 = vmatpush2.msra.mxu0 %v4808_v15  ;;  %3438 = vmatpush3.msra.mxu1 %v4812_v3  ;;  %6973 = vst [vmem:[#allocation57_spill] sm:$0xff] %v4836_v25  ;;  %v4838_v5 = vld [vmem:[#allocation2 + $0x278] sm:$0xff]  ;;  %v4842_v15 = vld [vmem:[#allocation2 + $0x1c0] sm:$0xff]  ;;  %v4844_v3 = vld [vmem:[#allocation2 + $0x270] sm:$0xff] }
  0x48   :  { %413 = vmatprep.subr.mxu0 %v4814_v13  ;;  %3439 = vmatprep.subr.mxu1 %v4818_v1  ;;  %6974 = vst [vmem:[#allocation58_spill] sm:$0xff] %v4838_v5  ;;  %6975 = vst [vmem:[#allocation59_spill] sm:$0xff] %v4842_v15  ;;  %v4848_v13 = vld [vmem:[#allocation2 + $0x40] sm:$0xff] }
  0x49   :  { %414 = vmatpush2.msra.mxu0 %v4820_v11  ;;  %3440 = vmatpush3.msra.mxu1 %v4824_v62  ;;  %6976 = vst [vmem:[#allocation60_spill] sm:$0xff] %v4844_v3  ;;  %6977 = vst [vmem:[#allocation61_spill] sm:$0xff] %v4848_v13  ;;  %v4850_v1 = vld [vmem:[#allocation2 + $0x260] sm:$0xff]  ;;  %v4854_v11 = vld [vmem:[#allocation2 + $0x1a8] sm:$0xff] }
  0x4a   :  { %415 = vmatprep.subr.mxu0 %v4826_v9  ;;  %3441 = vmatprep.subr.mxu1 %v4830_v23  ;;  %6978 = vst [vmem:[#allocation62_spill] sm:$0xff] %v4850_v1  ;;  %6979 = vst [vmem:[#allocation63_spill] sm:$0xff] %v4854_v11  ;;  %v4856_v62 = vld [vmem:[#allocation2 + $0x258] sm:$0xff]  ;;  %v4860_v9 = vld [vmem:[#allocation2 + $0x28] sm:$0xff] }
  0x4b   :  { %416 = vmatpush2.msra.mxu0 %v4832_v7  ;;  %3442 = vmatpush3.msra.mxu1 %v4836_v25  ;;  %6980 = vst [vmem:[#allocation64_spill] sm:$0xff] %v4856_v62  ;;  %6981 = vst [vmem:[#allocation65_spill] sm:$0xff] %v4860_v9  ;;  %v4862_v23 = vld [vmem:[#allocation2 + $0x248] sm:$0xff]  ;;  %v4866_v7 = vld [vmem:[#allocation2 + $0x190] sm:$0xff] }
  0x4c   :  { %417 = vmatprep.subr.mxu0 %v4838_v5  ;;  %3443 = vmatprep.subr.mxu1 %v4842_v15  ;;  %6982 = vst [vmem:[#allocation66_spill] sm:$0xff] %v4862_v23  ;;  %6983 = vst [vmem:[#allocation67_spill] sm:$0xff] %v4866_v7  ;;  %v4868_v25 = vld [vmem:[#allocation2 + $0x240] sm:$0xff]  ;;  %v4872_v5 = vld [vmem:[#allocation2 + $0x10] sm:$0xff] }
  0x4d   :  { %418 = vmatpush2.msra.mxu0 %v4844_v3  ;;  %3444 = vmatpush3.msra.mxu1 %v4848_v13  ;;  %6984 = vst [vmem:[#allocation68_spill] sm:$0xff] %v4868_v25  ;;  %6985 = vst [vmem:[#allocation69_spill] sm:$0xff] %v4872_v5  ;;  %v4876_v15 = vld [vmem:[#allocation2 + $0x230] sm:$0xff]  ;;  %v4880_v13 = vld [vmem:[#allocation2 + $0x228] sm:$0xff] }
  0x4e   :  { %419 = vmatprep.subr.mxu0 %v4850_v1  ;;  %3445 = vmatprep.subr.mxu1 %v4854_v11  ;;  %6986 = vst [vmem:[#allocation70_spill] sm:$0xff] %v4876_v15  ;;  %6987 = vst [vmem:[#allocation71_spill] sm:$0xff] %v4880_v13  ;;  %v6988_v1 = vmov 0.0   ;;  %v4884_v11 = vld [vmem:[#allocation2 + $0x3b8] sm:$0xff] }
  0x4f   :  { %420 = vmatpush2.msra.mxu0 %v4856_v62  ;;  %3446 = vmatpush3.msra.mxu1 %v4860_v9  ;;  %6989 = vst [vmem:[#allocation72_spill] sm:$0xff] %v4884_v11  ;;  %v4886_v62 = vld [vmem:[#allocation2 + $0x218] sm:$0xff]  ;;  %v4890_v9 = vld [vmem:[#allocation2 + $0x210] sm:$0xff] }
  0x50   :  { %421 = vmatprep.subr.mxu0 %v4862_v23  ;;  %3447 = vmatprep.subr.mxu1 %v4866_v7  ;;  %6990 = vst [vmem:[#allocation73_spill] sm:$0xff] %v4886_v62  ;;  %6991 = vst [vmem:[#allocation74_spill] sm:$0xff] %v4890_v9  ;;  %v4894_v7 = vld [vmem:[#allocation2 + $0x3a0] sm:$0xff]  ;;  %v4906_v23 = vld [vmem:[#allocation2 + $0x1e8] sm:$0xff] }
  0x51   :  { %422 = vmatpush2.msra.mxu0 %v4868_v25  ;;  %3448 = vmatpush3.msra.mxu1 %v4872_v5  ;;  %6992 = vst [vmem:[#allocation75_spill] sm:$0xff] %v4894_v7  ;;  %v4896_v25 = vld [vmem:[#allocation2 + $0x200] sm:$0xff]  ;;  %v4900_v5 = vld [vmem:[#allocation2 + $0x1f8] sm:$0xff]  ;;  %6996 = vst [vmem:[#allocation79_spill] sm:$0xff] %v4906_v23 }
  0x52   :  { %581 = vmatprep.mubr.f32.mxu1 %v6988_v1  ;;  %423 = vmatprep.subr.mxu0 %v4876_v15  ;;  %6993 = vst [vmem:[#allocation76_spill] sm:$0xff] %v4896_v25  ;;  %6994 = vst [vmem:[#allocation77_spill] sm:$0xff] %v4900_v5  ;;  %v4904_v15 = vld [vmem:[#allocation2 + $0x388] sm:$0xff] }
  0x53   :  { %582 = vmatmul.mubr.f32.vlgmr.msra.gmra.mxu1 %v6988_v1  ;;  %3847 = vmatprep.subr.mxu1 %v6988_v1  ;;  %6995 = vst [vmem:[#allocation78_spill] sm:$0xff] %v4904_v15 }
  0x54   :  { %424 = vmatpush2.msra.mxu0 %v4880_v13  ;;  %3848 = vmatpush3.msra.mxu1 %v4884_v11  ;;  %v4910_v13 = vld [vmem:[#allocation2 + $0x1e0] sm:$0xff]  ;;  %v4914_v11 = vld [vmem:[#allocation2 + $0x370] sm:$0xff] }
  0x55   :  { %425 = vmatprep.subr.mxu0 %v4886_v62  ;;  %3849 = vmatprep.subr.mxu1 %v6988_v1  ;;  %6997 = vst [vmem:[#allocation80_spill] sm:$0xff] %v4910_v13  ;;  %6998 = vst [vmem:[#allocation81_spill] sm:$0xff] %v4914_v11  ;;  %v4916_v62 = vld [vmem:[#allocation2 + $0x1d0] sm:$0xff] }
  0x56   :  { %426 = vmatpush2.msra.mxu0 %v4890_v9  ;;  %3850 = vmatpush3.msra.mxu1 %v4894_v7  ;;  %6999 = vst [vmem:[#allocation82_spill] sm:$0xff] %v4916_v62  ;;  %v4920_v9 = vld [vmem:[#allocation2 + $0x1c8] sm:$0xff]  ;;  %v4924_v7 = vld [vmem:[#allocation2 + $0x358] sm:$0xff] }
  0x57   :  { %427 = vmatprep.subr.mxu0 %v4896_v25  ;;  %3851 = vmatprep.subr.mxu1 %v6988_v1  ;;  %7000 = vst [vmem:[#allocation83_spill] sm:$0xff] %v4920_v9  ;;  %7001 = vst [vmem:[#allocation84_spill] sm:$0xff] %v4924_v7  ;;  %v4926_v25 = vld [vmem:[#allocation2 + $0x1b8] sm:$0xff] }
  0x58   :  { %428 = vmatpush2.msra.mxu0 %v4900_v5  ;;  %3852 = vmatpush3.msra.mxu1 %v4904_v15  ;;  %7002 = vst [vmem:[#allocation85_spill] sm:$0xff] %v4926_v25  ;;  %v4932_v15 = vld [vmem:[#allocation2 + $0x1b0] sm:$0xff] }
  0x59   :  { %429 = vmatprep.subr.mxu0 %v4906_v23  ;;  %3853 = vmatprep.subr.mxu1 %v6988_v1  ;;  %7003 = vst [vmem:[#allocation86_spill] sm:$0xff] %v4932_v15  ;;  %v4934_v23 = vld [vmem:[#allocation2 + $0x340] sm:$0xff] }
  0x5a   :  { %430 = vmatpush2.msra.mxu0 %v4910_v13  ;;  %3854 = vmatpush3.msra.mxu1 %v4914_v11  ;;  %7004 = vst [vmem:[#allocation87_spill] sm:$0xff] %v4934_v23  ;;  %v4938_v13 = vld [vmem:[#allocation2 + $0x1a0] sm:$0xff]  ;;  %v4942_v11 = vld [vmem:[#allocation2 + $0x198] sm:$0xff] }
  0x5b   :  { %431 = vmatprep.subr.mxu0 %v4916_v62  ;;  %3855 = vmatprep.subr.mxu1 %v6988_v1  ;;  %7005 = vst [vmem:[#allocation88_spill] sm:$0xff] %v4938_v13  ;;  %7006 = vst [vmem:[#allocation89_spill] sm:$0xff] %v4942_v11  ;;  %v4948_v62 = vld [vmem:[#allocation2 + $0x188] sm:$0xff] }
  0x5c   :  { %432 = vmatpush2.msra.mxu0 %v4920_v9  ;;  %3856 = vmatpush3.msra.mxu1 %v4924_v7  ;;  %v4946_v9 = vld [vmem:[#allocation2 + $0x328] sm:$0xff]  ;;  %7008 = vst [vmem:[#allocation91_spill] sm:$0xff] %v4948_v62  ;;  %v4953_v7 = vld [vmem:[#allocation2 + $0x180] sm:$0xff] }
  0x5d   :  { %433 = vmatprep.subr.mxu0 %v4926_v25  ;;  %3857 = vmatprep.subr.mxu1 %v6988_v1  ;;  %7007 = vst [vmem:[#allocation90_spill] sm:$0xff] %v4946_v9  ;;  %7009 = vst [vmem:[#allocation92_spill] sm:$0xff] %v4953_v7  ;;  %v4957_v25 = vld [vmem:[#allocation2 + $0x310] sm:$0xff] }
  0x5e   :  { %170 = vmatprep.mubr.f32.mxu0 %v6988_v1  ;;  %434 = vmatpush2.msra.mxu0 %v4932_v15  ;;  %7010 = vst [vmem:[#allocation93_spill] sm:$0xff] %v4957_v25 }
  0x5f   :  { %3858 = vmatpush3.msra.mxu1 %v4934_v23  ;;  %3383 = vmatmul.mubr.msk.f32.gmra.mxu0 %vm93_vm0, %v4585_v27  ;;  %v7011_v27 = vld [vmem:[#allocation44_spill] sm:$0xff] }
  0x60   :  { %435 = vmatprep.subr.mxu0 %v4938_v13  ;;  %3859 = vmatprep.subr.mxu1 %v6988_v1 }
  0x61   :  { %436 = vmatpush2.msra.mxu0 %v4942_v11  ;;  %3860 = vmatpush3.msra.mxu1 %v4946_v9 }
  0x62   :  { %437 = vmatprep.subr.mxu0 %v4948_v62  ;;  %3861 = vmatprep.subr.mxu1 %v6988_v1 }
  0x63   :  { %438 = vmatpush2.msra.mxu0 %v4953_v7  ;;  %439 = vmatprep.mubr.f32.mxu0 %v6988_v1 }
  0x64   :  { %3862 = vmatpush3.msra.mxu1 %v4957_v25  ;;  %3863 = vmatprep.mubr.msk.f32.mxu1 %vm4444_vm1, %v6988_v1 }
  0x65   :  { %440 = vmatmul.mubr.f32.vlgmr.msra.gmra.mxu0 %v6988_v1  ;;  %3864 = vmatmul.mubr.f32.vlgmr.msra.gmra.mxu1 %v6988_v1 }
  0x66   :  { %698 = vmatprep.subr.mxu0 %v4580_v26  ;;  %785 = vmatprep.subr.mxu1 %v4587_v28  ;;  %v7028_v28 = vld [vmem:[#allocation79_spill] sm:$0xff] }
  0x67   :  { %699 = vmatpush1.msra.mxu0 %v4593_v30  ;;  %786 = vmatpush1.msra.mxu1 %v4589_v29  ;;  %v7027_v29 = vld [vmem:[#allocation76_spill] sm:$0xff] }
  0x68   :  { %700 = vmatprep.subr.mxu0 %v4600_v32  ;;  %787 = vmatprep.subr.mxu1 %v4595_v31  ;;  %v7026_v31 = vld [vmem:[#allocation74_spill] sm:$0xff] }
  0x69   :  { %701 = vmatpush1.msra.mxu0 %v4606_v34  ;;  %788 = vmatpush1.msra.mxu1 %v4602_v33  ;;  %v7025_v33 = vld [vmem:[#allocation73_spill] sm:$0xff] }
  0x6a   :  { %702 = vmatprep.subr.mxu0 %v4612_v36  ;;  %789 = vmatprep.subr.mxu1 %v4608_v35  ;;  %v7024_v35 = vld [vmem:[#allocation71_spill] sm:$0xff] }
  0x6b   :  { %703 = vmatpush1.msra.mxu0 %v4618_v38  ;;  %790 = vmatpush1.msra.mxu1 %v4614_v37  ;;  %v7023_v37 = vld [vmem:[#allocation70_spill] sm:$0xff] }
  0x6c   :  { %704 = vmatprep.subr.mxu0 %v4624_v40  ;;  %791 = vmatprep.subr.mxu1 %v4620_v39  ;;  %v7022_v39 = vld [vmem:[#allocation68_spill] sm:$0xff] }
  0x6d   :  { %705 = vmatpush1.msra.mxu0 %v4630_v42  ;;  %792 = vmatpush1.msra.mxu1 %v4626_v41  ;;  %v7021_v41 = vld [vmem:[#allocation66_spill] sm:$0xff] }
  0x6e   :  { %706 = vmatprep.subr.mxu0 %v4636_v44  ;;  %793 = vmatprep.subr.mxu1 %v4632_v43  ;;  %v7020_v43 = vld [vmem:[#allocation64_spill] sm:$0xff] }
  0x6f   :  { %707 = vmatpush1.msra.mxu0 %v4642_v46  ;;  %794 = vmatpush1.msra.mxu1 %v4638_v45  ;;  %v7019_v45 = vld [vmem:[#allocation62_spill] sm:$0xff] }
  0x70   :  { %708 = vmatprep.subr.mxu0 %v4648_v48  ;;  %795 = vmatprep.subr.mxu1 %v4644_v47  ;;  %v7018_v47 = vld [vmem:[#allocation58_spill] sm:$0xff] }
  0x71   :  { %709 = vmatpush1.msra.mxu0 %v4654_v50  ;;  %796 = vmatpush1.msra.mxu1 %v4650_v49  ;;  %v7017_v49 = vld [vmem:[#allocation56_spill] sm:$0xff] }
  0x72   :  { %710 = vmatprep.subr.mxu0 %v4660_v52  ;;  %797 = vmatprep.subr.mxu1 %v4656_v51  ;;  %v7016_v51 = vld [vmem:[#allocation54_spill] sm:$0xff] }
  0x73   :  { %711 = vmatpush1.msra.mxu0 %v4666_v54  ;;  %798 = vmatpush1.msra.mxu1 %v4662_v53  ;;  %v7015_v53 = vld [vmem:[#allocation52_spill] sm:$0xff] }
  0x74   :  { %712 = vmatprep.subr.mxu0 %v4672_v56  ;;  %799 = vmatprep.subr.mxu1 %v4668_v55  ;;  %v7014_v55 = vld [vmem:[#allocation50_spill] sm:$0xff] }
  0x75   :  { %713 = vmatpush1.msra.mxu0 %v4678_v58  ;;  %800 = vmatpush1.msra.mxu1 %v4674_v57  ;;  %v7013_v57 = vld [vmem:[#allocation48_spill] sm:$0xff] }
  0x76   :  { %714 = vmatprep.subr.mxu0 %v4682_v59  ;;  %833 = vmatprep.mubr.f32.mxu1 %v6988_v1 }
  0x77   :  { %715 = vmatpush1.msra.mxu0 %v4688_v61  ;;  %3461 = vmatprep.subr.mxu1 %v4686_v60  ;;  %v7012_v60 = vld [vmem:[#allocation46_spill] sm:$0xff] }
  0x78   :  { %716 = vmatprep.subr.mxu0 %v4694_v63 }
  0x79   :  { %717 = vmatpush1.msra.mxu0 %v4700_v2 }
  0x7a   :  { %718 = vmatprep.subr.mxu0 %v4706_v4 }
  0x7b   :  { %719 = vmatpush1.msra.mxu0 %v4712_v6 }
  0x7c   :  { %720 = vmatprep.subr.mxu0 %v4718_v8 }
  0x7d   :  { %721 = vmatpush1.msra.mxu0 %v4724_v10 }
  0x7e   :  { %722 = vmatprep.subr.mxu0 %v4730_v12 }
  0x7f   :  { %723 = vmatpush1.msra.mxu0 %v4736_v14 }
  0x80   :  { %724 = vmatprep.subr.mxu0 %v4742_v16 }
  0x81   :  { %725 = vmatpush1.msra.mxu0 %v4748_v18 }
  0x82   :  { %726 = vmatprep.subr.mxu0 %v4754_v20 }
  0x83   :  { %727 = vmatpush1.msra.mxu0 %v4760_v22 }
  0x84   :  { %728 = vmatprep.subr.mxu0 %v4766_v24 }
  0x85   :  { %729 = vmatpush1.msra.mxu0 %v4772_v0 }
  0x86   :  { %730 = vmatprep.subr.mxu0 %v4778_v17 }
  0x87   :  { %731 = vmatpush2.msra.mxu0 %v4784_v19 }
  0x88   :  { %732 = vmatprep.subr.mxu0 %v4790_v21 }
  0x89   :  { %733 = vmatpush2.msra.mxu0 %v7011_v27 }
  0x8a   :  { %734 = vmatprep.subr.mxu0 %v7012_v60 }
  0x8b   :  { %735 = vmatpush2.msra.mxu0 %v7013_v57 }
  0x8c   :  { %736 = vmatprep.subr.mxu0 %v7014_v55 }
  0x8d   :  { %737 = vmatpush2.msra.mxu0 %v7015_v53 }
  0x8e   :  { %738 = vmatprep.subr.mxu0 %v7016_v51 }
  0x8f   :  { %739 = vmatpush2.msra.mxu0 %v7017_v49 }
  0x90   :  { %740 = vmatprep.subr.mxu0 %v7018_v47 }
  0x91   :  { %741 = vmatpush2.msra.mxu0 %v4844_v3 }
  0x92   :  { %742 = vmatprep.subr.mxu0 %v7019_v45  ;;  %v7029_v45 = vld [vmem:[#allocation80_spill] sm:$0xff] }
  0x93   :  { %743 = vmatpush2.msra.mxu0 %v7020_v43  ;;  %v7030_v43 = vld [vmem:[#allocation82_spill] sm:$0xff] }
  0x94   :  { %744 = vmatprep.subr.mxu0 %v7021_v41  ;;  %v7031_v41 = vld [vmem:[#allocation83_spill] sm:$0xff] }
  0x95   :  { %745 = vmatpush2.msra.mxu0 %v7022_v39  ;;  %v7032_v39 = vld [vmem:[#allocation85_spill] sm:$0xff] }
  0x96   :  { %746 = vmatprep.subr.mxu0 %v7023_v37 }
  0x97   :  { %747 = vmatpush2.msra.mxu0 %v7024_v35 }
  0x98   :  { %748 = vmatprep.subr.mxu0 %v7025_v33 }
  0x99   :  { %749 = vmatpush2.msra.mxu0 %v7026_v31 }
  0x9a   :  { %750 = vmatprep.subr.mxu0 %v7027_v29 }
  0x9b   :  { %751 = vmatpush2.msra.mxu0 %v4900_v5  ;;  %v78_v5 = vlaneseq }
  0x9c   :  { %752 = vmatprep.subr.mxu0 %v7028_v28 }
  0x9d   :  { %753 = vmatpush2.msra.mxu0 %v7029_v45 }
  0x9e   :  { %754 = vmatprep.subr.mxu0 %v7030_v43 }
  0x9f   :  { %755 = vmatpush2.msra.mxu0 %v7031_v41  ;;  %v79_v41 = vshrl.u32 %v78_v5, 7 }
  0xa0   :  { %756 = vmatprep.subr.mxu0 %v7032_v39 }
  0xa1   :  { %757 = vmatpush2.msra.mxu0 %v4932_v15  ;;  %v88_v15 = vsub.s32 2, %v79_v41  ;;  %v80_v35 = vsub.s32 0, %v79_v41 }
  0xa2   :  { %758 = vmatprep.subr.mxu0 %v4938_v13 }
  0xa3   :  { %759 = vmatpush2.msra.mxu0 %v4942_v11  ;;  %v84_v11 = vsub.s32 1, %v79_v41 }
  0xa4   :  { %760 = vmatprep.subr.mxu0 %v4948_v62  ;;  %v76_v62 = vld [vmem:[%s6604_s3] sm:$0x7] }
  0xa5   :  { %761 = vmatpush2.msra.mxu0 %v4953_v7  ;;  %v81_v3 = vrot.slane %v76_v62, %v80_v35  ;;  %v85_v25 = vrot.slane %v76_v62, %v84_v11  ;;  %v7036_v11 = vld [vmem:[#allocation25_spill] sm:$0xff] }
  0xa6   :  { %1020 = vmatprep.subr.mxu0 %v4580_v26  ;;  %v89_v26 = vrot.slane %v76_v62, %v88_v15 }
  0xe0   :  { %v3846_v28 = vpop.f32.mrf.mxu1 }
  0xe1   :  { %v166_v29 = vpop.f32.mrf.mxu0  ;;  %v5061_v21 = vadd.f32 %v3846_v28, %v89_v26 }
  0xe2   :  { %v243_v45 = vpop.f32.mrf.mxu1 }
  0xe3   :  { %v168_v39 = vpop.f32.mrf.mxu0  ;;  %v5057_v57 = vadd.f32 %v243_v45, %v89_v26  ;;  %7035 = vst [vmem:[#allocation96_spill] sm:$0xff] %v5061_v21  ;;  %v7038_v26 = vld [vmem:[#allocation27_spill] sm:$0xff] }
  0xe5   :  { %7033 = vst [vmem:[#allocation94_spill] sm:$0xff] %v5057_v57 }
  0xf2   :  { %v512_v43 = vpop.f32.mrf.mxu1 }
  0xf4   :  { %v514_v31 = vpop.f32.mrf.mxu1 }
 0x113   :  { %v3449_v33 = vpop.f32.mrf.mxu1 }
 0x115   :  { %v3450_v7 = vpop.f32.mrf.mxu1 }
 0x116   :  { %v3451_v47 = vadd.f32 %v3450_v7, %v3449_v33  ;;  %v5065_v7 = vadd.f32 %v168_v39, %v85_v25 }
 0x11f   :  { %v172_v13 = vpop.f32.mrf.mxu0 }
 0x120   :  { %v5055_v51 = vadd.f32 %v172_v13, %v81_v3 }
 0x121   :  { %v174_v37 = vpop.f32.mrf.mxu0 }
 0x122   :  { %v5059_v23 = vadd.f32 %v174_v37, %v85_v25  ;;  %v5069_v37 = vadd.f32 %v166_v29, %v81_v3 }
 0x124   :  { %7034 = vst [vmem:[#allocation95_spill] sm:$0xff] %v5059_v23 }
 0x125   :  { %v441_v49 = vpop.f32.mrf.mxu0  ;;  %v653_v53 = vpop.f32.mrf.mxu1 }
 0x126   :  { %v513_v5 = vadd.f32 %v512_v43, %v441_v49  ;;  %v654_v9 = vadd.f32 %v3451_v47, %v653_v53 }
 0x127   :  { %v443_v55 = vpop.f32.mrf.mxu0  ;;  %v3865_v41 = vpop.f32.mrf.mxu1 }
 0x128   :  { %v660_v60 = vrot.slane %v513_v5, 1  ;;  %v515_v27 = vadd.f32 %v514_v31, %v443_v55  ;;  %v662_v15 = vrot.slane %v654_v9, 1  ;;  %v671_v35 = vadd.f32 %v654_v9, %v5057_v57  ;;  %v7039_v41 = vld [vmem:[#allocation28_spill] sm:$0xff] }
 0x129   :  { %v669_v28 = vadd.f32 %v513_v5, %v5069_v37 }
 0x12a   :  { %v672_v33 = vadd.f32 %v660_v60, %v5055_v51  ;;  %v661_v62 = vrot.slane %v515_v27, 1  ;;  %v674_v43 = vadd.f32 %v662_v15, %v5061_v21  ;;  %v670_v31 = vadd.f32 %v515_v27, %v5065_v7  ;;  %v7037_v27 = vld [vmem:[#allocation26_spill] sm:$0xff]  ;;  %v7040_v15 = vld [vmem:[#allocation29_spill] sm:$0xff] }
 0x12c   :  { %4056 = vtanh.f32 %v672_v33  ;;  %v673_v45 = vadd.f32 %v661_v62, %v5059_v23  ;;  %v7041_v33 = vld [vmem:[#allocation30_spill] sm:$0xff]  ;;  %v7043_v62 = vld [vmem:[#allocation32_spill] sm:$0xff] }
 0x12d   :  { %4058 = vtanh.f32 %v674_v43  ;;  %v7044_v43 = vld [vmem:[#allocation33_spill] sm:$0xff] }
 0x12e   :  { %4060 = vtanh.f32 %v671_v35  ;;  %v7042_v35 = vld [vmem:[#allocation31_spill] sm:$0xff] }
 0x12f   :  { %4062 = vtanh.f32 %v673_v45  ;;  %v7045_v45 = vld [vmem:[#allocation34_spill] sm:$0xff] }
 0x130   :  { %4064 = vtanh.f32 %v670_v31  ;;  %v7066_v31 = vld [vmem:[#allocation69_spill] sm:$0xff] }
 0x131   :  { %4066 = vtanh.f32 %v669_v28  ;;  %v7067_v28 = vld [vmem:[#allocation72_spill] sm:$0xff] }
 0x139   :  { %v4057_v47 = vpop.eup %4056 }
 0x13a   :  { %v4059_v49 = vpop.eup %4058  ;;  %v687_v3 = vrot.slane %v4057_v47, 7  ;;  %v7068_v47 = vld [vmem:[#allocation75_spill] sm:$0xff] }
 0x13b   :  { %v4061_v39 = vpop.eup %4060  ;;  %v692_v53 = vrot.slane %v4059_v49, 7  ;;  %v7069_v49 = vld [vmem:[#allocation78_spill] sm:$0xff] }
 0x13c   :  { %v4063_v55 = vpop.eup %4062 }
 0x13d   :  { %v5074_v60 = vsel %vm688_vm2, %v692_v53, %v4061_v39  ;;  %v690_v29 = vrot.slane %v4063_v55, 7  ;;  %v4065_v9 = vpop.eup %4064  ;;  %v7070_v39 = vld [vmem:[#allocation81_spill] sm:$0xff]  ;;  %v7071_v53 = vld [vmem:[#allocation42_spill] sm:$0xff]  ;;  %v7072_v55 = vld [vmem:[#allocation84_spill] sm:$0xff] }
 0x13e   :  { %3386 = vmatmul.mubr.msk.f32.vlgmr.msra.gmra.mxu1 %vm93_vm0, %v5074_v60  ;;  %v4067_v25 = vpop.eup %4066 }
 0x13f   :  { %3462 = vmatpush3.msra.mxu1 %v7036_v11  ;;  %v691_v13 = vsel %vm688_vm2, %v690_v29, %v4065_v9  ;;  %v689_v5 = vsel %vm688_vm2, %v687_v3, %v4067_v25  ;;  %v7073_v29 = vld [vmem:[#allocation44_spill] sm:$0xff]  ;;  %v7074_v3 = vld [vmem:[#allocation46_spill] sm:$0xff]  ;;  %v7075_v9 = vld [vmem:[#allocation87_spill] sm:$0xff] }
 0x140   :  { %3463 = vmatprep.subr.mxu1 %v7037_v27  ;;  %762 = vmatprep.mubr.f32.mxu0 %v691_v13  ;;  %v7076_v11 = vld [vmem:[#allocation48_spill] sm:$0xff]  ;;  %v7078_v25 = vld [vmem:[#allocation90_spill] sm:$0xff] }
 0x141   :  { %3464 = vmatpush3.msra.mxu1 %v7038_v26  ;;  %904 = vmatprep.mubr.f32.mxu1 %v691_v13  ;;  %v7077_v13 = vld [vmem:[#allocation50_spill] sm:$0xff]  ;;  %v7079_v27 = vld [vmem:[#allocation52_spill] sm:$0xff] }
 0x142   :  { %763 = vmatmul.mubr.f32.vlgmr.msra.gmra.mxu0 %v689_v5  ;;  %3465 = vmatprep.subr.mxu1 %v7039_v41  ;;  %v7080_v26 = vld [vmem:[#allocation54_spill] sm:$0xff]  ;;  %v7082_v41 = vld [vmem:[#allocation56_spill] sm:$0xff] }
 0x143   :  { %3466 = vmatpush3.msra.mxu1 %v7040_v15  ;;  %1021 = vmatpush1.msra.mxu0 %v4593_v30  ;;  %v7046_v30 = vld [vmem:[#allocation35_spill] sm:$0xff]  ;;  %v7083_v15 = vld [vmem:[#allocation58_spill] sm:$0xff] }
 0x144   :  { %3467 = vmatprep.subr.mxu1 %v7041_v33  ;;  %1022 = vmatprep.subr.mxu0 %v4600_v32  ;;  %v7047_v32 = vld [vmem:[#allocation36_spill] sm:$0xff] }
 0x145   :  { %3468 = vmatpush3.msra.mxu1 %v7042_v35  ;;  %1023 = vmatpush1.msra.mxu0 %v4606_v34  ;;  %v7048_v34 = vld [vmem:[#allocation37_spill] sm:$0xff]  ;;  %v7084_v33 = vld [vmem:[#allocation60_spill] sm:$0xff] }
 0x146   :  { %3469 = vmatprep.subr.mxu1 %v7043_v62  ;;  %1024 = vmatprep.subr.mxu0 %v4612_v36  ;;  %v7049_v36 = vld [vmem:[#allocation38_spill] sm:$0xff]  ;;  %v7085_v35 = vld [vmem:[#allocation8_spill] sm:$0xff] }
 0x147   :  { %3470 = vmatpush3.msra.mxu1 %v7044_v43  ;;  %1025 = vmatpush1.msra.mxu0 %v4618_v38  ;;  %v7050_v38 = vld [vmem:[#allocation39_spill] sm:$0xff]  ;;  %v7086_v62 = vld [vmem:[#allocation62_spill] sm:$0xff]  ;;  %v7087_v43 = vld [vmem:[#allocation9_spill] sm:$0xff] }
 0x148   :  { %3471 = vmatprep.subr.mxu1 %v7045_v45  ;;  %1026 = vmatprep.subr.mxu0 %v4624_v40  ;;  %v7051_v40 = vld [vmem:[#allocation40_spill] sm:$0xff] }
 0x149   :  { %3472 = vmatpush3.msra.mxu1 %v7046_v30  ;;  %1027 = vmatpush1.msra.mxu0 %v4630_v42  ;;  %v7052_v42 = vld [vmem:[#allocation41_spill] sm:$0xff]  ;;  %v7088_v45 = vld [vmem:[#allocation64_spill] sm:$0xff]  ;;  %v7089_v30 = vld [vmem:[#allocation10_spill] sm:$0xff] }
 0x14a   :  { %3473 = vmatprep.subr.mxu1 %v7047_v32  ;;  %1028 = vmatprep.subr.mxu0 %v4636_v44  ;;  %v7053_v44 = vld [vmem:[#allocation43_spill] sm:$0xff]  ;;  %v7090_v32 = vld [vmem:[#allocation66_spill] sm:$0xff] }
 0x14b   :  { %3474 = vmatpush3.msra.mxu1 %v7048_v34  ;;  %1029 = vmatpush1.msra.mxu0 %v4642_v46  ;;  %v7054_v46 = vld [vmem:[#allocation45_spill] sm:$0xff]  ;;  %v7091_v34 = vld [vmem:[#allocation11_spill] sm:$0xff] }
 0x14c   :  { %3475 = vmatprep.subr.mxu1 %v7049_v36  ;;  %1030 = vmatprep.subr.mxu0 %v4648_v48  ;;  %v7055_v48 = vld [vmem:[#allocation47_spill] sm:$0xff]  ;;  %v7092_v36 = vld [vmem:[#allocation68_spill] sm:$0xff] }
 0x14d   :  { %3476 = vmatpush3.msra.mxu1 %v7050_v38  ;;  %1031 = vmatpush1.msra.mxu0 %v4654_v50  ;;  %v7056_v50 = vld [vmem:[#allocation49_spill] sm:$0xff]  ;;  %v7094_v38 = vld [vmem:[#allocation70_spill] sm:$0xff] }
 0x14e   :  { %3477 = vmatprep.subr.mxu1 %v7051_v40  ;;  %1032 = vmatprep.subr.mxu0 %v4660_v52  ;;  %v7057_v52 = vld [vmem:[#allocation51_spill] sm:$0xff]  ;;  %v7095_v40 = vld [vmem:[#allocation13_spill] sm:$0xff] }
 0x14f   :  { %3478 = vmatpush3.msra.mxu1 %v7052_v42  ;;  %1033 = vmatpush1.msra.mxu0 %v4666_v54  ;;  %v7058_v54 = vld [vmem:[#allocation53_spill] sm:$0xff]  ;;  %v7096_v42 = vld [vmem:[#allocation71_spill] sm:$0xff] }
 0x150   :  { %3479 = vmatprep.subr.mxu1 %v7053_v44  ;;  %1034 = vmatprep.subr.mxu0 %v4672_v56  ;;  %v7059_v56 = vld [vmem:[#allocation55_spill] sm:$0xff]  ;;  %v7097_v44 = vld [vmem:[#allocation14_spill] sm:$0xff] }
 0x151   :  { %3480 = vmatpush3.msra.mxu1 %v7054_v46  ;;  %1035 = vmatpush1.msra.mxu0 %v4678_v58  ;;  %v7060_v58 = vld [vmem:[#allocation57_spill] sm:$0xff] }
 0x152   :  { %3481 = vmatprep.subr.mxu1 %v7055_v48  ;;  %1036 = vmatprep.subr.mxu0 %v4682_v59  ;;  %v7061_v59 = vld [vmem:[#allocation59_spill] sm:$0xff]  ;;  %v7098_v46 = vld [vmem:[#allocation73_spill] sm:$0xff] }
 0x153   :  { %3482 = vmatpush3.msra.mxu1 %v7056_v50  ;;  %1037 = vmatpush1.msra.mxu0 %v4688_v61  ;;  %v7062_v61 = vld [vmem:[#allocation61_spill] sm:$0xff]  ;;  %v7099_v48 = vld [vmem:[#allocation15_spill] sm:$0xff]  ;;  %v7100_v50 = vld [vmem:[#allocation74_spill] sm:$0xff] }
 0x154   :  { %3483 = vmatprep.subr.mxu1 %v7057_v52  ;;  %1038 = vmatprep.subr.mxu0 %v4694_v63  ;;  %v7063_v63 = vld [vmem:[#allocation63_spill] sm:$0xff]  ;;  %v7101_v52 = vld [vmem:[#allocation16_spill] sm:$0xff] }
 0x155   :  { %3484 = vmatpush3.msra.mxu1 %v7058_v54  ;;  %1039 = vmatpush1.msra.mxu0 %v4700_v2  ;;  %v7064_v2 = vld [vmem:[#allocation65_spill] sm:$0xff] }
 0x156   :  { %3485 = vmatprep.subr.mxu1 %v7059_v56  ;;  %1040 = vmatprep.subr.mxu0 %v4706_v4  ;;  %v7065_v4 = vld [vmem:[#allocation67_spill] sm:$0xff] }
 0x157   :  { %3486 = vmatpush3.msra.mxu1 %v7060_v58  ;;  %1041 = vmatpush1.msra.mxu0 %v4712_v6 }
 0x158   :  { %3487 = vmatprep.subr.mxu1 %v7061_v59  ;;  %1042 = vmatprep.subr.mxu0 %v4718_v8 }
 0x159   :  { %3488 = vmatpush3.msra.mxu1 %v7062_v61  ;;  %1043 = vmatpush1.msra.mxu0 %v4724_v10 }
 0x15a   :  { %3489 = vmatprep.subr.mxu1 %v7063_v63  ;;  %1044 = vmatprep.subr.mxu0 %v4730_v12 }
 0x15b   :  { %3490 = vmatpush3.msra.mxu1 %v7064_v2  ;;  %1045 = vmatpush1.msra.mxu0 %v4736_v14 }
 0x15c   :  { %3491 = vmatprep.subr.mxu1 %v7065_v4  ;;  %1046 = vmatprep.subr.mxu0 %v4742_v16 }
 0x15d   :  { %3492 = vmatpush3.msra.mxu1 %v7066_v31  ;;  %1047 = vmatpush1.msra.mxu0 %v4748_v18 }
 0x15e   :  { %905 = vmatmul.mubr.f32.vlgmr.msra.gmra.mxu1 %v689_v5  ;;  %3866 = vmatprep.subr.mxu1 %v6988_v1  ;;  %v7081_v5 = vld [vmem:[#allocation93_spill] sm:$0xff] }
 0x15f   :  { %3867 = vmatpush3.msra.mxu1 %v7067_v28  ;;  %3882 = vmatprep.mubr.msk.f32.mxu1 %vm4444_vm1, %v6988_v1 }
 0x160   :  { %3868 = vmatprep.subr.mxu1 %v6988_v1  ;;  %1048 = vmatprep.subr.mxu0 %v4754_v20 }
 0x161   :  { %3869 = vmatpush3.msra.mxu1 %v7068_v47  ;;  %1049 = vmatpush1.msra.mxu0 %v4760_v22  ;;  %v5212_v47 = vld [vmem:[#allocation2 + $0x170] sm:$0xff] }
 0x162   :  { %3870 = vmatprep.subr.mxu1 %v6988_v1  ;;  %1050 = vmatprep.subr.mxu0 %v4766_v24  ;;  %7122 = vst [vmem:[#allocation25_spill] sm:$0xff] %v5212_v47 }
 0x163   :  { %3871 = vmatpush3.msra.mxu1 %v7069_v49  ;;  %1051 = vmatpush1.msra.mxu0 %v4772_v0  ;;  %v7120_v49 = vld [vmem:[#allocation91_spill] sm:$0xff] }
 0x164   :  { %3872 = vmatprep.subr.mxu1 %v6988_v1  ;;  %1052 = vmatprep.subr.mxu0 %v4778_v17 }
 0x165   :  { %3873 = vmatpush3.msra.mxu1 %v7070_v39  ;;  %1053 = vmatpush2.msra.mxu0 %v4784_v19  ;;  %v7118_v39 = vld [vmem:[#allocation24_spill] sm:$0xff] }
 0x166   :  { %3874 = vmatprep.subr.mxu1 %v6988_v1  ;;  %1054 = vmatprep.subr.mxu0 %v7071_v53 }
 0x167   :  { %3875 = vmatpush3.msra.mxu1 %v7072_v55  ;;  %1055 = vmatpush2.msra.mxu0 %v7073_v29  ;;  %v7115_v55 = vld [vmem:[#allocation23_spill] sm:$0xff] }
 0x168   :  { %3876 = vmatprep.subr.mxu1 %v6988_v1  ;;  %1056 = vmatprep.subr.mxu0 %v7074_v3 }
 0x169   :  { %3877 = vmatpush3.msra.mxu1 %v7075_v9  ;;  %1057 = vmatpush2.msra.mxu0 %v7076_v11  ;;  %v7113_v9 = vld [vmem:[#allocation22_spill] sm:$0xff] }
 0x16a   :  { %3878 = vmatprep.subr.mxu1 %v6988_v1  ;;  %1058 = vmatprep.subr.mxu0 %v7077_v13 }
 0x16b   :  { %3879 = vmatpush3.msra.mxu1 %v7078_v25  ;;  %1059 = vmatpush2.msra.mxu0 %v7079_v27  ;;  %v7111_v25 = vld [vmem:[#allocation21_spill] sm:$0xff] }
 0x16c   :  { %3880 = vmatprep.subr.mxu1 %v6988_v1  ;;  %1060 = vmatprep.subr.mxu0 %v7080_v26 }
 0x16d   :  { %3881 = vmatpush3.msra.mxu1 %v7081_v5  ;;  %1061 = vmatpush2.msra.mxu0 %v7082_v41  ;;  %v7109_v5 = vld [vmem:[#allocation20_spill] sm:$0xff] }
 0x16e   :  { %3883 = vmatmul.mubr.msk.f32.vlgmr.msra.gmra.mxu1 %vm93_vm0, %v5074_v60  ;;  %1062 = vmatprep.subr.mxu0 %v7083_v15  ;;  %v7093_v60 = vld [vmem:[#allocation12_spill] sm:$0xff] }
 0x16f   :  { %1063 = vmatpush2.msra.mxu0 %v7084_v33  ;;  %1107 = vmatprep.subr.mxu1 %v7085_v35  ;;  %v7102_v35 = vld [vmem:[#allocation76_spill] sm:$0xff] }
 0x170   :  { %1064 = vmatprep.subr.mxu0 %v7086_v62  ;;  %1108 = vmatpush1.msra.mxu1 %v7087_v43  ;;  %v7103_v43 = vld [vmem:[#allocation17_spill] sm:$0xff] }
 0x171   :  { %1065 = vmatpush2.msra.mxu0 %v7088_v45  ;;  %1109 = vmatprep.subr.mxu1 %v7089_v30  ;;  %v7104_v30 = vld [vmem:[#allocation77_spill] sm:$0xff] }
 0x172   :  { %1066 = vmatprep.subr.mxu0 %v7090_v32  ;;  %1110 = vmatpush1.msra.mxu1 %v7091_v34  ;;  %v7105_v34 = vld [vmem:[#allocation18_spill] sm:$0xff] }
 0x173   :  { %1067 = vmatpush2.msra.mxu0 %v7092_v36  ;;  %1111 = vmatprep.subr.mxu1 %v7093_v60  ;;  %v7106_v60 = vld [vmem:[#allocation79_spill] sm:$0xff] }
 0x174   :  { %1068 = vmatprep.subr.mxu0 %v7094_v38  ;;  %1112 = vmatpush1.msra.mxu1 %v7095_v40  ;;  %v7107_v40 = vld [vmem:[#allocation19_spill] sm:$0xff] }
 0x175   :  { %1069 = vmatpush2.msra.mxu0 %v7096_v42  ;;  %1113 = vmatprep.subr.mxu1 %v7097_v44  ;;  %v7108_v44 = vld [vmem:[#allocation80_spill] sm:$0xff] }
 0x176   :  { %1070 = vmatprep.subr.mxu0 %v7098_v46  ;;  %1114 = vmatpush1.msra.mxu1 %v7099_v48  ;;  %v7110_v48 = vld [vmem:[#allocation82_spill] sm:$0xff] }
 0x177   :  { %1071 = vmatpush2.msra.mxu0 %v7100_v50  ;;  %1115 = vmatprep.subr.mxu1 %v7101_v52  ;;  %v7112_v52 = vld [vmem:[#allocation83_spill] sm:$0xff] }
 0x178   :  { %1072 = vmatprep.subr.mxu0 %v7102_v35  ;;  %1116 = vmatpush1.msra.mxu1 %v7103_v43  ;;  %v7114_v43 = vld [vmem:[#allocation85_spill] sm:$0xff] }
 0x179   :  { %1073 = vmatpush2.msra.mxu0 %v7104_v30  ;;  %1117 = vmatprep.subr.mxu1 %v7105_v34  ;;  %v7116_v34 = vld [vmem:[#allocation86_spill] sm:$0xff] }
 0x17a   :  { %1074 = vmatprep.subr.mxu0 %v7106_v60  ;;  %1118 = vmatpush1.msra.mxu1 %v7107_v40  ;;  %v7117_v40 = vld [vmem:[#allocation88_spill] sm:$0xff] }
 0x17b   :  { %1075 = vmatpush2.msra.mxu0 %v7108_v44  ;;  %1119 = vmatprep.subr.mxu1 %v7109_v5  ;;  %v7119_v5 = vld [vmem:[#allocation89_spill] sm:$0xff] }
 0x17c   :  { %1076 = vmatprep.subr.mxu0 %v7110_v48  ;;  %1120 = vmatpush1.msra.mxu1 %v7111_v25  ;;  %v7121_v25 = vld [vmem:[#allocation92_spill] sm:$0xff] }
 0x17d   :  { %1077 = vmatpush2.msra.mxu0 %v7112_v52  ;;  %1121 = vmatprep.subr.mxu1 %v7113_v9 }
 0x17e   :  { %1078 = vmatprep.subr.mxu0 %v7114_v43  ;;  %1122 = vmatpush1.msra.mxu1 %v7115_v55 }
 0x17f   :  { %1079 = vmatpush2.msra.mxu0 %v7116_v34  ;;  %1155 = vmatprep.mubr.f32.mxu1 %v6988_v1 }
 0x180   :  { %1080 = vmatprep.subr.mxu0 %v7117_v40  ;;  %3505 = vmatprep.subr.mxu1 %v7118_v39 }
 0x181   :  { %1081 = vmatpush2.msra.mxu0 %v7119_v5 }
 0x182   :  { %1082 = vmatprep.subr.mxu0 %v7120_v49 }
 0x183   :  { %1083 = vmatpush2.msra.mxu0 %v7121_v25 }
 0x184   :  { %1348 = vmatprep.subr.mxu0 %v5212_v47 }
 0x1fe   :  { %v835_v9 = vpop.f32.mrf.mxu1 }
 0x200   :  { %v837_v31 = vpop.f32.mrf.mxu1 }
 0x202   :  { %v764_v55 = vpop.f32.mrf.mxu0 }
 0x203   :  { %v836_v28 = vadd.f32 %v835_v9, %v764_v55 }
 0x204   :  { %v766_v4 = vpop.f32.mrf.mxu0 }
 0x205   :  { %v983_v1 = vrot.slane %v836_v28, 7  ;;  %v838_v2 = vadd.f32 %v837_v31, %v766_v4  ;;  %v995_v58 = vadd.f32 %v836_v28, %v5055_v51  ;;  %v5248_v31 = vld [vmem:[#allocation2 + $0x110] sm:$0xff] }
 0x206   :  { %7127 = vst [vmem:[#allocation30_spill] sm:$0xff] %v5248_v31 }
 0x207   :  { %v992_v63 = vadd.f32 %v983_v1, %v5069_v37  ;;  %v984_v39 = vrot.slane %v838_v2, 7  ;;  %v996_v59 = vadd.f32 %v838_v2, %v5059_v23  ;;  %v5245_v2 = vld [vmem:[#allocation2 + $0x120] sm:$0xff] }
 0x208   :  { %7126 = vst [vmem:[#allocation29_spill] sm:$0xff] %v5245_v2 }
 0x209   :  { %4068 = vtanh.f32 %v992_v63  ;;  %v993_v61 = vadd.f32 %v984_v39, %v5065_v7  ;;  %v5227_v63 = vld [vmem:[#allocation2 + $0x168] sm:$0xff]  ;;  %v5257_v39 = vld [vmem:[#allocation2 + $0xf0] sm:$0xff] }
 0x20a   :  { %7130 = vst [vmem:[#allocation33_spill] sm:$0xff] %v5257_v39 }
 0x20b   :  { %4070 = vtanh.f32 %v993_v61  ;;  %v5242_v61 = vld [vmem:[#allocation2 + $0x128] sm:$0xff] }
 0x20c   :  { %4072 = vtanh.f32 %v996_v59  ;;  %v5236_v59 = vld [vmem:[#allocation2 + $0x140] sm:$0xff]  ;;  %7125 = vst [vmem:[#allocation28_spill] sm:$0xff] %v5242_v61 }
 0x20d   :  { %4074 = vtanh.f32 %v995_v58  ;;  %v5230_v58 = vld [vmem:[#allocation2 + $0x158] sm:$0xff]  ;;  %7123 = vst [vmem:[#allocation26_spill] sm:$0xff] %v5236_v59 }
 0x216   :  { %v4069_v47 = vpop.eup %4068 }
 0x217   :  { %v1010_v9 = vrot.slane %v4069_v47, 1  ;;  %v5251_v47 = vld [vmem:[#allocation2 + $0x108] sm:$0xff] }
 0x218   :  { %v4071_v56 = vpop.eup %4070  ;;  %7128 = vst [vmem:[#allocation31_spill] sm:$0xff] %v5251_v47 }
 0x219   :  { %v1012_v55 = vrot.slane %v4071_v56, 1  ;;  %v4073_v25 = vpop.eup %4072  ;;  %v5233_v56 = vld [vmem:[#allocation2 + $0x150] sm:$0xff] }
 0x21a   :  { %v4075_v54 = vpop.eup %4074 }
 0x21b   :  { %v5220_v4 = vsel %vm688_vm2, %v4073_v25, %v1012_v55  ;;  %v5224_v1 = vsel %vm688_vm2, %v4075_v54, %v1010_v9  ;;  %v5239_v54 = vld [vmem:[#allocation2 + $0x138] sm:$0xff]  ;;  %v5260_v9 = vld [vmem:[#allocation2 + $0xe0] sm:$0xff] }
 0x21c   :  { %1084 = vmatprep.mubr.f32.mxu0 %v5220_v4  ;;  %7124 = vst [vmem:[#allocation27_spill] sm:$0xff] %v5239_v54  ;;  %v5254_v25 = vld [vmem:[#allocation2 + $0xf8] sm:$0xff]  ;;  %7131 = vst [vmem:[#allocation34_spill] sm:$0xff] %v5260_v9 }
 0x21d   :  { %1085 = vmatmul.mubr.f32.vlgmr.msra.gmra.mxu0 %v5224_v1  ;;  %7129 = vst [vmem:[#allocation32_spill] sm:$0xff] %v5254_v25 }
 0x21e   :  { %1349 = vmatpush1.msra.mxu0 %v5227_v63  ;;  %v3493_v28 = vpop.f32.mrf.mxu1 }
 0x21f   :  { %1350 = vmatprep.subr.mxu0 %v5230_v58 }
 0x220   :  { %1351 = vmatpush1.msra.mxu0 %v5233_v56  ;;  %v3494_v55 = vpop.f32.mrf.mxu1 }
 0x221   :  { %1352 = vmatprep.subr.mxu0 %v5236_v59  ;;  %v5281_v59 = vld [vmem:[#allocation2 + $0x90] sm:$0xff] }
 0x222   :  { %1353 = vmatpush1.msra.mxu0 %v5239_v54 }
 0x223   :  { %1354 = vmatprep.subr.mxu0 %v5242_v61  ;;  %v5272_v61 = vld [vmem:[#allocation2 + $0xb0] sm:$0xff] }
 0x224   :  { %1355 = vmatpush1.msra.mxu0 %v5245_v2  ;;  %v5263_v2 = vld [vmem:[#allocation2 + $0xd8] sm:$0xff]  ;;  %7135 = vst [vmem:[#allocation38_spill] sm:$0xff] %v5272_v61 }
 0x225   :  { %1356 = vmatprep.subr.mxu0 %v5248_v31  ;;  %7132 = vst [vmem:[#allocation35_spill] sm:$0xff] %v5263_v2  ;;  %v5266_v31 = vld [vmem:[#allocation2 + $0xc8] sm:$0xff] }
 0x226   :  { %1357 = vmatpush1.msra.mxu0 %v5251_v47  ;;  %7133 = vst [vmem:[#allocation36_spill] sm:$0xff] %v5266_v31  ;;  %v5269_v47 = vld [vmem:[#allocation2 + $0xc0] sm:$0xff] }
 0x227   :  { %1358 = vmatprep.subr.mxu0 %v5254_v25  ;;  %7134 = vst [vmem:[#allocation37_spill] sm:$0xff] %v5269_v47  ;;  %v3495_v25 = vadd.f32 %v3494_v55, %v3493_v28  ;;  %v5284_v55 = vld [vmem:[#allocation2 + $0x80] sm:$0xff] }
 0x228   :  { %1359 = vmatpush1.msra.mxu0 %v5257_v39 }
 0x229   :  { %1360 = vmatprep.subr.mxu0 %v5260_v9  ;;  %v5275_v9 = vld [vmem:[#allocation2 + $0xa8] sm:$0xff] }
 0x22a   :  { %1361 = vmatpush1.msra.mxu0 %v5263_v2  ;;  %7136 = vst [vmem:[#allocation39_spill] sm:$0xff] %v5275_v9  ;;  %v5278_v2 = vld [vmem:[#allocation2 + $0x98] sm:$0xff] }
 0x22b   :  { %1362 = vmatprep.subr.mxu0 %v5266_v31 }
 0x22c   :  { %1363 = vmatpush1.msra.mxu0 %v5269_v47 }
 0x22d   :  { %1364 = vmatprep.subr.mxu0 %v5272_v61 }
 0x22e   :  { %v976_v39 = vpop.f32.mrf.mxu1  ;;  %1365 = vmatpush1.msra.mxu0 %v5275_v9 }
 0x22f   :  { %v977_v54 = vadd.f32 %v3495_v25, %v976_v39  ;;  %1366 = vmatprep.subr.mxu0 %v5278_v2  ;;  %v5438_v39 = vld [vmem:[#allocation2 + $0x3a8] sm:$0xff] }
 0x230   :  { %v3884_v31 = vpop.f32.mrf.mxu1  ;;  %1367 = vmatpush1.msra.mxu0 %v5281_v59  ;;  %7161 = vst [vmem:[#allocation47_spill] sm:$0xff] %v5438_v39 }
 0x231   :  { %v985_v28 = vrot.slane %v977_v54, 7  ;;  %1368 = vmatprep.subr.mxu0 %v5284_v55  ;;  %v997_v25 = vadd.f32 %v977_v54, %v5061_v21  ;;  %v7158_v54 = vld [vmem:[#allocation90_spill] sm:$0xff] }
 0x232   :  { %1369 = vmatpush1.msra.mxu0 %v4712_v6  ;;  %v5435_v31 = vld [vmem:[#allocation2 + $0x3b0] sm:$0xff] }
 0x233   :  { %v994_v61 = vadd.f32 %v985_v28, %v5057_v57  ;;  %1370 = vmatprep.subr.mxu0 %v4718_v8  ;;  %7160 = vst [vmem:[#allocation45_spill] sm:$0xff] %v5435_v31  ;;  %v5442_v28 = vld [vmem:[#allocation2 + $0x398] sm:$0xff] }
 0x234   :  { %1371 = vmatpush1.msra.mxu0 %v4724_v10  ;;  %7162 = vst [vmem:[#allocation49_spill] sm:$0xff] %v5442_v28 }
 0x235   :  { %4076 = vtanh.f32 %v994_v61  ;;  %1372 = vmatprep.subr.mxu0 %v4730_v12  ;;  %v5315_v12 = vld [vmem:[#allocation2 + $0x178] sm:$0xff]  ;;  %v7159_v61 = vld [vmem:[#allocation93_spill] sm:$0xff] }
 0x236   :  { %1373 = vmatpush1.msra.mxu0 %v4736_v14  ;;  %4078 = vtanh.f32 %v997_v25  ;;  %v5319_v14 = vld [vmem:[#allocation2 + $0x2e0] sm:$0xff]  ;;  %v5445_v25 = vld [vmem:[#allocation2 + $0x390] sm:$0xff] }
 0x237   :  { %1374 = vmatprep.subr.mxu0 %v4742_v16  ;;  %v5323_v16 = vld [vmem:[#allocation2 + $0x160] sm:$0xff]  ;;  %7163 = vst [vmem:[#allocation51_spill] sm:$0xff] %v5445_v25 }
 0x238   :  { %1375 = vmatpush1.msra.mxu0 %v4748_v18  ;;  %v5331_v18 = vld [vmem:[#allocation2 + $0x148] sm:$0xff] }
 0x239   :  { %1376 = vmatprep.subr.mxu0 %v4754_v20  ;;  %v5339_v20 = vld [vmem:[#allocation2 + $0x130] sm:$0xff] }
 0x23a   :  { %1377 = vmatpush1.msra.mxu0 %v4760_v22  ;;  %v5343_v22 = vld [vmem:[#allocation2 + $0x298] sm:$0xff] }
 0x23b   :  { %1378 = vmatprep.subr.mxu0 %v4766_v24  ;;  %v5347_v24 = vld [vmem:[#allocation2 + $0x118] sm:$0xff] }
 0x23c   :  { %1379 = vmatpush1.msra.mxu0 %v4772_v0 }
 0x23d   :  { %1380 = vmatprep.subr.mxu0 %v4778_v17  ;;  %v5327_v17 = vld [vmem:[#allocation2 + $0x2c8] sm:$0xff] }
 0x23e   :  { %1381 = vmatpush2.msra.mxu0 %v4784_v19  ;;  %v5335_v19 = vld [vmem:[#allocation2 + $0x2b0] sm:$0xff] }
 0x23f   :  { %1382 = vmatprep.subr.mxu0 %v7071_v53  ;;  %v5351_v53 = vld [vmem:[#allocation2 + $0x280] sm:$0xff] }
 0x240   :  { %1383 = vmatpush2.msra.mxu0 %v7073_v29  ;;  %v5355_v29 = vld [vmem:[#allocation2 + $0x100] sm:$0xff] }
 0x241   :  { %1384 = vmatprep.subr.mxu0 %v7074_v3  ;;  %v5359_v3 = vld [vmem:[#allocation2 + $0x268] sm:$0xff] }
 0x242   :  { %v4077_v6 = vpop.eup %4076  ;;  %1385 = vmatpush2.msra.mxu0 %v7076_v11  ;;  %v5363_v11 = vld [vmem:[#allocation2 + $0xe8] sm:$0xff] }
 0x243   :  { %v1014_v8 = vrot.slane %v4077_v6, 1  ;;  %1386 = vmatprep.subr.mxu0 %v7077_v13  ;;  %v4079_v10 = vpop.eup %4078  ;;  %v5367_v13 = vld [vmem:[#allocation2 + $0x250] sm:$0xff]  ;;  %v5448_v6 = vld [vmem:[#allocation2 + $0x380] sm:$0xff] }
 0x244   :  { %1387 = vmatpush2.msra.mxu0 %v7079_v27  ;;  %v5371_v27 = vld [vmem:[#allocation2 + $0xd0] sm:$0xff]  ;;  %7164 = vst [vmem:[#allocation42_spill] sm:$0xff] %v5448_v6 }
 0x245   :  { %v5309_v0 = vsel %vm688_vm2, %v4079_v10, %v1014_v8  ;;  %1388 = vmatprep.subr.mxu0 %v7080_v26  ;;  %v5375_v26 = vld [vmem:[#allocation2 + $0x238] sm:$0xff]  ;;  %v5454_v10 = vld [vmem:[#allocation2 + $0x368] sm:$0xff] }
 0x246   :  { %3388 = vmatmul.mubr.msk.f32.vlgmr.msra.gmra.mxu1 %vm93_vm0, %v5309_v0  ;;  %1389 = vmatpush2.msra.mxu0 %v7082_v41  ;;  %v5379_v41 = vld [vmem:[#allocation2 + $0xb8] sm:$0xff]  ;;  %7166 = vst [vmem:[#allocation46_spill] sm:$0xff] %v5454_v10 }
 0x247   :  { %3506 = vmatpush3.msra.mxu1 %v5315_v12  ;;  %1226 = vmatprep.mubr.f32.mxu1 %v5220_v4  ;;  %v7156_v4 = vld [vmem:[#allocation84_spill] sm:$0xff]  ;;  %v5451_v8 = vld [vmem:[#allocation2 + $0x378] sm:$0xff] }
 0x248   :  { %3507 = vmatprep.subr.mxu1 %v5319_v14  ;;  %1390 = vmatprep.subr.mxu0 %v7083_v15  ;;  %v5383_v15 = vld [vmem:[#allocation2 + $0x220] sm:$0xff]  ;;  %7165 = vst [vmem:[#allocation44_spill] sm:$0xff] %v5451_v8 }
 0x249   :  { %3508 = vmatpush3.msra.mxu1 %v5323_v16  ;;  %1391 = vmatpush2.msra.mxu0 %v7084_v33  ;;  %7137 = vst [vmem:[#allocation40_spill] sm:$0xff] %v5383_v15  ;;  %v5387_v33 = vld [vmem:[#allocation2 + $0xa0] sm:$0xff] }
 0x24a   :  { %3509 = vmatprep.subr.mxu1 %v5327_v17  ;;  %1392 = vmatprep.subr.mxu0 %v7086_v62  ;;  %7138 = vst [vmem:[#allocation41_spill] sm:$0xff] %v5387_v33  ;;  %v5391_v62 = vld [vmem:[#allocation2 + $0x208] sm:$0xff] }
 0x24b   :  { %3510 = vmatpush3.msra.mxu1 %v5331_v18  ;;  %1393 = vmatpush2.msra.mxu0 %v7088_v45  ;;  %v5395_v45 = vld [vmem:[#allocation2 + $0x88] sm:$0xff] }
 0x24c   :  { %3511 = vmatprep.subr.mxu1 %v5335_v19  ;;  %1394 = vmatprep.subr.mxu0 %v7090_v32  ;;  %v5399_v32 = vld [vmem:[#allocation2 + $0x1f0] sm:$0xff] }
 0x24d   :  { %3512 = vmatpush3.msra.mxu1 %v5339_v20  ;;  %1395 = vmatpush2.msra.mxu0 %v7092_v36  ;;  %7139 = vst [vmem:[#allocation43_spill] sm:$0xff] %v5399_v32  ;;  %v7140_v36 = vld [vmem:[#allocation53_spill] sm:$0xff] }
 0x24e   :  { %3513 = vmatprep.subr.mxu1 %v5343_v22  ;;  %1396 = vmatprep.subr.mxu0 %v7094_v38  ;;  %v7141_v38 = vld [vmem:[#allocation92_spill] sm:$0xff] }
 0x24f   :  { %3514 = vmatpush3.msra.mxu1 %v5347_v24  ;;  %1397 = vmatpush2.msra.mxu0 %v7096_v42  ;;  %v7142_v42 = vld [vmem:[#allocation55_spill] sm:$0xff] }
 0x250   :  { %3515 = vmatprep.subr.mxu1 %v5351_v53  ;;  %1398 = vmatprep.subr.mxu0 %v7098_v46  ;;  %v7143_v46 = vld [vmem:[#allocation25_spill] sm:$0xff] }
 0x251   :  { %3516 = vmatpush3.msra.mxu1 %v5355_v29  ;;  %1399 = vmatpush2.msra.mxu0 %v7100_v50  ;;  %v7144_v50 = vld [vmem:[#allocation57_spill] sm:$0xff] }
 0x252   :  { %3517 = vmatprep.subr.mxu1 %v5359_v3  ;;  %1400 = vmatprep.subr.mxu0 %v7102_v35  ;;  %v7145_v35 = vld [vmem:[#allocation59_spill] sm:$0xff] }
 0x253   :  { %3518 = vmatpush3.msra.mxu1 %v5363_v11  ;;  %1401 = vmatpush2.msra.mxu0 %v7104_v30  ;;  %v7146_v30 = vld [vmem:[#allocation61_spill] sm:$0xff] }
 0x254   :  { %3519 = vmatprep.subr.mxu1 %v5367_v13  ;;  %1402 = vmatprep.subr.mxu0 %v7106_v60  ;;  %v7147_v60 = vld [vmem:[#allocation63_spill] sm:$0xff] }
 0x255   :  { %3520 = vmatpush3.msra.mxu1 %v5371_v27  ;;  %1403 = vmatpush2.msra.mxu0 %v7108_v44  ;;  %v7148_v44 = vld [vmem:[#allocation65_spill] sm:$0xff] }
 0x256   :  { %3521 = vmatprep.subr.mxu1 %v5375_v26  ;;  %1404 = vmatprep.subr.mxu0 %v7110_v48  ;;  %v7149_v48 = vld [vmem:[#allocation67_spill] sm:$0xff] }
 0x257   :  { %3522 = vmatpush3.msra.mxu1 %v5379_v41  ;;  %1405 = vmatpush2.msra.mxu0 %v7112_v52  ;;  %v7151_v52 = vmov 0.0  }
 0x258   :  { %3523 = vmatprep.subr.mxu1 %v5383_v15  ;;  %1406 = vmatprep.subr.mxu0 %v7114_v43  ;;  %v7152_v43 = vld [vmem:[#allocation72_spill] sm:$0xff] }
 0x259   :  { %3524 = vmatpush3.msra.mxu1 %v5387_v33  ;;  %1407 = vmatpush2.msra.mxu0 %v7116_v34  ;;  %v7153_v34 = vld [vmem:[#allocation75_spill] sm:$0xff] }
 0x25a   :  { %3525 = vmatprep.subr.mxu1 %v5391_v62  ;;  %1408 = vmatprep.subr.mxu0 %v7117_v40  ;;  %v7154_v40 = vld [vmem:[#allocation78_spill] sm:$0xff] }
 0x25b   :  { %3526 = vmatpush3.msra.mxu1 %v5395_v45  ;;  %1409 = vmatpush2.msra.mxu0 %v7119_v5  ;;  %v7155_v5 = vld [vmem:[#allocation81_spill] sm:$0xff] }
 0x25c   :  { %3527 = vmatprep.subr.mxu1 %v5399_v32  ;;  %1410 = vmatprep.subr.mxu0 %v7120_v49  ;;  %v7150_v49 = vld [vmem:[#allocation69_spill] sm:$0xff] }
 0x25d   :  { %3528 = vmatpush3.msra.mxu1 %v7140_v36  ;;  %1411 = vmatpush2.msra.mxu0 %v7141_v38  ;;  %v5460_v36 = vld [vmem:[#allocation2 + $0x350] sm:$0xff]  ;;  %v5463_v38 = vld [vmem:[#allocation2 + $0x348] sm:$0xff] }
 0x25e   :  { %3529 = vmatprep.subr.mxu1 %v7142_v42  ;;  %1676 = vmatprep.subr.mxu0 %v7143_v46  ;;  %7168 = vst [vmem:[#allocation50_spill] sm:$0xff] %v5460_v36  ;;  %7169 = vst [vmem:[#allocation52_spill] sm:$0xff] %v5463_v38  ;;  %v5466_v42 = vld [vmem:[#allocation2 + $0x338] sm:$0xff] }
 0x25f   :  { %3530 = vmatpush3.msra.mxu1 %v7144_v50  ;;  %7170 = vst [vmem:[#allocation54_spill] sm:$0xff] %v5466_v42  ;;  %v5469_v50 = vld [vmem:[#allocation2 + $0x330] sm:$0xff] }
 0x260   :  { %3531 = vmatprep.subr.mxu1 %v7145_v35  ;;  %7171 = vst [vmem:[#allocation56_spill] sm:$0xff] %v5469_v50  ;;  %v5472_v35 = vld [vmem:[#allocation2 + $0x320] sm:$0xff] }
 0x261   :  { %3532 = vmatpush3.msra.mxu1 %v7146_v30  ;;  %7172 = vst [vmem:[#allocation58_spill] sm:$0xff] %v5472_v35  ;;  %v5475_v30 = vld [vmem:[#allocation2 + $0x318] sm:$0xff] }
 0x262   :  { %3533 = vmatprep.subr.mxu1 %v7147_v60  ;;  %7173 = vst [vmem:[#allocation60_spill] sm:$0xff] %v5475_v30  ;;  %v5478_v60 = vld [vmem:[#allocation2 + $0x308] sm:$0xff] }
 0x263   :  { %3534 = vmatpush3.msra.mxu1 %v7148_v44  ;;  %7174 = vst [vmem:[#allocation8_spill] sm:$0xff] %v5478_v60  ;;  %v5481_v44 = vld [vmem:[#allocation2 + $0x300] sm:$0xff] }
 0x264   :  { %3535 = vmatprep.subr.mxu1 %v7149_v48  ;;  %7175 = vst [vmem:[#allocation62_spill] sm:$0xff] %v5481_v44  ;;  %v5484_v48 = vld [vmem:[#allocation2 + $0x2f8] sm:$0xff] }
 0x265   :  { %3536 = vmatpush3.msra.mxu1 %v7150_v49  ;;  %7176 = vst [vmem:[#allocation9_spill] sm:$0xff] %v5484_v48 }
 0x266   :  { %1227 = vmatmul.mubr.f32.vlgmr.msra.gmra.mxu1 %v5224_v1  ;;  %3885 = vmatprep.subr.mxu1 %v7151_v52  ;;  %v7157_v1 = vld [vmem:[#allocation87_spill] sm:$0xff] }
 0x267   :  { %3886 = vmatpush3.msra.mxu1 %v7152_v43  ;;  %3901 = vmatprep.mubr.msk.f32.mxu1 %vm4444_vm1, %v7151_v52 }
 0x268   :  { %3887 = vmatprep.subr.mxu1 %v7151_v52 }
 0x269   :  { %3888 = vmatpush3.msra.mxu1 %v7153_v34 }
 0x26a   :  { %3889 = vmatprep.subr.mxu1 %v7151_v52 }
 0x26b   :  { %3890 = vmatpush3.msra.mxu1 %v7154_v40 }
 0x26c   :  { %3891 = vmatprep.subr.mxu1 %v7151_v52 }
 0x26d   :  { %3892 = vmatpush3.msra.mxu1 %v7155_v5 }
 0x26e   :  { %3893 = vmatprep.subr.mxu1 %v7151_v52 }
 0x26f   :  { %3894 = vmatpush3.msra.mxu1 %v7156_v4 }
 0x270   :  { %3895 = vmatprep.subr.mxu1 %v7151_v52 }
 0x271   :  { %3896 = vmatpush3.msra.mxu1 %v7157_v1 }
 0x272   :  { %3897 = vmatprep.subr.mxu1 %v7151_v52 }
 0x273   :  { %3898 = vmatpush3.msra.mxu1 %v7158_v54 }
 0x274   :  { %3899 = vmatprep.subr.mxu1 %v7151_v52 }
 0x275   :  { %3900 = vmatpush3.msra.mxu1 %v7159_v61 }
 0x276   :  { %3902 = vmatmul.mubr.msk.f32.vlgmr.msra.gmra.mxu1 %vm93_vm0, %v5309_v0  ;;  %1435 = vmatprep.subr.mxu1 %v5435_v31  ;;  %v5457_v0 = vld [vmem:[#allocation2 + $0x360] sm:$0xff] }
 0x277   :  { %1436 = vmatpush1.msra.mxu1 %v5438_v39  ;;  %1483 = vmatprep.mubr.f32.mxu1 %v7151_v52  ;;  %7167 = vst [vmem:[#allocation48_spill] sm:$0xff] %v5457_v0 }
 0x278   :  { %1437 = vmatprep.subr.mxu1 %v5442_v28 }
 0x279   :  { %1438 = vmatpush1.msra.mxu1 %v5445_v25 }
 0x27a   :  { %1439 = vmatprep.subr.mxu1 %v5448_v6 }
 0x27b   :  { %1440 = vmatpush1.msra.mxu1 %v5451_v8 }
 0x27c   :  { %1441 = vmatprep.subr.mxu1 %v5454_v10 }
 0x27d   :  { %1442 = vmatpush1.msra.mxu1 %v5457_v0 }
 0x27e   :  { %1443 = vmatprep.subr.mxu1 %v5460_v36 }
 0x27f   :  { %1444 = vmatpush1.msra.mxu1 %v5463_v38 }
 0x280   :  { %1445 = vmatprep.subr.mxu1 %v5466_v42 }
 0x281   :  { %1446 = vmatpush1.msra.mxu1 %v5469_v50 }
 0x282   :  { %1447 = vmatprep.subr.mxu1 %v5472_v35 }
 0x283   :  { %1448 = vmatpush1.msra.mxu1 %v5475_v30 }
 0x284   :  { %1449 = vmatprep.subr.mxu1 %v5478_v60 }
 0x285   :  { %1450 = vmatpush1.msra.mxu1 %v5481_v44 }
 0x286   :  { %3549 = vmatprep.subr.mxu1 %v5484_v48 }
 0x2dd   :  { %v1086_v49 = vpop.f32.mrf.mxu0 }
 0x2df   :  { %v1088_v40 = vpop.f32.mrf.mxu0 }
 0x306   :  { %v1157_v43 = vpop.f32.mrf.mxu1 }
 0x307   :  { %v1158_v34 = vadd.f32 %v1157_v43, %v1086_v49 }
 0x308   :  { %v1159_v5 = vpop.f32.mrf.mxu1 }
 0x309   :  { %v1305_v4 = vrot.slane %v1158_v34, 6  ;;  %v1308_v1 = vrot.slane %v1158_v34, 7  ;;  %v1160_v54 = vadd.f32 %v1159_v5, %v1088_v40 }
 0x30b   :  { %v1317_v61 = vadd.f32 %v1305_v4, %v5069_v37  ;;  %v1320_v60 = vadd.f32 %v1308_v1, %v5055_v51  ;;  %v1306_v30 = vrot.slane %v1160_v54, 6  ;;  %v1309_v35 = vrot.slane %v1160_v54, 7  ;;  %v7183_v54 = vld [vmem:[#allocation32_spill] sm:$0xff] }
 0x30d   :  { %4080 = vtanh.f32 %v1317_v61  ;;  %v1318_v44 = vadd.f32 %v1306_v30, %v5065_v7  ;;  %v1321_v50 = vadd.f32 %v1309_v35, %v5059_v23  ;;  %v7178_v35 = vld [vmem:[#allocation27_spill] sm:$0xff]  ;;  %v7184_v61 = vld [vmem:[#allocation33_spill] sm:$0xff] }
 0x30e   :  { %4082 = vtanh.f32 %v1320_v60  ;;  %v7180_v60 = vld [vmem:[#allocation29_spill] sm:$0xff] }
 0x30f   :  { %4084 = vtanh.f32 %v1318_v44  ;;  %v7181_v44 = vld [vmem:[#allocation30_spill] sm:$0xff] }
 0x310   :  { %4086 = vtanh.f32 %v1321_v50  ;;  %v7177_v50 = vld [vmem:[#allocation26_spill] sm:$0xff] }
 0x31a   :  { %v4081_v49 = vpop.eup %4080 }
 0x31b   :  { %v4083_v43 = vpop.eup %4082  ;;  %v1335_v40 = vrot.slane %v4081_v49, 2 }
 0x31c   :  { %v4085_v48 = vpop.eup %4084  ;;  %v1336_v5 = vrot.slane %v4083_v43, 1  ;;  %v7185_v43 = vld [vmem:[#allocation34_spill] sm:$0xff] }
 0x31d   :  { %v4087_v42 = vpop.eup %4086  ;;  %v1338_v34 = vrot.slane %v4085_v48, 2  ;;  %v7182_v48 = vld [vmem:[#allocation31_spill] sm:$0xff] }
 0x31e   :  { %v1339_v4 = vrot.slane %v4087_v42, 1  ;;  %v5496_v30 = vsel %vm688_vm2, %v1336_v5, %v1335_v40  ;;  %v7179_v42 = vld [vmem:[#allocation28_spill] sm:$0xff] }
 0x31f   :  { %v7187_v40 = vld [vmem:[#allocation36_spill] sm:$0xff] }
 0x320   :  { %v5492_v1 = vsel %vm688_vm2, %v1339_v4, %v1338_v34  ;;  %v7186_v34 = vld [vmem:[#allocation35_spill] sm:$0xff]  ;;  %v7188_v4 = vld [vmem:[#allocation38_spill] sm:$0xff] }
 0x321   :  { %1412 = vmatprep.mubr.f32.mxu0 %v5492_v1 }
 0x322   :  { %1413 = vmatmul.mubr.f32.vlgmr.msra.gmra.mxu0 %v5496_v30 }
 0x323   :  { %1677 = vmatpush1.msra.mxu0 %v5227_v63 }
 0x324   :  { %1678 = vmatprep.subr.mxu0 %v5230_v58 }
 0x325   :  { %1679 = vmatpush1.msra.mxu0 %v5233_v56 }
 0x326   :  { %1680 = vmatprep.subr.mxu0 %v7177_v50  ;;  %v3537_v49 = vpop.f32.mrf.mxu1 }
 0x327   :  { %1681 = vmatpush1.msra.mxu0 %v7178_v35 }
 0x328   :  { %1682 = vmatprep.subr.mxu0 %v7179_v42  ;;  %v3538_v5 = vpop.f32.mrf.mxu1 }
 0x329   :  { %1683 = vmatpush1.msra.mxu0 %v7180_v60 }
 0x32a   :  { %1684 = vmatprep.subr.mxu0 %v7181_v44 }
 0x32b   :  { %1685 = vmatpush1.msra.mxu0 %v7182_v48  ;;  %v3539_v48 = vadd.f32 %v3538_v5, %v3537_v49  ;;  %v5528_v49 = vld [vmem:[#allocation2 + $0x50] sm:$0xff]  ;;  %v5533_v5 = vld [vmem:[#allocation2 + $0x48] sm:$0xff] }
 0x32c   :  { %1686 = vmatprep.subr.mxu0 %v7183_v54  ;;  %v5519_v54 = vld [vmem:[#allocation2 + $0x78] sm:$0xff]  ;;  %7190 = vst [vmem:[#allocation10_spill] sm:$0xff] %v5533_v5 }
 0x32d   :  { %1687 = vmatpush1.msra.mxu0 %v7184_v61 }
 0x32e   :  { %1688 = vmatprep.subr.mxu0 %v7185_v43 }
 0x32f   :  { %1689 = vmatpush1.msra.mxu0 %v7186_v34  ;;  %v5525_v34 = vld [vmem:[#allocation2 + $0x60] sm:$0xff] }
 0x330   :  { %1690 = vmatprep.subr.mxu0 %v7187_v40  ;;  %7189 = vst [vmem:[#allocation64_spill] sm:$0xff] %v5525_v34 }
 0x331   :  { %1691 = vmatpush1.msra.mxu0 %v5269_v47  ;;  %v5522_v47 = vld [vmem:[#allocation2 + $0x68] sm:$0xff] }
 0x332   :  { %1692 = vmatprep.subr.mxu0 %v7188_v4 }
 0x333   :  { %1693 = vmatpush1.msra.mxu0 %v5275_v9 }
 0x334   :  { %1694 = vmatprep.subr.mxu0 %v5278_v2 }
 0x335   :  { %1695 = vmatpush1.msra.mxu0 %v5281_v59 }
 0x336   :  { %v1298_v61 = vpop.f32.mrf.mxu1  ;;  %1696 = vmatprep.subr.mxu0 %v5284_v55 }
 0x337   :  { %v1299_v43 = vadd.f32 %v3539_v48, %v1298_v61  ;;  %1697 = vmatpush1.msra.mxu0 %v5519_v54 }
 0x338   :  { %v3903_v40 = vpop.f32.mrf.mxu1  ;;  %1698 = vmatprep.subr.mxu0 %v5522_v47 }
 0x339   :  { %v1307_v4 = vrot.slane %v1299_v43, 6  ;;  %v1310_v9 = vrot.slane %v1299_v43, 7  ;;  %1699 = vmatpush1.msra.mxu0 %v5525_v34  ;;  %v5536_v40 = vld [vmem:[#allocation2 + $0x38] sm:$0xff]  ;;  %v5539_v43 = vld [vmem:[#allocation2 + $0x30] sm:$0xff]  ;;  %v5542_v34 = vld [vmem:[#allocation2 + $0x20] sm:$0xff] }
 0x33a   :  { %1700 = vmatprep.subr.mxu0 %v5528_v49  ;;  %7191 = vst [vmem:[#allocation66_spill] sm:$0xff] %v5536_v40  ;;  %7192 = vst [vmem:[#allocation11_spill] sm:$0xff] %v5539_v43 }
 0x33b   :  { %v1319_v48 = vadd.f32 %v1307_v4, %v5057_v57  ;;  %v1322_v61 = vadd.f32 %v1310_v9, %v5061_v21  ;;  %1701 = vmatpush1.msra.mxu0 %v5533_v5  ;;  %7193 = vst [vmem:[#allocation68_spill] sm:$0xff] %v5542_v34  ;;  %v5545_v4 = vld [vmem:[#allocation2 + $0x18] sm:$0xff]  ;;  %v5548_v9 = vld [vmem:[#allocation2 + $0x8] sm:$0xff]  ;;  %v5551_v5 = vld [vmem:[#allocation2] sm:$0xff] }
 0x33c   :  { %1702 = vmatprep.subr.mxu0 %v5536_v40  ;;  %7194 = vst [vmem:[#allocation12_spill] sm:$0xff] %v5545_v4  ;;  %7195 = vst [vmem:[#allocation70_spill] sm:$0xff] %v5548_v9  ;;  %v5584_v21 = vld [vmem:[#allocation2 + $0x278] sm:$0xff]  ;;  %v5593_v57 = vld [vmem:[#allocation2 + $0x260] sm:$0xff] }
 0x33d   :  { %4088 = vtanh.f32 %v1319_v48  ;;  %1703 = vmatpush1.msra.mxu0 %v5539_v43  ;;  %7196 = vst [vmem:[#allocation13_spill] sm:$0xff] %v5551_v5  ;;  %v5554_v48 = vld [vmem:[#allocation2 + $0x2f0] sm:$0xff] }
 0x33e   :  { %4090 = vtanh.f32 %v1322_v61  ;;  %1704 = vmatprep.subr.mxu0 %v5542_v34  ;;  %7197 = vst [vmem:[#allocation71_spill] sm:$0xff] %v5554_v48  ;;  %v5557_v61 = vld [vmem:[#allocation2 + $0x2e8] sm:$0xff]  ;;  %v5560_v34 = vld [vmem:[#allocation2 + $0x2d8] sm:$0xff]  ;;  %v5578_v43 = vld [vmem:[#allocation2 + $0x290] sm:$0xff] }
 0x33f   :  { %1705 = vmatpush1.msra.mxu0 %v5545_v4  ;;  %7198 = vst [vmem:[#allocation14_spill] sm:$0xff] %v5557_v61  ;;  %7199 = vst [vmem:[#allocation73_spill] sm:$0xff] %v5560_v34  ;;  %v5563_v4 = vld [vmem:[#allocation2 + $0x2d0] sm:$0xff] }
 0x340   :  { %1706 = vmatprep.subr.mxu0 %v5548_v9  ;;  %7200 = vst [vmem:[#allocation15_spill] sm:$0xff] %v5563_v4  ;;  %v5566_v9 = vld [vmem:[#allocation2 + $0x2c0] sm:$0xff] }
 0x341   :  { %1707 = vmatpush1.msra.mxu0 %v5551_v5  ;;  %7201 = vst [vmem:[#allocation74_spill] sm:$0xff] %v5566_v9  ;;  %v5569_v5 = vld [vmem:[#allocation2 + $0x2b8] sm:$0xff] }
 0x342   :  { %1708 = vmatprep.subr.mxu0 %v5554_v48  ;;  %7202 = vst [vmem:[#allocation16_spill] sm:$0xff] %v5569_v5  ;;  %v5572_v48 = vld [vmem:[#allocation2 + $0x2a8] sm:$0xff] }
 0x343   :  { %1709 = vmatpush2.msra.mxu0 %v5557_v61  ;;  %7203 = vst [vmem:[#allocation76_spill] sm:$0xff] %v5572_v48  ;;  %v5575_v61 = vld [vmem:[#allocation2 + $0x2a0] sm:$0xff] }
 0x344   :  { %1710 = vmatprep.subr.mxu0 %v5560_v34  ;;  %7204 = vst [vmem:[#allocation17_spill] sm:$0xff] %v5575_v61 }
 0x345   :  { %1711 = vmatpush2.msra.mxu0 %v5563_v4 }
 0x346   :  { %1712 = vmatprep.subr.mxu0 %v5566_v9  ;;  %v5581_v9 = vld [vmem:[#allocation2 + $0x288] sm:$0xff] }
 0x347   :  { %1713 = vmatpush2.msra.mxu0 %v5569_v5 }
 0x348   :  { %1714 = vmatprep.subr.mxu0 %v5572_v48  ;;  %v5587_v48 = vld [vmem:[#allocation2 + $0x270] sm:$0xff] }
 0x349   :  { %1715 = vmatpush2.msra.mxu0 %v5575_v61 }
 0x34a   :  { %v4089_v34 = vpop.eup %4088  ;;  %1716 = vmatprep.subr.mxu0 %v5578_v43 }
 0x34b   :  { %v4091_v4 = vpop.eup %4090  ;;  %v1341_v40 = vrot.slane %v4089_v34, 2  ;;  %1717 = vmatpush2.msra.mxu0 %v5581_v9  ;;  %v5598_v34 = vld [vmem:[#allocation2 + $0x258] sm:$0xff] }
 0x34c   :  { %v1342_v5 = vrot.slane %v4091_v4, 1  ;;  %1718 = vmatprep.subr.mxu0 %v5584_v21  ;;  %v5604_v4 = vld [vmem:[#allocation2 + $0x248] sm:$0xff] }
 0x34d   :  { %1719 = vmatpush2.msra.mxu0 %v5587_v48  ;;  %7205 = vst [vmem:[#allocation77_spill] sm:$0xff] %v5604_v4 }
 0x34e   :  { %v5591_v61 = vsel %vm688_vm2, %v1342_v5, %v1341_v40  ;;  %1720 = vmatprep.subr.mxu0 %v5593_v57  ;;  %v5608_v5 = vld [vmem:[#allocation2 + $0x240] sm:$0xff]  ;;  %v5612_v40 = vld [vmem:[#allocation2 + $0x230] sm:$0xff] }
 0x34f   :  { %3390 = vmatmul.mubr.msk.f32.vlgmr.msra.gmra.mxu1 %vm93_vm0, %v5591_v61  ;;  %1721 = vmatpush2.msra.mxu0 %v5598_v34  ;;  %7206 = vst [vmem:[#allocation18_spill] sm:$0xff] %v5608_v5  ;;  %7207 = vst [vmem:[#allocation79_spill] sm:$0xff] %v5612_v40 }
 0x350   :  { %3550 = vmatpush3.msra.mxu1 %v5315_v12  ;;  %1554 = vmatprep.mubr.f32.mxu1 %v5492_v1  ;;  %v5616_v1 = vld [vmem:[#allocation2 + $0x228] sm:$0xff] }
 0x351   :  { %3551 = vmatprep.subr.mxu1 %v5319_v14  ;;  %1722 = vmatprep.subr.mxu0 %v5604_v4  ;;  %7208 = vst [vmem:[#allocation19_spill] sm:$0xff] %v5616_v1  ;;  %v5620_v4 = vld [vmem:[#allocation2 + $0x218] sm:$0xff] }
 0x352   :  { %3552 = vmatpush3.msra.mxu1 %v5323_v16  ;;  %1723 = vmatpush2.msra.mxu0 %v5608_v5  ;;  %7209 = vst [vmem:[#allocation80_spill] sm:$0xff] %v5620_v4  ;;  %v5624_v5 = vld [vmem:[#allocation2 + $0x210] sm:$0xff] }
 0x353   :  { %3553 = vmatprep.subr.mxu1 %v5327_v17  ;;  %1724 = vmatprep.subr.mxu0 %v5612_v40  ;;  %7210 = vst [vmem:[#allocation20_spill] sm:$0xff] %v5624_v5  ;;  %v5628_v40 = vld [vmem:[#allocation2 + $0x200] sm:$0xff] }
 0x354   :  { %3554 = vmatpush3.msra.mxu1 %v5331_v18  ;;  %1725 = vmatpush2.msra.mxu0 %v5616_v1  ;;  %7211 = vst [vmem:[#allocation82_spill] sm:$0xff] %v5628_v40  ;;  %v5632_v1 = vld [vmem:[#allocation2 + $0x1f8] sm:$0xff] }
 0x355   :  { %3555 = vmatprep.subr.mxu1 %v5335_v19  ;;  %1726 = vmatprep.subr.mxu0 %v5620_v4  ;;  %7212 = vst [vmem:[#allocation21_spill] sm:$0xff] %v5632_v1  ;;  %v5636_v4 = vld [vmem:[#allocation2 + $0x1e8] sm:$0xff] }
 0x356   :  { %3556 = vmatpush3.msra.mxu1 %v5339_v20  ;;  %1727 = vmatpush2.msra.mxu0 %v5624_v5  ;;  %7213 = vst [vmem:[#allocation83_spill] sm:$0xff] %v5636_v4  ;;  %v5640_v5 = vld [vmem:[#allocation2 + $0x1e0] sm:$0xff] }
 0x357   :  { %3557 = vmatprep.subr.mxu1 %v5343_v22  ;;  %1728 = vmatprep.subr.mxu0 %v5628_v40  ;;  %7214 = vst [vmem:[#allocation22_spill] sm:$0xff] %v5640_v5  ;;  %v5644_v40 = vld [vmem:[#allocation2 + $0x1d0] sm:$0xff] }
 0x358   :  { %3558 = vmatpush3.msra.mxu1 %v5347_v24  ;;  %1729 = vmatpush2.msra.mxu0 %v5632_v1  ;;  %7215 = vst [vmem:[#allocation85_spill] sm:$0xff] %v5644_v40  ;;  %v5648_v1 = vld [vmem:[#allocation2 + $0x1c8] sm:$0xff] }
 0x359   :  { %3559 = vmatprep.subr.mxu1 %v5351_v53  ;;  %1730 = vmatprep.subr.mxu0 %v5636_v4  ;;  %7216 = vst [vmem:[#allocation23_spill] sm:$0xff] %v5648_v1  ;;  %v5652_v4 = vld [vmem:[#allocation2 + $0x1b8] sm:$0xff] }
 0x35a   :  { %3560 = vmatpush3.msra.mxu1 %v5355_v29  ;;  %1731 = vmatpush2.msra.mxu0 %v5640_v5  ;;  %7217 = vst [vmem:[#allocation86_spill] sm:$0xff] %v5652_v4  ;;  %v5656_v5 = vld [vmem:[#allocation2 + $0x1b0] sm:$0xff] }
 0x35b   :  { %3561 = vmatprep.subr.mxu1 %v5359_v3  ;;  %1732 = vmatprep.subr.mxu0 %v5644_v40  ;;  %7218 = vst [vmem:[#allocation88_spill] sm:$0xff] %v5656_v5  ;;  %v5660_v40 = vld [vmem:[#allocation2 + $0x1a0] sm:$0xff] }
 0x35c   :  { %3562 = vmatpush3.msra.mxu1 %v5363_v11  ;;  %1733 = vmatpush2.msra.mxu0 %v5648_v1  ;;  %v5664_v1 = vld [vmem:[#allocation2 + $0x198] sm:$0xff] }
 0x35d   :  { %3563 = vmatprep.subr.mxu1 %v5367_v13  ;;  %1734 = vmatprep.subr.mxu0 %v5652_v4  ;;  %7219 = vst [vmem:[#allocation24_spill] sm:$0xff] %v5664_v1  ;;  %v5668_v4 = vld [vmem:[#allocation2 + $0x188] sm:$0xff] }
 0x35e   :  { %3564 = vmatpush3.msra.mxu1 %v5371_v27  ;;  %1735 = vmatpush2.msra.mxu0 %v5656_v5  ;;  %v5672_v5 = vld [vmem:[#allocation2 + $0x180] sm:$0xff] }
 0x35f   :  { %3565 = vmatprep.subr.mxu1 %v5375_v26  ;;  %1736 = vmatprep.subr.mxu0 %v5660_v40  ;;  %7220 = vst [vmem:[#allocation89_spill] sm:$0xff] %v5672_v5 }
 0x360   :  { %3566 = vmatpush3.msra.mxu1 %v5379_v41  ;;  %1737 = vmatpush2.msra.mxu0 %v5664_v1  ;;  %v5679_v1 = vld [vmem:[#allocation2 + $0x70] sm:$0xff] }
 0x361   :  { %3567 = vmatprep.subr.mxu1 %v5383_v15  ;;  %1738 = vmatprep.subr.mxu0 %v5668_v4  ;;  %7221 = vst [vmem:[#allocation91_spill] sm:$0xff] %v5679_v1  ;;  %v5682_v15 = vld [vmem:[#allocation2 + $0x1d8] sm:$0xff] }
 0x362   :  { %3568 = vmatpush3.msra.mxu1 %v5387_v33  ;;  %1739 = vmatpush2.msra.mxu0 %v5672_v5  ;;  %7222 = vst [vmem:[#allocation53_spill] sm:$0xff] %v5682_v15  ;;  %v5685_v33 = vld [vmem:[#allocation2 + $0x58] sm:$0xff]  ;;  %v5688_v5 = vld [vmem:[#allocation2 + $0x1c0] sm:$0xff] }
 0x363   :  { %3569 = vmatprep.subr.mxu1 %v5391_v62  ;;  %2004 = vmatprep.subr.mxu0 %v7143_v46  ;;  %7223 = vst [vmem:[#allocation92_spill] sm:$0xff] %v5685_v33  ;;  %7224 = vst [vmem:[#allocation55_spill] sm:$0xff] %v5688_v5  ;;  %v5691_v46 = vld [vmem:[#allocation2 + $0x40] sm:$0xff] }
 0x364   :  { %3570 = vmatpush3.msra.mxu1 %v5395_v45  ;;  %7225 = vst [vmem:[#allocation57_spill] sm:$0xff] %v5691_v46 }
 0x365   :  { %3571 = vmatprep.subr.mxu1 %v5399_v32  ;;  %v5694_v32 = vld [vmem:[#allocation2 + $0x1a8] sm:$0xff] }
 0x366   :  { %3572 = vmatpush3.msra.mxu1 %v5679_v1  ;;  %7226 = vst [vmem:[#allocation59_spill] sm:$0xff] %v5694_v32  ;;  %v5697_v1 = vld [vmem:[#allocation2 + $0x28] sm:$0xff] }
 0x367   :  { %3573 = vmatprep.subr.mxu1 %v5682_v15  ;;  %7227 = vst [vmem:[#allocation61_spill] sm:$0xff] %v5697_v1  ;;  %v5700_v15 = vld [vmem:[#allocation2 + $0x190] sm:$0xff] }
 0x368   :  { %3574 = vmatpush3.msra.mxu1 %v5685_v33  ;;  %7228 = vst [vmem:[#allocation63_spill] sm:$0xff] %v5700_v15  ;;  %v5703_v33 = vld [vmem:[#allocation2 + $0x10] sm:$0xff] }
 0x369   :  { %3575 = vmatprep.subr.mxu1 %v5688_v5  ;;  %7229 = vst [vmem:[#allocation65_spill] sm:$0xff] %v5703_v33 }
 0x36a   :  { %3576 = vmatpush3.msra.mxu1 %v5691_v46  ;;  %v5708_v46 = vld [vmem:[#allocation2 + $0x3b8] sm:$0xff] }
 0x36b   :  { %3577 = vmatprep.subr.mxu1 %v5694_v32  ;;  %7230 = vst [vmem:[#allocation67_spill] sm:$0xff] %v5708_v46 }
 0x36c   :  { %3578 = vmatpush3.msra.mxu1 %v5697_v1  ;;  %v5714_v1 = vld [vmem:[#allocation2 + $0x3a0] sm:$0xff] }
 0x36d   :  { %3579 = vmatprep.subr.mxu1 %v5700_v15  ;;  %7231 = vst [vmem:[#allocation69_spill] sm:$0xff] %v5714_v1 }
 0x36e   :  { %3580 = vmatpush3.msra.mxu1 %v5703_v33  ;;  %v5718_v33 = vld [vmem:[#allocation2 + $0x388] sm:$0xff] }
 0x36f   :  { %1555 = vmatmul.mubr.f32.vlgmr.msra.gmra.mxu1 %v5496_v30  ;;  %3904 = vmatprep.subr.mxu1 %v7151_v52  ;;  %7232 = vst [vmem:[#allocation72_spill] sm:$0xff] %v5718_v33  ;;  %v5722_v30 = vld [vmem:[#allocation2 + $0x370] sm:$0xff] }
 0x370   :  { %3905 = vmatpush3.msra.mxu1 %v5708_v46  ;;  %3920 = vmatprep.mubr.msk.f32.mxu1 %vm4444_vm1, %v7151_v52  ;;  %7233 = vst [vmem:[#allocation75_spill] sm:$0xff] %v5722_v30  ;;  %v5726_v46 = vld [vmem:[#allocation2 + $0x358] sm:$0xff] }
 0x371   :  { %3906 = vmatprep.subr.mxu1 %v7151_v52  ;;  %7234 = vst [vmem:[#allocation78_spill] sm:$0xff] %v5726_v46 }
 0x372   :  { %3907 = vmatpush3.msra.mxu1 %v5714_v1  ;;  %v5730_v1 = vld [vmem:[#allocation2 + $0x340] sm:$0xff] }
 0x373   :  { %3908 = vmatprep.subr.mxu1 %v7151_v52  ;;  %7235 = vst [vmem:[#allocation81_spill] sm:$0xff] %v5730_v1 }
 0x374   :  { %3909 = vmatpush3.msra.mxu1 %v5718_v33  ;;  %v5734_v33 = vld [vmem:[#allocation2 + $0x328] sm:$0xff] }
 0x375   :  { %3910 = vmatprep.subr.mxu1 %v7151_v52  ;;  %7236 = vst [vmem:[#allocation84_spill] sm:$0xff] %v5734_v33 }
 0x376   :  { %3911 = vmatpush3.msra.mxu1 %v5722_v30  ;;  %v5738_v30 = vld [vmem:[#allocation2 + $0x310] sm:$0xff] }
 0x377   :  { %3912 = vmatprep.subr.mxu1 %v7151_v52  ;;  %7237 = vst [vmem:[#allocation87_spill] sm:$0xff] %v5738_v30 }
 0x378   :  { %3913 = vmatpush3.msra.mxu1 %v5726_v46 }
 0x379   :  { %3914 = vmatprep.subr.mxu1 %v7151_v52 }
 0x37a   :  { %3915 = vmatpush3.msra.mxu1 %v5730_v1 }
 0x37b   :  { %3916 = vmatprep.subr.mxu1 %v7151_v52 }
 0x37c   :  { %3917 = vmatpush3.msra.mxu1 %v5734_v33 }
 0x37d   :  { %3918 = vmatprep.subr.mxu1 %v7151_v52 }
 0x37e   :  { %3919 = vmatpush3.msra.mxu1 %v5738_v30 }
 0x37f   :  { %3921 = vmatmul.mubr.msk.f32.vlgmr.msra.gmra.mxu1 %vm93_vm0, %v5591_v61  ;;  %1763 = vmatprep.subr.mxu1 %v5435_v31  ;;  %v7238_v61 = vld [vmem:[#allocation54_spill] sm:$0xff] }
 0x380   :  { %1764 = vmatpush1.msra.mxu1 %v5438_v39  ;;  %1811 = vmatprep.mubr.f32.mxu1 %v7151_v52  ;;  %v7239_v39 = vld [vmem:[#allocation56_spill] sm:$0xff]  ;;  %v7240_v31 = vld [vmem:[#allocation58_spill] sm:$0xff] }
 0x381   :  { %1765 = vmatprep.subr.mxu1 %v5442_v28  ;;  %v7241_v28 = vld [vmem:[#allocation60_spill] sm:$0xff] }
 0x382   :  { %1766 = vmatpush1.msra.mxu1 %v5445_v25  ;;  %v7242_v25 = vld [vmem:[#allocation8_spill] sm:$0xff] }
 0x383   :  { %1767 = vmatprep.subr.mxu1 %v5448_v6  ;;  %v7243_v6 = vld [vmem:[#allocation62_spill] sm:$0xff] }
 0x384   :  { %1768 = vmatpush1.msra.mxu1 %v5451_v8  ;;  %v7244_v8 = vld [vmem:[#allocation9_spill] sm:$0xff] }
 0x385   :  { %1769 = vmatprep.subr.mxu1 %v5454_v10 }
 0x386   :  { %1770 = vmatpush1.msra.mxu1 %v5457_v0 }
 0x387   :  { %1771 = vmatprep.subr.mxu1 %v5460_v36 }
 0x388   :  { %1772 = vmatpush1.msra.mxu1 %v5463_v38 }
 0x389   :  { %1773 = vmatprep.subr.mxu1 %v7238_v61 }
 0x38a   :  { %1774 = vmatpush1.msra.mxu1 %v7239_v39 }
 0x38b   :  { %1775 = vmatprep.subr.mxu1 %v7240_v31 }
 0x38c   :  { %1776 = vmatpush1.msra.mxu1 %v7241_v28 }
 0x38d   :  { %1777 = vmatprep.subr.mxu1 %v7242_v25 }
 0x38e   :  { %1778 = vmatpush1.msra.mxu1 %v7243_v6 }
 0x38f   :  { %3593 = vmatprep.subr.mxu1 %v7244_v8 }
 0x3e2   :  { %v1414_v10 = vpop.f32.mrf.mxu0 }
 0x3e4   :  { %v1416_v36 = vpop.f32.mrf.mxu0 }
 0x40f   :  { %v1485_v0 = vpop.f32.mrf.mxu1 }
 0x410   :  { %v1486_v30 = vadd.f32 %v1485_v0, %v1414_v10 }
 0x411   :  { %v1487_v33 = vpop.f32.mrf.mxu1 }
 0x412   :  { %v1633_v38 = vrot.slane %v1486_v30, 5  ;;  %v1636_v1 = vrot.slane %v1486_v30, 6  ;;  %v1488_v61 = vadd.f32 %v1487_v33, %v1416_v36 }
 0x414   :  { %v1645_v39 = vadd.f32 %v1633_v38, %v5069_v37  ;;  %v1648_v31 = vadd.f32 %v1636_v1, %v5055_v51  ;;  %v1634_v46 = vrot.slane %v1488_v61, 5  ;;  %v1637_v28 = vrot.slane %v1488_v61, 6 }
 0x416   :  { %4092 = vtanh.f32 %v1645_v39  ;;  %v1646_v25 = vadd.f32 %v1634_v46, %v5065_v7  ;;  %v1649_v6 = vadd.f32 %v1637_v28, %v5059_v23  ;;  %v7247_v39 = vld [vmem:[#allocation33_spill] sm:$0xff]  ;;  %v7250_v28 = vld [vmem:[#allocation36_spill] sm:$0xff] }
 0x417   :  { %4094 = vtanh.f32 %v1648_v31  ;;  %v7246_v31 = vld [vmem:[#allocation32_spill] sm:$0xff] }
 0x418   :  { %4096 = vtanh.f32 %v1646_v25  ;;  %v7251_v25 = vld [vmem:[#allocation37_spill] sm:$0xff] }
 0x419   :  { %4098 = vtanh.f32 %v1649_v6 }
 0x423   :  { %v4093_v10 = vpop.eup %4092 }
 0x424   :  { %v4095_v0 = vpop.eup %4094  ;;  %v1663_v33 = vrot.slane %v4093_v10, 3 }
 0x425   :  { %v4097_v8 = vpop.eup %4096  ;;  %v1664_v36 = vrot.slane %v4095_v0, 2  ;;  %v7254_v0 = vld [vmem:[#allocation64_spill] sm:$0xff] }
 0x426   :  { %v4099_v52 = vpop.eup %4098  ;;  %v1666_v30 = vrot.slane %v4097_v8, 3  ;;  %v7252_v8 = vld [vmem:[#allocation38_spill] sm:$0xff] }
 0x427   :  { %v1667_v38 = vrot.slane %v4099_v52, 2  ;;  %v5770_v46 = vsel %vm688_vm2, %v1664_v36, %v1663_v33  ;;  %v7245_v52 = vld [vmem:[#allocation31_spill] sm:$0xff]  ;;  %v7256_v33 = vld [vmem:[#allocation96_spill] sm:$0xff] }
 0x429   :  { %v5766_v1 = vsel %vm688_vm2, %v1667_v38, %v1666_v30  ;;  %v7255_v30 = vld [vmem:[#allocation94_spill] sm:$0xff] }
 0x42a   :  { %1740 = vmatprep.mubr.f32.mxu0 %v5766_v1  ;;  %v7258_v38 = vld [vmem:[#allocation66_spill] sm:$0xff] }
 0x42b   :  { %1741 = vmatmul.mubr.f32.vlgmr.msra.gmra.mxu0 %v5770_v46 }
 0x42c   :  { %2005 = vmatpush1.msra.mxu0 %v5227_v63 }
 0x42d   :  { %2006 = vmatprep.subr.mxu0 %v5230_v58  ;;  %v7248_v58 = vld [vmem:[#allocation34_spill] sm:$0xff] }
 0x42e   :  { %2007 = vmatpush1.msra.mxu0 %v5233_v56  ;;  %v7249_v56 = vld [vmem:[#allocation35_spill] sm:$0xff] }
 0x42f   :  { %2008 = vmatprep.subr.mxu0 %v7177_v50  ;;  %v3581_v63 = vpop.f32.mrf.mxu1  ;;  %v7253_v50 = vld [vmem:[#allocation39_spill] sm:$0xff] }
 0x430   :  { %2009 = vmatpush1.msra.mxu0 %v7178_v35 }
 0x431   :  { %2010 = vmatprep.subr.mxu0 %v7179_v42  ;;  %v3582_v6 = vpop.f32.mrf.mxu1 }
 0x432   :  { %2011 = vmatpush1.msra.mxu0 %v7180_v60  ;;  %v3583_v35 = vadd.f32 %v3582_v6, %v3581_v63  ;;  %v7263_v63 = vld [vmem:[#allocation13_spill] sm:$0xff]  ;;  %v7268_v6 = vld [vmem:[#allocation74_spill] sm:$0xff] }
 0x433   :  { %2012 = vmatprep.subr.mxu0 %v7181_v44 }
 0x434   :  { %2013 = vmatpush1.msra.mxu0 %v7245_v52  ;;  %v7260_v52 = vld [vmem:[#allocation68_spill] sm:$0xff] }
 0x435   :  { %2014 = vmatprep.subr.mxu0 %v7246_v31  ;;  %v7261_v31 = vld [vmem:[#allocation12_spill] sm:$0xff] }
 0x436   :  { %2015 = vmatpush1.msra.mxu0 %v7247_v39  ;;  %v7262_v39 = vld [vmem:[#allocation70_spill] sm:$0xff] }
 0x437   :  { %2016 = vmatprep.subr.mxu0 %v7248_v58  ;;  %v7264_v58 = vld [vmem:[#allocation71_spill] sm:$0xff] }
 0x438   :  { %2017 = vmatpush1.msra.mxu0 %v7249_v56  ;;  %v7265_v56 = vld [vmem:[#allocation14_spill] sm:$0xff] }
 0x439   :  { %2018 = vmatprep.subr.mxu0 %v7250_v28  ;;  %v7266_v28 = vld [vmem:[#allocation73_spill] sm:$0xff] }
 0x43a   :  { %2019 = vmatpush1.msra.mxu0 %v7251_v25  ;;  %v7267_v25 = vld [vmem:[#allocation15_spill] sm:$0xff] }
 0x43b   :  { %2020 = vmatprep.subr.mxu0 %v7252_v8  ;;  %v7269_v8 = vld [vmem:[#allocation16_spill] sm:$0xff] }
 0x43c   :  { %2021 = vmatpush1.msra.mxu0 %v7253_v50  ;;  %v7270_v50 = vld [vmem:[#allocation76_spill] sm:$0xff] }
 0x43d   :  { %2022 = vmatprep.subr.mxu0 %v5278_v2 }
 0x43e   :  { %2023 = vmatpush1.msra.mxu0 %v5281_v59  ;;  %v7257_v59 = vld [vmem:[#allocation10_spill] sm:$0xff] }
 0x43f   :  { %v1626_v42 = vpop.f32.mrf.mxu1  ;;  %2024 = vmatprep.subr.mxu0 %v5284_v55  ;;  %v7259_v55 = vld [vmem:[#allocation11_spill] sm:$0xff] }
 0x440   :  { %v1627_v60 = vadd.f32 %v3583_v35, %v1626_v42  ;;  %2025 = vmatpush1.msra.mxu0 %v5519_v54  ;;  %v7271_v35 = vld [vmem:[#allocation17_spill] sm:$0xff] }
 0x441   :  { %v3922_v44 = vpop.f32.mrf.mxu1  ;;  %2026 = vmatprep.subr.mxu0 %v5522_v47 }
 0x442   :  { %v1635_v61 = vrot.slane %v1627_v60, 5  ;;  %v1638_v10 = vrot.slane %v1627_v60, 6  ;;  %2027 = vmatpush1.msra.mxu0 %v7254_v0 }
 0x443   :  { %2028 = vmatprep.subr.mxu0 %v5528_v49 }
 0x444   :  { %v1647_v2 = vadd.f32 %v1635_v61, %v7255_v30  ;;  %v1650_v36 = vadd.f32 %v1638_v10, %v7256_v33  ;;  %2029 = vmatpush1.msra.mxu0 %v7257_v59 }
 0x445   :  { %2030 = vmatprep.subr.mxu0 %v7258_v38 }
 0x446   :  { %4100 = vtanh.f32 %v1647_v2  ;;  %2031 = vmatpush1.msra.mxu0 %v7259_v55  ;;  %v7272_v2 = vld [vmem:[#allocation77_spill] sm:$0xff] }
 0x447   :  { %4102 = vtanh.f32 %v1650_v36  ;;  %2032 = vmatprep.subr.mxu0 %v7260_v52  ;;  %v7273_v36 = vld [vmem:[#allocation18_spill] sm:$0xff] }
 0x448   :  { %2033 = vmatpush1.msra.mxu0 %v7261_v31 }
 0x449   :  { %2034 = vmatprep.subr.mxu0 %v7262_v39 }
 0x44a   :  { %2035 = vmatpush1.msra.mxu0 %v7263_v63 }
 0x44b   :  { %2036 = vmatprep.subr.mxu0 %v7264_v58 }
 0x44c   :  { %2037 = vmatpush2.msra.mxu0 %v7265_v56 }
 0x44d   :  { %2038 = vmatprep.subr.mxu0 %v7266_v28 }
 0x44e   :  { %2039 = vmatpush2.msra.mxu0 %v7267_v25 }
 0x44f   :  { %2040 = vmatprep.subr.mxu0 %v7268_v6 }
 0x450   :  { %2041 = vmatpush2.msra.mxu0 %v7269_v8 }
 0x451   :  { %2042 = vmatprep.subr.mxu0 %v7270_v50 }
 0x452   :  { %2043 = vmatpush2.msra.mxu0 %v7271_v35 }
 0x453   :  { %v4101_v42 = vpop.eup %4100  ;;  %2044 = vmatprep.subr.mxu0 %v5578_v43 }
 0x454   :  { %v4103_v60 = vpop.eup %4102  ;;  %v1669_v44 = vrot.slane %v4101_v42, 3  ;;  %2045 = vmatpush2.msra.mxu0 %v5581_v9  ;;  %v7274_v42 = vld [vmem:[#allocation79_spill] sm:$0xff] }
 0x455   :  { %v1670_v61 = vrot.slane %v4103_v60, 2  ;;  %2046 = vmatprep.subr.mxu0 %v5584_v21  ;;  %v7275_v60 = vld [vmem:[#allocation19_spill] sm:$0xff] }
 0x456   :  { %2047 = vmatpush2.msra.mxu0 %v5587_v48 }
 0x457   :  { %v5819_v10 = vsel %vm688_vm2, %v1670_v61, %v1669_v44  ;;  %2048 = vmatprep.subr.mxu0 %v5593_v57  ;;  %v7294_v44 = vld [vmem:[#allocation92_spill] sm:$0xff]  ;;  %v7295_v61 = vld [vmem:[#allocation57_spill] sm:$0xff] }
 0x458   :  { %3392 = vmatmul.mubr.msk.f32.vlgmr.msra.gmra.mxu1 %vm93_vm0, %v5819_v10  ;;  %2049 = vmatpush2.msra.mxu0 %v5598_v34 }
 0x459   :  { %3594 = vmatpush3.msra.mxu1 %v5315_v12  ;;  %1882 = vmatprep.mubr.f32.mxu1 %v5766_v1  ;;  %v7276_v12 = vld [vmem:[#allocation80_spill] sm:$0xff]  ;;  %v7292_v1 = vld [vmem:[#allocation91_spill] sm:$0xff] }
 0x45a   :  { %3595 = vmatprep.subr.mxu1 %v5319_v14  ;;  %2050 = vmatprep.subr.mxu0 %v7272_v2  ;;  %v7277_v14 = vld [vmem:[#allocation20_spill] sm:$0xff] }
 0x45b   :  { %3596 = vmatpush3.msra.mxu1 %v5323_v16  ;;  %2051 = vmatpush2.msra.mxu0 %v7273_v36  ;;  %v7278_v16 = vld [vmem:[#allocation82_spill] sm:$0xff] }
 0x45c   :  { %3597 = vmatprep.subr.mxu1 %v5327_v17  ;;  %2052 = vmatprep.subr.mxu0 %v7274_v42  ;;  %v7279_v17 = vld [vmem:[#allocation21_spill] sm:$0xff] }
 0x45d   :  { %3598 = vmatpush3.msra.mxu1 %v5331_v18  ;;  %2053 = vmatpush2.msra.mxu0 %v7275_v60  ;;  %v7280_v18 = vld [vmem:[#allocation83_spill] sm:$0xff] }
 0x45e   :  { %3599 = vmatprep.subr.mxu1 %v5335_v19  ;;  %2054 = vmatprep.subr.mxu0 %v7276_v12  ;;  %v7281_v19 = vld [vmem:[#allocation22_spill] sm:$0xff] }
 0x45f   :  { %3600 = vmatpush3.msra.mxu1 %v5339_v20  ;;  %2055 = vmatpush2.msra.mxu0 %v7277_v14  ;;  %v7282_v20 = vld [vmem:[#allocation85_spill] sm:$0xff] }
 0x460   :  { %3601 = vmatprep.subr.mxu1 %v5343_v22  ;;  %2056 = vmatprep.subr.mxu0 %v7278_v16  ;;  %v7283_v22 = vld [vmem:[#allocation23_spill] sm:$0xff] }
 0x461   :  { %3602 = vmatpush3.msra.mxu1 %v5347_v24  ;;  %2057 = vmatpush2.msra.mxu0 %v7279_v17  ;;  %v7284_v24 = vld [vmem:[#allocation86_spill] sm:$0xff] }
 0x462   :  { %3603 = vmatprep.subr.mxu1 %v5351_v53  ;;  %2058 = vmatprep.subr.mxu0 %v7280_v18  ;;  %v7285_v53 = vld [vmem:[#allocation88_spill] sm:$0xff] }
 0x463   :  { %3604 = vmatpush3.msra.mxu1 %v5355_v29  ;;  %2059 = vmatpush2.msra.mxu0 %v7281_v19  ;;  %v7286_v29 = vld [vmem:[#allocation24_spill] sm:$0xff] }
 0x464   :  { %3605 = vmatprep.subr.mxu1 %v5359_v3  ;;  %2060 = vmatprep.subr.mxu0 %v7282_v20  ;;  %v7287_v3 = vld [vmem:[#allocation40_spill] sm:$0xff] }
 0x465   :  { %3606 = vmatpush3.msra.mxu1 %v5363_v11  ;;  %2061 = vmatpush2.msra.mxu0 %v7283_v22  ;;  %v7288_v11 = vld [vmem:[#allocation41_spill] sm:$0xff] }
 0x466   :  { %3607 = vmatprep.subr.mxu1 %v5367_v13  ;;  %2062 = vmatprep.subr.mxu0 %v7284_v24  ;;  %v7289_v13 = vld [vmem:[#allocation89_spill] sm:$0xff] }
 0x467   :  { %3608 = vmatpush3.msra.mxu1 %v5371_v27  ;;  %2063 = vmatpush2.msra.mxu0 %v7285_v53  ;;  %v7290_v27 = vld [vmem:[#allocation25_spill] sm:$0xff] }
 0x468   :  { %3609 = vmatprep.subr.mxu1 %v5375_v26  ;;  %2064 = vmatprep.subr.mxu0 %v5660_v40  ;;  %v7291_v26 = vld [vmem:[#allocation43_spill] sm:$0xff] }
 0x469   :  { %3610 = vmatpush3.msra.mxu1 %v5379_v41  ;;  %2065 = vmatpush2.msra.mxu0 %v7286_v29  ;;  %v7293_v41 = vld [vmem:[#allocation53_spill] sm:$0xff] }
 0x46a   :  { %3611 = vmatprep.subr.mxu1 %v7287_v3  ;;  %2066 = vmatprep.subr.mxu0 %v5668_v4  ;;  %v7296_v3 = vld [vmem:[#allocation61_spill] sm:$0xff] }
 0x46b   :  { %3612 = vmatpush3.msra.mxu1 %v7288_v11  ;;  %2067 = vmatpush2.msra.mxu0 %v7289_v13  ;;  %v7299_v11 = vld [vmem:[#allocation67_spill] sm:$0xff] }
 0x46c   :  { %3613 = vmatprep.subr.mxu1 %v5391_v62  ;;  %2332 = vmatprep.subr.mxu0 %v7290_v27  ;;  %v7297_v62 = vld [vmem:[#allocation65_spill] sm:$0xff] }
 0x46d   :  { %3614 = vmatpush3.msra.mxu1 %v5395_v45  ;;  %v7298_v45 = vmov 0.0   ;;  %v7300_v27 = vld [vmem:[#allocation69_spill] sm:$0xff] }
 0x46e   :  { %3615 = vmatprep.subr.mxu1 %v7291_v26  ;;  %v7301_v26 = vld [vmem:[#allocation72_spill] sm:$0xff] }
 0x46f   :  { %3616 = vmatpush3.msra.mxu1 %v7292_v1 }
 0x470   :  { %3617 = vmatprep.subr.mxu1 %v7293_v41 }
 0x471   :  { %3618 = vmatpush3.msra.mxu1 %v7294_v44 }
 0x472   :  { %3619 = vmatprep.subr.mxu1 %v5688_v5 }
 0x473   :  { %3620 = vmatpush3.msra.mxu1 %v7295_v61  ;;  %v7315_v61 = vld [vmem:[#allocation50_spill] sm:$0xff] }
 0x474   :  { %3621 = vmatprep.subr.mxu1 %v5694_v32  ;;  %v7313_v32 = vld [vmem:[#allocation46_spill] sm:$0xff] }
 0x475   :  { %3622 = vmatpush3.msra.mxu1 %v7296_v3  ;;  %v7311_v3 = vld [vmem:[#allocation42_spill] sm:$0xff] }
 0x476   :  { %3623 = vmatprep.subr.mxu1 %v5700_v15  ;;  %v7305_v15 = vld [vmem:[#allocation84_spill] sm:$0xff] }
 0x477   :  { %3624 = vmatpush3.msra.mxu1 %v7297_v62  ;;  %v7302_v62 = vld [vmem:[#allocation75_spill] sm:$0xff] }
 0x478   :  { %1883 = vmatmul.mubr.f32.vlgmr.msra.gmra.mxu1 %v5770_v46  ;;  %3923 = vmatprep.subr.mxu1 %v7298_v45  ;;  %v7303_v46 = vld [vmem:[#allocation78_spill] sm:$0xff] }
 0x479   :  { %3924 = vmatpush3.msra.mxu1 %v7299_v11  ;;  %3939 = vmatprep.mubr.msk.f32.mxu1 %vm4444_vm1, %v7298_v45  ;;  %v7304_v11 = vld [vmem:[#allocation81_spill] sm:$0xff] }
 0x47a   :  { %3925 = vmatprep.subr.mxu1 %v7298_v45 }
 0x47b   :  { %3926 = vmatpush3.msra.mxu1 %v7300_v27  ;;  %v7306_v27 = vld [vmem:[#allocation87_spill] sm:$0xff] }
 0x47c   :  { %3927 = vmatprep.subr.mxu1 %v7298_v45 }
 0x47d   :  { %3928 = vmatpush3.msra.mxu1 %v7301_v26  ;;  %v7308_v26 = vld [vmem:[#allocation47_spill] sm:$0xff] }
 0x47e   :  { %3929 = vmatprep.subr.mxu1 %v7298_v45 }
 0x47f   :  { %3930 = vmatpush3.msra.mxu1 %v7302_v62  ;;  %v7307_v62 = vld [vmem:[#allocation45_spill] sm:$0xff] }
 0x480   :  { %3931 = vmatprep.subr.mxu1 %v7298_v45 }
 0x481   :  { %3932 = vmatpush3.msra.mxu1 %v7303_v46  ;;  %v7309_v46 = vld [vmem:[#allocation49_spill] sm:$0xff] }
 0x482   :  { %3933 = vmatprep.subr.mxu1 %v7298_v45 }
 0x483   :  { %3934 = vmatpush3.msra.mxu1 %v7304_v11  ;;  %v7310_v11 = vld [vmem:[#allocation51_spill] sm:$0xff] }
 0x484   :  { %3935 = vmatprep.subr.mxu1 %v7298_v45 }
 0x485   :  { %3936 = vmatpush3.msra.mxu1 %v7305_v15  ;;  %v7312_v15 = vld [vmem:[#allocation44_spill] sm:$0xff] }
 0x486   :  { %3937 = vmatprep.subr.mxu1 %v7298_v45 }
 0x487   :  { %3938 = vmatpush3.msra.mxu1 %v7306_v27  ;;  %v7314_v27 = vld [vmem:[#allocation48_spill] sm:$0xff] }
 0x488   :  { %3940 = vmatmul.mubr.msk.f32.vlgmr.msra.gmra.mxu1 %vm93_vm0, %v5819_v10  ;;  %2091 = vmatprep.subr.mxu1 %v7307_v62  ;;  %v7316_v10 = vld [vmem:[#allocation52_spill] sm:$0xff]  ;;  %v7317_v62 = vld [vmem:[#allocation54_spill] sm:$0xff] }
 0x489   :  { %2092 = vmatpush1.msra.mxu1 %v7308_v26  ;;  %2139 = vmatprep.mubr.f32.mxu1 %v7298_v45  ;;  %v7318_v26 = vld [vmem:[#allocation56_spill] sm:$0xff]  ;;  %v7319_v45 = vld [vmem:[#allocation58_spill] sm:$0xff] }
 0x48a   :  { %2093 = vmatprep.subr.mxu1 %v7309_v46  ;;  %v7320_v46 = vld [vmem:[#allocation60_spill] sm:$0xff] }
 0x48b   :  { %2094 = vmatpush1.msra.mxu1 %v7310_v11  ;;  %v7321_v11 = vld [vmem:[#allocation8_spill] sm:$0xff] }
 0x48c   :  { %2095 = vmatprep.subr.mxu1 %v7311_v3  ;;  %v7322_v3 = vld [vmem:[#allocation62_spill] sm:$0xff] }
 0x48d   :  { %2096 = vmatpush1.msra.mxu1 %v7312_v15  ;;  %v7323_v15 = vld [vmem:[#allocation9_spill] sm:$0xff] }
 0x48e   :  { %2097 = vmatprep.subr.mxu1 %v7313_v32 }
 0x48f   :  { %2098 = vmatpush1.msra.mxu1 %v7314_v27 }
 0x490   :  { %2099 = vmatprep.subr.mxu1 %v7315_v61 }
 0x491   :  { %2100 = vmatpush1.msra.mxu1 %v7316_v10 }
 0x492   :  { %2101 = vmatprep.subr.mxu1 %v7317_v62 }
 0x493   :  { %2102 = vmatpush1.msra.mxu1 %v7318_v26 }
 0x494   :  { %2103 = vmatprep.subr.mxu1 %v7319_v45 }
 0x495   :  { %2104 = vmatpush1.msra.mxu1 %v7320_v46 }
 0x496   :  { %2105 = vmatprep.subr.mxu1 %v7321_v11 }
 0x497   :  { %2106 = vmatpush1.msra.mxu1 %v7322_v3 }
 0x498   :  { %3637 = vmatprep.subr.mxu1 %v7323_v15 }
 0x4eb   :  { %v1742_v32 = vpop.f32.mrf.mxu0 }
 0x4ed   :  { %v1744_v61 = vpop.f32.mrf.mxu0 }
 0x518   :  { %v1813_v27 = vpop.f32.mrf.mxu1 }
 0x519   :  { %v1814_v5 = vadd.f32 %v1813_v27, %v1742_v32 }
 0x51a   :  { %v1815_v44 = vpop.f32.mrf.mxu1 }
 0x51b   :  { %v1961_v10 = vrot.slane %v1814_v5, 4  ;;  %v1964_v41 = vrot.slane %v1814_v5, 5  ;;  %v1816_v62 = vadd.f32 %v1815_v44, %v1744_v61 }
 0x51d   :  { %v1973_v26 = vadd.f32 %v1961_v10, %v5069_v37  ;;  %v1976_v45 = vadd.f32 %v1964_v41, %v5055_v51  ;;  %v1962_v1 = vrot.slane %v1816_v62, 4  ;;  %v1965_v46 = vrot.slane %v1816_v62, 5  ;;  %v5927_v62 = vld [vmem:[#allocation2 + $0x168] sm:$0xff] }
 0x51f   :  { %4104 = vtanh.f32 %v1973_v26  ;;  %v1974_v11 = vadd.f32 %v1962_v1, %v5065_v7  ;;  %v1977_v3 = vadd.f32 %v1965_v46, %v5059_v23  ;;  %v5930_v26 = vld [vmem:[#allocation2 + $0x158] sm:$0xff] }
 0x520   :  { %4106 = vtanh.f32 %v1976_v45  ;;  %v5933_v45 = vld [vmem:[#allocation2 + $0x150] sm:$0xff]  ;;  %v5939_v46 = vld [vmem:[#allocation2 + $0x138] sm:$0xff] }
 0x521   :  { %4108 = vtanh.f32 %v1974_v11  ;;  %7325 = vst [vmem:[#allocation93_spill] sm:$0xff] %v5939_v46  ;;  %v5942_v11 = vld [vmem:[#allocation2 + $0x128] sm:$0xff] }
 0x522   :  { %4110 = vtanh.f32 %v1977_v3  ;;  %7326 = vst [vmem:[#allocation26_spill] sm:$0xff] %v5942_v11  ;;  %v5945_v3 = vld [vmem:[#allocation2 + $0x120] sm:$0xff] }
 0x523   :  { %7327 = vst [vmem:[#allocation27_spill] sm:$0xff] %v5945_v3 }
 0x52c   :  { %v4105_v15 = vpop.eup %4104 }
 0x52d   :  { %v4107_v32 = vpop.eup %4106  ;;  %v1991_v44 = vrot.slane %v4105_v15, 4  ;;  %v5948_v15 = vld [vmem:[#allocation2 + $0x110] sm:$0xff] }
 0x52e   :  { %v4109_v27 = vpop.eup %4108  ;;  %v1992_v61 = vrot.slane %v4107_v32, 3  ;;  %7328 = vst [vmem:[#allocation28_spill] sm:$0xff] %v5948_v15  ;;  %v5951_v32 = vld [vmem:[#allocation2 + $0x108] sm:$0xff] }
 0x52f   :  { %v4111_v13 = vpop.eup %4110  ;;  %v1994_v5 = vrot.slane %v4109_v27, 4  ;;  %7329 = vst [vmem:[#allocation29_spill] sm:$0xff] %v5951_v32  ;;  %v5954_v27 = vld [vmem:[#allocation2 + $0xf8] sm:$0xff] }
 0x530   :  { %v1995_v10 = vrot.slane %v4111_v13, 3  ;;  %v5924_v1 = vsel %vm688_vm2, %v1992_v61, %v1991_v44  ;;  %v5936_v13 = vld [vmem:[#allocation2 + $0x140] sm:$0xff]  ;;  %7330 = vst [vmem:[#allocation30_spill] sm:$0xff] %v5954_v27 }
 0x531   :  { %7324 = vst [vmem:[#allocation90_spill] sm:$0xff] %v5936_v13  ;;  %v5960_v61 = vld [vmem:[#allocation2 + $0xe0] sm:$0xff] }
 0x532   :  { %v5920_v41 = vsel %vm688_vm2, %v1995_v10, %v1994_v5  ;;  %v5957_v5 = vld [vmem:[#allocation2 + $0xf0] sm:$0xff]  ;;  %7332 = vst [vmem:[#allocation32_spill] sm:$0xff] %v5960_v61  ;;  %v5963_v10 = vld [vmem:[#allocation2 + $0xd8] sm:$0xff] }
 0x533   :  { %2068 = vmatprep.mubr.f32.mxu0 %v5920_v41  ;;  %7331 = vst [vmem:[#allocation31_spill] sm:$0xff] %v5957_v5  ;;  %7333 = vst [vmem:[#allocation33_spill] sm:$0xff] %v5963_v10 }
 0x534   :  { %2069 = vmatmul.mubr.f32.vlgmr.msra.gmra.mxu0 %v5924_v1 }
 0x535   :  { %2333 = vmatpush1.msra.mxu0 %v5927_v62 }
 0x536   :  { %2334 = vmatprep.subr.mxu0 %v5930_v26 }
 0x537   :  { %2335 = vmatpush1.msra.mxu0 %v5933_v45 }
 0x538   :  { %2336 = vmatprep.subr.mxu0 %v5936_v13  ;;  %v3625_v44 = vpop.f32.mrf.mxu1 }
 0x539   :  { %2337 = vmatpush1.msra.mxu0 %v5939_v46 }
 0x53a   :  { %2338 = vmatprep.subr.mxu0 %v5942_v11  ;;  %v5981_v11 = vld [vmem:[#allocation2 + $0x90] sm:$0xff] }
 0x53b   :  { %2339 = vmatpush1.msra.mxu0 %v5945_v3  ;;  %v5972_v3 = vld [vmem:[#allocation2 + $0xb0] sm:$0xff] }
 0x53c   :  { %2340 = vmatprep.subr.mxu0 %v5948_v15  ;;  %v5966_v15 = vld [vmem:[#allocation2 + $0xc8] sm:$0xff]  ;;  %7336 = vst [vmem:[#allocation36_spill] sm:$0xff] %v5972_v3 }
 0x53d   :  { %2341 = vmatpush1.msra.mxu0 %v5951_v32  ;;  %7334 = vst [vmem:[#allocation34_spill] sm:$0xff] %v5966_v15  ;;  %v5969_v32 = vld [vmem:[#allocation2 + $0xc0] sm:$0xff] }
 0x53e   :  { %2342 = vmatprep.subr.mxu0 %v5954_v27  ;;  %7335 = vst [vmem:[#allocation35_spill] sm:$0xff] %v5969_v32  ;;  %v3626_v27 = vpop.f32.mrf.mxu1 }
 0x53f   :  { %2343 = vmatpush1.msra.mxu0 %v5957_v5  ;;  %v5975_v5 = vld [vmem:[#allocation2 + $0xa8] sm:$0xff] }
 0x540   :  { %2344 = vmatprep.subr.mxu0 %v5960_v61  ;;  %7337 = vst [vmem:[#allocation37_spill] sm:$0xff] %v5975_v5  ;;  %v5978_v61 = vld [vmem:[#allocation2 + $0x98] sm:$0xff] }
 0x541   :  { %2345 = vmatpush1.msra.mxu0 %v5963_v10  ;;  %v3627_v10 = vadd.f32 %v3626_v27, %v3625_v44 }
 0x542   :  { %2346 = vmatprep.subr.mxu0 %v5966_v15 }
 0x543   :  { %2347 = vmatpush1.msra.mxu0 %v5969_v32  ;;  %v5984_v32 = vld [vmem:[#allocation2 + $0x80] sm:$0xff] }
 0x544   :  { %2348 = vmatprep.subr.mxu0 %v5972_v3 }
 0x545   :  { %2349 = vmatpush1.msra.mxu0 %v5975_v5 }
 0x546   :  { %2350 = vmatprep.subr.mxu0 %v5978_v61 }
 0x547   :  { %2351 = vmatpush1.msra.mxu0 %v5981_v11 }
 0x548   :  { %v1954_v15 = vpop.f32.mrf.mxu1  ;;  %2352 = vmatprep.subr.mxu0 %v5984_v32 }
 0x549   :  { %v1955_v46 = vadd.f32 %v3627_v10, %v1954_v15  ;;  %2353 = vmatpush1.msra.mxu0 %v5519_v54  ;;  %v6134_v15 = vld [vmem:[#allocation2 + $0x3b0] sm:$0xff]  ;;  %v6141_v10 = vld [vmem:[#allocation2 + $0x398] sm:$0xff] }
 0x54a   :  { %v3941_v3 = vpop.f32.mrf.mxu1  ;;  %2354 = vmatprep.subr.mxu0 %v5522_v47 }
 0x54b   :  { %v1963_v5 = vrot.slane %v1955_v46, 4  ;;  %v1966_v13 = vrot.slane %v1955_v46, 5  ;;  %2355 = vmatpush1.msra.mxu0 %v7254_v0  ;;  %v7355_v46 = vld [vmem:[#allocation84_spill] sm:$0xff]  ;;  %v7356_v3 = vld [vmem:[#allocation87_spill] sm:$0xff] }
 0x54c   :  { %2356 = vmatprep.subr.mxu0 %v5528_v49 }
 0x54d   :  { %v1975_v27 = vadd.f32 %v1963_v5, %v7255_v30  ;;  %v1978_v44 = vadd.f32 %v1966_v13, %v7256_v33  ;;  %2357 = vmatpush1.msra.mxu0 %v7257_v59  ;;  %v7354_v13 = vld [vmem:[#allocation81_spill] sm:$0xff] }
 0x54e   :  { %2358 = vmatprep.subr.mxu0 %v7258_v38  ;;  %v6043_v38 = vld [vmem:[#allocation2 + $0x130] sm:$0xff]  ;;  %v6137_v5 = vld [vmem:[#allocation2 + $0x3a8] sm:$0xff] }
 0x54f   :  { %4112 = vtanh.f32 %v1975_v27  ;;  %2359 = vmatpush1.msra.mxu0 %v7259_v55  ;;  %v6047_v55 = vld [vmem:[#allocation2 + $0x298] sm:$0xff]  ;;  %v6144_v27 = vld [vmem:[#allocation2 + $0x390] sm:$0xff] }
 0x550   :  { %4114 = vtanh.f32 %v1978_v44  ;;  %2360 = vmatprep.subr.mxu0 %v7260_v52  ;;  %v6051_v52 = vld [vmem:[#allocation2 + $0x118] sm:$0xff]  ;;  %v6147_v44 = vld [vmem:[#allocation2 + $0x380] sm:$0xff] }
 0x551   :  { %2361 = vmatpush1.msra.mxu0 %v7261_v31  ;;  %v6055_v31 = vld [vmem:[#allocation2 + $0x280] sm:$0xff] }
 0x552   :  { %2362 = vmatprep.subr.mxu0 %v7262_v39  ;;  %v6059_v39 = vld [vmem:[#allocation2 + $0x100] sm:$0xff] }
 0x553   :  { %2363 = vmatpush1.msra.mxu0 %v7263_v63  ;;  %v6063_v63 = vld [vmem:[#allocation2 + $0x268] sm:$0xff] }
 0x554   :  { %2364 = vmatprep.subr.mxu0 %v7264_v58  ;;  %v6067_v58 = vld [vmem:[#allocation2 + $0xe8] sm:$0xff] }
 0x555   :  { %2365 = vmatpush2.msra.mxu0 %v7265_v56  ;;  %v6071_v56 = vld [vmem:[#allocation2 + $0x250] sm:$0xff] }
 0x556   :  { %2366 = vmatprep.subr.mxu0 %v7266_v28  ;;  %v6075_v28 = vld [vmem:[#allocation2 + $0xd0] sm:$0xff] }
 0x557   :  { %2367 = vmatpush2.msra.mxu0 %v7267_v25  ;;  %v6079_v25 = vld [vmem:[#allocation2 + $0x238] sm:$0xff] }
 0x558   :  { %2368 = vmatprep.subr.mxu0 %v7268_v6  ;;  %v6083_v6 = vld [vmem:[#allocation2 + $0xb8] sm:$0xff] }
 0x559   :  { %2369 = vmatpush2.msra.mxu0 %v7269_v8  ;;  %v6087_v8 = vld [vmem:[#allocation2 + $0x220] sm:$0xff] }
 0x55a   :  { %2370 = vmatprep.subr.mxu0 %v7270_v50  ;;  %v6091_v50 = vld [vmem:[#allocation2 + $0xa0] sm:$0xff] }
 0x55b   :  { %2371 = vmatpush2.msra.mxu0 %v7271_v35  ;;  %v7338_v35 = vld [vmem:[#allocation89_spill] sm:$0xff] }
 0x55c   :  { %v4113_v47 = vpop.eup %4112  ;;  %2372 = vmatprep.subr.mxu0 %v5578_v43  ;;  %v6019_v43 = vld [vmem:[#allocation2 + $0x178] sm:$0xff] }
 0x55d   :  { %v4115_v54 = vpop.eup %4114  ;;  %v1997_v49 = vrot.slane %v4113_v47, 4  ;;  %2373 = vmatpush2.msra.mxu0 %v5581_v9  ;;  %v6023_v9 = vld [vmem:[#allocation2 + $0x2e0] sm:$0xff]  ;;  %v6150_v47 = vld [vmem:[#allocation2 + $0x378] sm:$0xff] }
 0x55e   :  { %v1998_v0 = vrot.slane %v4115_v54, 3  ;;  %2374 = vmatprep.subr.mxu0 %v5584_v21  ;;  %v6027_v21 = vld [vmem:[#allocation2 + $0x160] sm:$0xff]  ;;  %v6153_v54 = vld [vmem:[#allocation2 + $0x368] sm:$0xff] }
 0x55f   :  { %2375 = vmatpush2.msra.mxu0 %v5587_v48  ;;  %v6035_v48 = vld [vmem:[#allocation2 + $0x148] sm:$0xff] }
 0x560   :  { %v6013_v59 = vsel %vm688_vm2, %v1998_v0, %v1997_v49  ;;  %2376 = vmatprep.subr.mxu0 %v5593_v57  ;;  %v6031_v57 = vld [vmem:[#allocation2 + $0x2c8] sm:$0xff]  ;;  %v6156_v49 = vld [vmem:[#allocation2 + $0x360] sm:$0xff]  ;;  %v6159_v0 = vld [vmem:[#allocation2 + $0x350] sm:$0xff] }
 0x561   :  { %3394 = vmatmul.mubr.msk.f32.vlgmr.msra.gmra.mxu1 %vm93_vm0, %v6013_v59  ;;  %2377 = vmatpush2.msra.mxu0 %v5598_v34  ;;  %v6039_v34 = vld [vmem:[#allocation2 + $0x2b0] sm:$0xff] }
 0x562   :  { %3638 = vmatpush3.msra.mxu1 %v6019_v43  ;;  %2210 = vmatprep.mubr.f32.mxu1 %v5920_v41  ;;  %v7352_v41 = vld [vmem:[#allocation75_spill] sm:$0xff] }
 0x563   :  { %3639 = vmatprep.subr.mxu1 %v6023_v9  ;;  %2378 = vmatprep.subr.mxu0 %v7272_v2  ;;  %v6095_v2 = vld [vmem:[#allocation2 + $0x208] sm:$0xff] }
 0x564   :  { %3640 = vmatpush3.msra.mxu1 %v6027_v21  ;;  %2379 = vmatpush2.msra.mxu0 %v7273_v36  ;;  %v6098_v36 = vld [vmem:[#allocation2 + $0x88] sm:$0xff] }
 0x565   :  { %3641 = vmatprep.subr.mxu1 %v6031_v57  ;;  %2380 = vmatprep.subr.mxu0 %v7274_v42  ;;  %v6101_v42 = vld [vmem:[#allocation2 + $0x1f0] sm:$0xff] }
 0x566   :  { %3642 = vmatpush3.msra.mxu1 %v6035_v48  ;;  %2381 = vmatpush2.msra.mxu0 %v7275_v60  ;;  %v7340_v60 = vld [vmem:[#allocation53_spill] sm:$0xff] }
 0x567   :  { %3643 = vmatprep.subr.mxu1 %v6039_v34  ;;  %2382 = vmatprep.subr.mxu0 %v7276_v12  ;;  %v7341_v12 = vld [vmem:[#allocation92_spill] sm:$0xff] }
 0x568   :  { %3644 = vmatpush3.msra.mxu1 %v6043_v38  ;;  %2383 = vmatpush2.msra.mxu0 %v7277_v14  ;;  %v7342_v14 = vld [vmem:[#allocation55_spill] sm:$0xff] }
 0x569   :  { %3645 = vmatprep.subr.mxu1 %v6047_v55  ;;  %2384 = vmatprep.subr.mxu0 %v7278_v16  ;;  %v7343_v16 = vld [vmem:[#allocation57_spill] sm:$0xff] }
 0x56a   :  { %3646 = vmatpush3.msra.mxu1 %v6051_v52  ;;  %2385 = vmatpush2.msra.mxu0 %v7279_v17  ;;  %v7344_v17 = vld [vmem:[#allocation59_spill] sm:$0xff] }
 0x56b   :  { %3647 = vmatprep.subr.mxu1 %v6055_v31  ;;  %2386 = vmatprep.subr.mxu0 %v7280_v18  ;;  %v7345_v18 = vld [vmem:[#allocation61_spill] sm:$0xff] }
 0x56c   :  { %3648 = vmatpush3.msra.mxu1 %v6059_v39  ;;  %2387 = vmatpush2.msra.mxu0 %v7281_v19  ;;  %v7346_v19 = vld [vmem:[#allocation63_spill] sm:$0xff] }
 0x56d   :  { %3649 = vmatprep.subr.mxu1 %v6063_v63  ;;  %2388 = vmatprep.subr.mxu0 %v7282_v20  ;;  %v7347_v20 = vld [vmem:[#allocation65_spill] sm:$0xff] }
 0x56e   :  { %3650 = vmatpush3.msra.mxu1 %v6067_v58  ;;  %2389 = vmatpush2.msra.mxu0 %v7283_v22  ;;  %v7348_v22 = vmov 0.0  }
 0x56f   :  { %3651 = vmatprep.subr.mxu1 %v6071_v56  ;;  %2390 = vmatprep.subr.mxu0 %v7284_v24  ;;  %v7349_v24 = vld [vmem:[#allocation67_spill] sm:$0xff] }
 0x570   :  { %3652 = vmatpush3.msra.mxu1 %v6075_v28  ;;  %2391 = vmatpush2.msra.mxu0 %v7285_v53  ;;  %v7350_v53 = vld [vmem:[#allocation69_spill] sm:$0xff] }
 0x571   :  { %3653 = vmatprep.subr.mxu1 %v6079_v25  ;;  %2392 = vmatprep.subr.mxu0 %v5660_v40  ;;  %v4316_v40 = vld [vmem:[#allocation2 + $0x170] sm:$0xff] }
 0x572   :  { %3654 = vmatpush3.msra.mxu1 %v6083_v6  ;;  %2393 = vmatpush2.msra.mxu0 %v7286_v29  ;;  %v7351_v29 = vld [vmem:[#allocation72_spill] sm:$0xff] }
 0x573   :  { %3655 = vmatprep.subr.mxu1 %v6087_v8  ;;  %2394 = vmatprep.subr.mxu0 %v5668_v4  ;;  %v7339_v4 = vld [vmem:[#allocation91_spill] sm:$0xff] }
 0x574   :  { %3656 = vmatpush3.msra.mxu1 %v6091_v50  ;;  %2395 = vmatpush2.msra.mxu0 %v7338_v35  ;;  %v6165_v35 = vld [vmem:[#allocation2 + $0x338] sm:$0xff] }
 0x575   :  { %3657 = vmatprep.subr.mxu1 %v6095_v2  ;;  %2660 = vmatprep.subr.mxu0 %v4316_v40  ;;  %v6168_v40 = vld [vmem:[#allocation2 + $0x330] sm:$0xff] }
 0x576   :  { %3658 = vmatpush3.msra.mxu1 %v6098_v36 }
 0x577   :  { %3659 = vmatprep.subr.mxu1 %v6101_v42 }
 0x578   :  { %3660 = vmatpush3.msra.mxu1 %v7339_v4  ;;  %v6171_v4 = vld [vmem:[#allocation2 + $0x320] sm:$0xff] }
 0x579   :  { %3661 = vmatprep.subr.mxu1 %v7340_v60  ;;  %v6174_v60 = vld [vmem:[#allocation2 + $0x318] sm:$0xff] }
 0x57a   :  { %3662 = vmatpush3.msra.mxu1 %v7341_v12  ;;  %7357 = vst [vmem:[#allocation38_spill] sm:$0xff] %v6174_v60  ;;  %v6177_v12 = vld [vmem:[#allocation2 + $0x308] sm:$0xff] }
 0x57b   :  { %3663 = vmatprep.subr.mxu1 %v7342_v14  ;;  %7358 = vst [vmem:[#allocation39_spill] sm:$0xff] %v6177_v12  ;;  %v6180_v14 = vld [vmem:[#allocation2 + $0x300] sm:$0xff] }
 0x57c   :  { %3664 = vmatpush3.msra.mxu1 %v7343_v16  ;;  %7359 = vst [vmem:[#allocation64_spill] sm:$0xff] %v6180_v14  ;;  %v6183_v16 = vld [vmem:[#allocation2 + $0x2f8] sm:$0xff] }
 0x57d   :  { %3665 = vmatprep.subr.mxu1 %v7344_v17  ;;  %7360 = vst [vmem:[#allocation94_spill] sm:$0xff] %v6183_v16 }
 0x57e   :  { %3666 = vmatpush3.msra.mxu1 %v7345_v18 }
 0x57f   :  { %3667 = vmatprep.subr.mxu1 %v7346_v19 }
 0x580   :  { %3668 = vmatpush3.msra.mxu1 %v7347_v20 }
 0x581   :  { %2211 = vmatmul.mubr.f32.vlgmr.msra.gmra.mxu1 %v5924_v1  ;;  %3942 = vmatprep.subr.mxu1 %v7348_v22  ;;  %v7353_v1 = vld [vmem:[#allocation78_spill] sm:$0xff] }
 0x582   :  { %3943 = vmatpush3.msra.mxu1 %v7349_v24  ;;  %3958 = vmatprep.mubr.msk.f32.mxu1 %vm4444_vm1, %v7348_v22 }
 0x583   :  { %3944 = vmatprep.subr.mxu1 %v7348_v22 }
 0x584   :  { %3945 = vmatpush3.msra.mxu1 %v7350_v53 }
 0x585   :  { %3946 = vmatprep.subr.mxu1 %v7348_v22 }
 0x586   :  { %3947 = vmatpush3.msra.mxu1 %v7351_v29 }
 0x587   :  { %3948 = vmatprep.subr.mxu1 %v7348_v22 }
 0x588   :  { %3949 = vmatpush3.msra.mxu1 %v7352_v41 }
 0x589   :  { %3950 = vmatprep.subr.mxu1 %v7348_v22 }
 0x58a   :  { %3951 = vmatpush3.msra.mxu1 %v7353_v1 }
 0x58b   :  { %3952 = vmatprep.subr.mxu1 %v7348_v22 }
 0x58c   :  { %3953 = vmatpush3.msra.mxu1 %v7354_v13 }
 0x58d   :  { %3954 = vmatprep.subr.mxu1 %v7348_v22 }
 0x58e   :  { %3955 = vmatpush3.msra.mxu1 %v7355_v46 }
 0x58f   :  { %3956 = vmatprep.subr.mxu1 %v7348_v22 }
 0x590   :  { %3957 = vmatpush3.msra.mxu1 %v7356_v3 }
 0x591   :  { %3959 = vmatmul.mubr.msk.f32.vlgmr.msra.gmra.mxu1 %vm93_vm0, %v6013_v59  ;;  %2419 = vmatprep.subr.mxu1 %v6134_v15  ;;  %v6162_v59 = vld [vmem:[#allocation2 + $0x348] sm:$0xff] }
 0x592   :  { %2420 = vmatpush1.msra.mxu1 %v6137_v5  ;;  %2467 = vmatprep.mubr.f32.mxu1 %v7348_v22 }
 0x593   :  { %2421 = vmatprep.subr.mxu1 %v6141_v10 }
 0x594   :  { %2422 = vmatpush1.msra.mxu1 %v6144_v27 }
 0x595   :  { %2423 = vmatprep.subr.mxu1 %v6147_v44 }
 0x596   :  { %2424 = vmatpush1.msra.mxu1 %v6150_v47 }
 0x597   :  { %2425 = vmatprep.subr.mxu1 %v6153_v54 }
 0x598   :  { %2426 = vmatpush1.msra.mxu1 %v6156_v49 }
 0x599   :  { %2427 = vmatprep.subr.mxu1 %v6159_v0 }
 0x59a   :  { %2428 = vmatpush1.msra.mxu1 %v6162_v59 }
 0x59b   :  { %2429 = vmatprep.subr.mxu1 %v6165_v35 }
 0x59c   :  { %2430 = vmatpush1.msra.mxu1 %v6168_v40 }
 0x59d   :  { %2431 = vmatprep.subr.mxu1 %v6171_v4 }
 0x59e   :  { %2432 = vmatpush1.msra.mxu1 %v6174_v60 }
 0x59f   :  { %2433 = vmatprep.subr.mxu1 %v6177_v12 }
 0x5a0   :  { %2434 = vmatpush1.msra.mxu1 %v6180_v14 }
 0x5a1   :  { %3681 = vmatprep.subr.mxu1 %v6183_v16 }
 0x5f4   :  { %v2070_v17 = vpop.f32.mrf.mxu0 }
 0x5f6   :  { %v2072_v20 = vpop.f32.mrf.mxu0 }
 0x621   :  { %v2141_v18 = vpop.f32.mrf.mxu1 }
 0x622   :  { %v2142_v19 = vadd.f32 %v2141_v18, %v2070_v17 }
 0x623   :  { %v2143_v24 = vpop.f32.mrf.mxu1 }
 0x624   :  { %v2289_v53 = vrot.slane %v2142_v19, 3  ;;  %v2292_v29 = vrot.slane %v2142_v19, 4  ;;  %v2144_v41 = vadd.f32 %v2143_v24, %v2072_v20 }
 0x626   :  { %v2301_v1 = vadd.f32 %v2289_v53, %v5069_v37  ;;  %v2304_v13 = vadd.f32 %v2292_v29, %v5055_v51  ;;  %v2290_v46 = vrot.slane %v2144_v41, 3  ;;  %v2293_v3 = vrot.slane %v2144_v41, 4 }
 0x628   :  { %4116 = vtanh.f32 %v2301_v1  ;;  %v2302_v14 = vadd.f32 %v2290_v46, %v5065_v7  ;;  %v2305_v12 = vadd.f32 %v2293_v3, %v5059_v23  ;;  %v7365_v1 = vld [vmem:[#allocation28_spill] sm:$0xff]  ;;  %v7367_v46 = vld [vmem:[#allocation30_spill] sm:$0xff]  ;;  %v7368_v3 = vld [vmem:[#allocation31_spill] sm:$0xff] }
 0x629   :  { %4118 = vtanh.f32 %v2304_v13  ;;  %v7366_v13 = vld [vmem:[#allocation29_spill] sm:$0xff] }
 0x62a   :  { %4120 = vtanh.f32 %v2302_v14  ;;  %v7362_v14 = vld [vmem:[#allocation93_spill] sm:$0xff] }
 0x62b   :  { %4122 = vtanh.f32 %v2305_v12  ;;  %v7361_v12 = vld [vmem:[#allocation90_spill] sm:$0xff] }
 0x635   :  { %v4117_v17 = vpop.eup %4116 }
 0x636   :  { %v4119_v18 = vpop.eup %4118  ;;  %v2319_v20 = vrot.slane %v4117_v17, 5  ;;  %v7371_v17 = vld [vmem:[#allocation34_spill] sm:$0xff] }
 0x637   :  { %v4121_v16 = vpop.eup %4120  ;;  %v2320_v24 = vrot.slane %v4119_v18, 4  ;;  %v7372_v18 = vld [vmem:[#allocation35_spill] sm:$0xff] }
 0x638   :  { %v4123_v60 = vpop.eup %4122  ;;  %v2322_v19 = vrot.slane %v4121_v16, 5  ;;  %v7364_v16 = vld [vmem:[#allocation27_spill] sm:$0xff] }
 0x639   :  { %v2323_v53 = vrot.slane %v4123_v60, 4  ;;  %v6195_v41 = vsel %vm688_vm2, %v2320_v24, %v2319_v20  ;;  %v7363_v60 = vld [vmem:[#allocation26_spill] sm:$0xff]  ;;  %v7373_v20 = vld [vmem:[#allocation36_spill] sm:$0xff]  ;;  %v7374_v24 = vld [vmem:[#allocation37_spill] sm:$0xff] }
 0x63b   :  { %v6191_v29 = vsel %vm688_vm2, %v2323_v53, %v2322_v19 }
 0x63c   :  { %2396 = vmatprep.mubr.f32.mxu0 %v6191_v29 }
 0x63d   :  { %2397 = vmatmul.mubr.f32.vlgmr.msra.gmra.mxu0 %v6195_v41 }
 0x63e   :  { %2661 = vmatpush1.msra.mxu0 %v5927_v62 }
 0x63f   :  { %2662 = vmatprep.subr.mxu0 %v5930_v26  ;;  %v7369_v26 = vld [vmem:[#allocation32_spill] sm:$0xff] }
 0x640   :  { %2663 = vmatpush1.msra.mxu0 %v5933_v45  ;;  %v7370_v45 = vld [vmem:[#allocation33_spill] sm:$0xff] }
 0x641   :  { %2664 = vmatprep.subr.mxu0 %v7361_v12  ;;  %v3669_v62 = vpop.f32.mrf.mxu1 }
 0x642   :  { %2665 = vmatpush1.msra.mxu0 %v7362_v14 }
 0x643   :  { %2666 = vmatprep.subr.mxu0 %v7363_v60  ;;  %v3670_v19 = vpop.f32.mrf.mxu1  ;;  %v4336_v60 = vld [vmem:[#allocation2 + $0x78] sm:$0xff] }
 0x644   :  { %2667 = vmatpush1.msra.mxu0 %v7364_v16  ;;  %v3671_v53 = vadd.f32 %v3670_v19, %v3669_v62  ;;  %v4345_v19 = vld [vmem:[#allocation2 + $0x8] sm:$0xff] }
 0x645   :  { %2668 = vmatprep.subr.mxu0 %v7365_v1  ;;  %v4337_v1 = vld [vmem:[#allocation2 + $0x68] sm:$0xff] }
 0x646   :  { %2669 = vmatpush1.msra.mxu0 %v7366_v13 }
 0x647   :  { %2670 = vmatprep.subr.mxu0 %v7367_v46 }
 0x648   :  { %2671 = vmatpush1.msra.mxu0 %v7368_v3  ;;  %v4338_v3 = vld [vmem:[#allocation2 + $0x60] sm:$0xff] }
 0x649   :  { %2672 = vmatprep.subr.mxu0 %v7369_v26  ;;  %v4339_v26 = vld [vmem:[#allocation2 + $0x50] sm:$0xff] }
 0x64a   :  { %2673 = vmatpush1.msra.mxu0 %v7370_v45  ;;  %v4341_v45 = vld [vmem:[#allocation2 + $0x38] sm:$0xff] }
 0x64b   :  { %2674 = vmatprep.subr.mxu0 %v7371_v17  ;;  %v4343_v17 = vld [vmem:[#allocation2 + $0x20] sm:$0xff] }
 0x64c   :  { %2675 = vmatpush1.msra.mxu0 %v7372_v18  ;;  %v4344_v18 = vld [vmem:[#allocation2 + $0x18] sm:$0xff] }
 0x64d   :  { %2676 = vmatprep.subr.mxu0 %v7373_v20  ;;  %v4346_v20 = vld [vmem:[#allocation2] sm:$0xff] }
 0x64e   :  { %2677 = vmatpush1.msra.mxu0 %v7374_v24  ;;  %v4347_v24 = vld [vmem:[#allocation2 + $0x2f0] sm:$0xff] }
 0x64f   :  { %2678 = vmatprep.subr.mxu0 %v5978_v61 }
 0x650   :  { %2679 = vmatpush1.msra.mxu0 %v5981_v11  ;;  %v4340_v11 = vld [vmem:[#allocation2 + $0x48] sm:$0xff] }
 0x651   :  { %v2282_v12 = vpop.f32.mrf.mxu1  ;;  %2680 = vmatprep.subr.mxu0 %v5984_v32  ;;  %v4342_v32 = vld [vmem:[#allocation2 + $0x30] sm:$0xff] }
 0x652   :  { %v2283_v14 = vadd.f32 %v3671_v53, %v2282_v12  ;;  %2681 = vmatpush1.msra.mxu0 %v4336_v60  ;;  %v4348_v53 = vld [vmem:[#allocation2 + $0x2e8] sm:$0xff]  ;;  %v4349_v12 = vld [vmem:[#allocation2 + $0x2d8] sm:$0xff]  ;;  %v4351_v60 = vld [vmem:[#allocation2 + $0x2c0] sm:$0xff] }
 0x653   :  { %v3960_v16 = vpop.f32.mrf.mxu1  ;;  %2682 = vmatprep.subr.mxu0 %v4337_v1  ;;  %v4353_v1 = vld [vmem:[#allocation2 + $0x2a8] sm:$0xff] }
 0x654   :  { %v2291_v13 = vrot.slane %v2283_v14, 3  ;;  %v2294_v46 = vrot.slane %v2283_v14, 4  ;;  %2683 = vmatpush1.msra.mxu0 %v4338_v3  ;;  %v4350_v14 = vld [vmem:[#allocation2 + $0x2d0] sm:$0xff]  ;;  %v4352_v16 = vld [vmem:[#allocation2 + $0x2b8] sm:$0xff] }
 0x655   :  { %2684 = vmatprep.subr.mxu0 %v4339_v26  ;;  %v4355_v3 = vld [vmem:[#allocation2 + $0x290] sm:$0xff] }
 0x656   :  { %v2303_v61 = vadd.f32 %v2291_v13, %v7255_v30  ;;  %v2306_v62 = vadd.f32 %v2294_v46, %v7256_v33  ;;  %2685 = vmatpush1.msra.mxu0 %v4340_v11  ;;  %v4354_v13 = vld [vmem:[#allocation2 + $0x2a0] sm:$0xff] }
 0x657   :  { %2686 = vmatprep.subr.mxu0 %v4341_v45  ;;  %v4357_v45 = vld [vmem:[#allocation2 + $0x278] sm:$0xff] }
 0x658   :  { %4124 = vtanh.f32 %v2303_v61  ;;  %2687 = vmatpush1.msra.mxu0 %v4342_v32  ;;  %v4358_v32 = vld [vmem:[#allocation2 + $0x270] sm:$0xff] }
 0x659   :  { %4126 = vtanh.f32 %v2306_v62  ;;  %2688 = vmatprep.subr.mxu0 %v4343_v17  ;;  %v4356_v62 = vld [vmem:[#allocation2 + $0x288] sm:$0xff] }
 0x65a   :  { %2689 = vmatpush1.msra.mxu0 %v4344_v18  ;;  %v4359_v18 = vld [vmem:[#allocation2 + $0x260] sm:$0xff] }
 0x65b   :  { %2690 = vmatprep.subr.mxu0 %v4345_v19  ;;  %v4360_v19 = vld [vmem:[#allocation2 + $0x258] sm:$0xff] }
 0x65c   :  { %2691 = vmatpush1.msra.mxu0 %v4346_v20  ;;  %v4361_v20 = vld [vmem:[#allocation2 + $0x248] sm:$0xff] }
 0x65d   :  { %2692 = vmatprep.subr.mxu0 %v4347_v24  ;;  %v4362_v24 = vld [vmem:[#allocation2 + $0x240] sm:$0xff] }
 0x65e   :  { %2693 = vmatpush2.msra.mxu0 %v4348_v53  ;;  %v4363_v53 = vld [vmem:[#allocation2 + $0x230] sm:$0xff] }
 0x65f   :  { %2694 = vmatprep.subr.mxu0 %v4349_v12  ;;  %v4364_v12 = vld [vmem:[#allocation2 + $0x228] sm:$0xff] }
 0x660   :  { %2695 = vmatpush2.msra.mxu0 %v4350_v14  ;;  %v4365_v14 = vld [vmem:[#allocation2 + $0x218] sm:$0xff] }
 0x661   :  { %2696 = vmatprep.subr.mxu0 %v4351_v60  ;;  %v4367_v60 = vld [vmem:[#allocation2 + $0x200] sm:$0xff] }
 0x662   :  { %2697 = vmatpush2.msra.mxu0 %v4352_v16  ;;  %v4368_v16 = vld [vmem:[#allocation2 + $0x1f8] sm:$0xff] }
 0x663   :  { %2698 = vmatprep.subr.mxu0 %v4353_v1  ;;  %v4369_v1 = vld [vmem:[#allocation2 + $0x1e8] sm:$0xff] }
 0x664   :  { %2699 = vmatpush2.msra.mxu0 %v4354_v13  ;;  %v4370_v13 = vld [vmem:[#allocation2 + $0x1e0] sm:$0xff] }
 0x665   :  { %v4125_v46 = vpop.eup %4124  ;;  %2700 = vmatprep.subr.mxu0 %v4355_v3  ;;  %v4372_v3 = vld [vmem:[#allocation2 + $0x1c8] sm:$0xff] }
 0x666   :  { %v4127_v26 = vpop.eup %4126  ;;  %v2325_v61 = vrot.slane %v4125_v46, 5  ;;  %2701 = vmatpush2.msra.mxu0 %v4356_v62  ;;  %v4371_v46 = vld [vmem:[#allocation2 + $0x1d0] sm:$0xff]  ;;  %v4375_v62 = vld [vmem:[#allocation2 + $0x1a0] sm:$0xff] }
 0x667   :  { %v2326_v11 = vrot.slane %v4127_v26, 4  ;;  %2702 = vmatprep.subr.mxu0 %v4357_v45  ;;  %v4373_v26 = vld [vmem:[#allocation2 + $0x1b8] sm:$0xff]  ;;  %v4377_v45 = vld [vmem:[#allocation2 + $0x188] sm:$0xff] }
 0x668   :  { %2703 = vmatpush2.msra.mxu0 %v4358_v32  ;;  %v4378_v32 = vld [vmem:[#allocation2 + $0x180] sm:$0xff] }
 0x669   :  { %v6221_v17 = vsel %vm688_vm2, %v2326_v11, %v2325_v61  ;;  %2704 = vmatprep.subr.mxu0 %v4359_v18  ;;  %v4374_v61 = vld [vmem:[#allocation2 + $0x1b0] sm:$0xff]  ;;  %v4376_v11 = vld [vmem:[#allocation2 + $0x198] sm:$0xff] }
 0x66a   :  { %3396 = vmatmul.mubr.msk.f32.vlgmr.msra.gmra.mxu1 %vm93_vm0, %v6221_v17  ;;  %2705 = vmatpush2.msra.mxu0 %v4360_v19  ;;  %v6248_v18 = vld [vmem:[#allocation2 + $0x70] sm:$0xff]  ;;  %v6251_v19 = vld [vmem:[#allocation2 + $0x1d8] sm:$0xff] }
 0x66b   :  { %3682 = vmatpush3.msra.mxu1 %v6019_v43  ;;  %2538 = vmatprep.mubr.f32.mxu1 %v6191_v29  ;;  %v4366_v29 = vld [vmem:[#allocation2 + $0x210] sm:$0xff] }
 0x66c   :  { %3683 = vmatprep.subr.mxu1 %v6023_v9  ;;  %2706 = vmatprep.subr.mxu0 %v4361_v20  ;;  %v6254_v20 = vld [vmem:[#allocation2 + $0x58] sm:$0xff] }
 0x66d   :  { %3684 = vmatpush3.msra.mxu1 %v6027_v21  ;;  %2707 = vmatpush2.msra.mxu0 %v4362_v24  ;;  %v6257_v24 = vld [vmem:[#allocation2 + $0x1c0] sm:$0xff] }
 0x66e   :  { %3685 = vmatprep.subr.mxu1 %v6031_v57  ;;  %2708 = vmatprep.subr.mxu0 %v4363_v53  ;;  %v6260_v53 = vld [vmem:[#allocation2 + $0x40] sm:$0xff] }
 0x66f   :  { %3686 = vmatpush3.msra.mxu1 %v6035_v48  ;;  %2709 = vmatpush2.msra.mxu0 %v4364_v12  ;;  %v6263_v12 = vld [vmem:[#allocation2 + $0x1a8] sm:$0xff] }
 0x670   :  { %3687 = vmatprep.subr.mxu1 %v6039_v34  ;;  %2710 = vmatprep.subr.mxu0 %v4365_v14  ;;  %v6266_v14 = vld [vmem:[#allocation2 + $0x28] sm:$0xff] }
 0x671   :  { %3688 = vmatpush3.msra.mxu1 %v6043_v38  ;;  %2711 = vmatpush2.msra.mxu0 %v4366_v29  ;;  %v6269_v29 = vld [vmem:[#allocation2 + $0x190] sm:$0xff] }
 0x672   :  { %3689 = vmatprep.subr.mxu1 %v6047_v55  ;;  %2712 = vmatprep.subr.mxu0 %v4367_v60  ;;  %v6272_v60 = vld [vmem:[#allocation2 + $0x10] sm:$0xff] }
 0x673   :  { %3690 = vmatpush3.msra.mxu1 %v6051_v52  ;;  %2713 = vmatpush2.msra.mxu0 %v4368_v16  ;;  %v6277_v16 = vld [vmem:[#allocation2 + $0x3b8] sm:$0xff] }
 0x674   :  { %3691 = vmatprep.subr.mxu1 %v6055_v31  ;;  %2714 = vmatprep.subr.mxu0 %v4369_v1  ;;  %v6283_v1 = vld [vmem:[#allocation2 + $0x3a0] sm:$0xff] }
 0x675   :  { %3692 = vmatpush3.msra.mxu1 %v6059_v39  ;;  %2715 = vmatpush2.msra.mxu0 %v4370_v13  ;;  %v6287_v13 = vld [vmem:[#allocation2 + $0x388] sm:$0xff] }
 0x676   :  { %3693 = vmatprep.subr.mxu1 %v6063_v63  ;;  %2716 = vmatprep.subr.mxu0 %v4371_v46  ;;  %v6295_v46 = vld [vmem:[#allocation2 + $0x358] sm:$0xff] }
 0x677   :  { %3694 = vmatpush3.msra.mxu1 %v6067_v58  ;;  %2717 = vmatpush2.msra.mxu0 %v4372_v3  ;;  %v6299_v3 = vld [vmem:[#allocation2 + $0x340] sm:$0xff] }
 0x678   :  { %3695 = vmatprep.subr.mxu1 %v6071_v56  ;;  %2718 = vmatprep.subr.mxu0 %v4373_v26  ;;  %v6303_v26 = vld [vmem:[#allocation2 + $0x328] sm:$0xff] }
 0x679   :  { %3696 = vmatpush3.msra.mxu1 %v6075_v28  ;;  %2719 = vmatpush2.msra.mxu0 %v4374_v61  ;;  %v6307_v61 = vld [vmem:[#allocation2 + $0x310] sm:$0xff] }
 0x67a   :  { %3697 = vmatprep.subr.mxu1 %v6079_v25  ;;  %2720 = vmatprep.subr.mxu0 %v4375_v62 }
 0x67b   :  { %3698 = vmatpush3.msra.mxu1 %v6083_v6  ;;  %2721 = vmatpush2.msra.mxu0 %v4376_v11 }
 0x67c   :  { %3699 = vmatprep.subr.mxu1 %v6087_v8  ;;  %2722 = vmatprep.subr.mxu0 %v4377_v45 }
 0x67d   :  { %3700 = vmatpush3.msra.mxu1 %v6091_v50  ;;  %2723 = vmatpush2.msra.mxu0 %v4378_v32 }
 0x67e   :  { %3701 = vmatprep.subr.mxu1 %v6095_v2 }
 0x67f   :  { %3702 = vmatpush3.msra.mxu1 %v6098_v36 }
 0x680   :  { %3703 = vmatprep.subr.mxu1 %v6101_v42 }
 0x681   :  { %3704 = vmatpush3.msra.mxu1 %v6248_v18 }
 0x682   :  { %3705 = vmatprep.subr.mxu1 %v6251_v19 }
 0x683   :  { %3706 = vmatpush3.msra.mxu1 %v6254_v20 }
 0x684   :  { %3707 = vmatprep.subr.mxu1 %v6257_v24 }
 0x685   :  { %3708 = vmatpush3.msra.mxu1 %v6260_v53 }
 0x686   :  { %3709 = vmatprep.subr.mxu1 %v6263_v12 }
 0x687   :  { %3710 = vmatpush3.msra.mxu1 %v6266_v14 }
 0x688   :  { %3711 = vmatprep.subr.mxu1 %v6269_v29 }
 0x689   :  { %3712 = vmatpush3.msra.mxu1 %v6272_v60 }
 0x68a   :  { %2539 = vmatmul.mubr.f32.vlgmr.msra.gmra.mxu1 %v6195_v41  ;;  %3961 = vmatprep.subr.mxu1 %v7348_v22  ;;  %v6291_v41 = vld [vmem:[#allocation2 + $0x370] sm:$0xff] }
 0x68b   :  { %3962 = vmatpush3.msra.mxu1 %v6277_v16  ;;  %3977 = vmatprep.mubr.msk.f32.mxu1 %vm4444_vm1, %v7348_v22 }
 0x68c   :  { %3963 = vmatprep.subr.mxu1 %v7348_v22 }
 0x68d   :  { %3964 = vmatpush3.msra.mxu1 %v6283_v1 }
 0x68e   :  { %3965 = vmatprep.subr.mxu1 %v7348_v22 }
 0x68f   :  { %3966 = vmatpush3.msra.mxu1 %v6287_v13 }
 0x690   :  { %3967 = vmatprep.subr.mxu1 %v7348_v22 }
 0x691   :  { %3968 = vmatpush3.msra.mxu1 %v6291_v41 }
 0x692   :  { %3969 = vmatprep.subr.mxu1 %v7348_v22 }
 0x693   :  { %3970 = vmatpush3.msra.mxu1 %v6295_v46 }
 0x694   :  { %3971 = vmatprep.subr.mxu1 %v7348_v22 }
 0x695   :  { %3972 = vmatpush3.msra.mxu1 %v6299_v3 }
 0x696   :  { %3973 = vmatprep.subr.mxu1 %v7348_v22 }
 0x697   :  { %3974 = vmatpush3.msra.mxu1 %v6303_v26 }
 0x698   :  { %3975 = vmatprep.subr.mxu1 %v7348_v22 }
 0x699   :  { %3976 = vmatpush3.msra.mxu1 %v6307_v61 }
 0x69a   :  { %3978 = vmatmul.mubr.msk.f32.vlgmr.msra.gmra.mxu1 %vm93_vm0, %v6221_v17  ;;  %2747 = vmatprep.subr.mxu1 %v6134_v15  ;;  %v7375_v15 = vld [vmem:[#allocation38_spill] sm:$0xff] }
 0x69b   :  { %2748 = vmatpush1.msra.mxu1 %v6137_v5  ;;  %2795 = vmatprep.mubr.f32.mxu1 %v7348_v22  ;;  %v7376_v5 = vld [vmem:[#allocation39_spill] sm:$0xff] }
 0x69c   :  { %2749 = vmatprep.subr.mxu1 %v6141_v10  ;;  %v7377_v10 = vld [vmem:[#allocation64_spill] sm:$0xff] }
 0x69d   :  { %2750 = vmatpush1.msra.mxu1 %v6144_v27  ;;  %v7378_v27 = vld [vmem:[#allocation94_spill] sm:$0xff] }
 0x69e   :  { %2751 = vmatprep.subr.mxu1 %v6147_v44 }
 0x69f   :  { %2752 = vmatpush1.msra.mxu1 %v6150_v47 }
 0x6a0   :  { %2753 = vmatprep.subr.mxu1 %v6153_v54 }
 0x6a1   :  { %2754 = vmatpush1.msra.mxu1 %v6156_v49 }
 0x6a2   :  { %2755 = vmatprep.subr.mxu1 %v6159_v0 }
 0x6a3   :  { %2756 = vmatpush1.msra.mxu1 %v6162_v59 }
 0x6a4   :  { %2757 = vmatprep.subr.mxu1 %v6165_v35 }
 0x6a5   :  { %2758 = vmatpush1.msra.mxu1 %v6168_v40 }
 0x6a6   :  { %2759 = vmatprep.subr.mxu1 %v6171_v4 }
 0x6a7   :  { %2760 = vmatpush1.msra.mxu1 %v7375_v15 }
 0x6a8   :  { %2761 = vmatprep.subr.mxu1 %v7376_v5 }
 0x6a9   :  { %2762 = vmatpush1.msra.mxu1 %v7377_v10 }
 0x6aa   :  { %3725 = vmatprep.subr.mxu1 %v7378_v27 }
 0x6fd   :  { %v2398_v44 = vpop.f32.mrf.mxu0 }
 0x6ff   :  { %v2400_v49 = vpop.f32.mrf.mxu0 }
 0x72a   :  { %v2469_v47 = vpop.f32.mrf.mxu1 }
 0x72b   :  { %v2470_v54 = vadd.f32 %v2469_v47, %v2398_v44 }
 0x72c   :  { %v2471_v0 = vpop.f32.mrf.mxu1 }
 0x72d   :  { %v2617_v59 = vrot.slane %v2470_v54, 2  ;;  %v2620_v17 = vrot.slane %v2470_v54, 3  ;;  %v2472_v35 = vadd.f32 %v2471_v0, %v2400_v49 }
 0x72f   :  { %v2629_v40 = vadd.f32 %v2617_v59, %v5069_v37  ;;  %v2632_v4 = vadd.f32 %v2620_v17, %v5055_v51  ;;  %v2618_v62 = vrot.slane %v2472_v35, 2  ;;  %v2621_v11 = vrot.slane %v2472_v35, 3 }
 0x731   :  { %4128 = vtanh.f32 %v2629_v40  ;;  %v2630_v45 = vadd.f32 %v2618_v62, %v5065_v7  ;;  %v2633_v32 = vadd.f32 %v2621_v11, %v5059_v23 }
 0x732   :  { %4130 = vtanh.f32 %v2632_v4 }
 0x733   :  { %4132 = vtanh.f32 %v2630_v45 }
 0x734   :  { %4134 = vtanh.f32 %v2633_v32 }
 0x73e   :  { %v4129_v15 = vpop.eup %4128 }
 0x73f   :  { %v4131_v5 = vpop.eup %4130  ;;  %v2647_v47 = vrot.slane %v4129_v15, 6 }
 0x740   :  { %v4133_v10 = vpop.eup %4132  ;;  %v2648_v54 = vrot.slane %v4131_v5, 5 }
 0x741   :  { %v4135_v27 = vpop.eup %4134  ;;  %v2650_v44 = vrot.slane %v4133_v10, 6 }
 0x742   :  { %v2651_v49 = vrot.slane %v4135_v27, 5  ;;  %v2649_v59 = vsel %vm688_vm2, %v2648_v54, %v2647_v47 }
 0x744   :  { %v2652_v0 = vsel %vm688_vm2, %v2651_v49, %v2650_v44 }
 0x745   :  { %2724 = vmatprep.mubr.f32.mxu0 %v2652_v0 }
 0x746   :  { %2725 = vmatmul.mubr.f32.vlgmr.msra.gmra.mxu0 %v2649_v59 }
 0x74a   :  { %v3713_v17 = vpop.f32.mrf.mxu1 }
 0x74c   :  { %v3714_v35 = vpop.f32.mrf.mxu1 }
 0x74d   :  { %v3715_v40 = vadd.f32 %v3714_v35, %v3713_v17 }
 0x75a   :  { %v2610_v4 = vpop.f32.mrf.mxu1 }
 0x75b   :  { %v2611_v62 = vadd.f32 %v3715_v40, %v2610_v4 }
 0x75c   :  { %v3979_v11 = vpop.f32.mrf.mxu1 }
 0x75d   :  { %v2619_v45 = vrot.slane %v2611_v62, 2  ;;  %v2622_v32 = vrot.slane %v2611_v62, 3 }
 0x75f   :  { %v2631_v23 = vadd.f32 %v2619_v45, %v7255_v30  ;;  %v2634_v15 = vadd.f32 %v2622_v32, %v7256_v33 }
 0x761   :  { %4136 = vtanh.f32 %v2631_v23  ;;  %v3000_v23 = vld [vmem:[%s6605_s4 + $0xf8] sm:$0xff] }
 0x762   :  { %4138 = vtanh.f32 %v2634_v15  ;;  %3769 = vmatprep.subr.mxu0 %v3000_v23 }
 0x76e   :  { %v4137_v5 = vpop.eup %4136 }
 0x76f   :  { %v4139_v10 = vpop.eup %4138  ;;  %v2653_v27 = vrot.slane %v4137_v5, 6  ;;  %v7379_v5 = vld [vmem:[#allocation95_spill] sm:$0xff] }
 0x770   :  { %v2654_v44 = vrot.slane %v4139_v10, 5 }
 0x772   :  { %v2655_v47 = vsel %vm688_vm2, %v2654_v44, %v2653_v27 }
 0x773   :  { %3398 = vmatmul.mubr.msk.f32.vlgmr.msra.gmra.mxu1 %vm93_vm0, %v2655_v47 }
 0x774   :  { %3726 = vmatpush3.msra.mxu1 %v6019_v43  ;;  %2866 = vmatprep.mubr.f32.mxu1 %v2652_v0  ;;  %v2984_v43 = vld [vmem:[%s6605_s4 + $0x78] sm:$0xff] }
 0x775   :  { %3727 = vmatprep.subr.mxu1 %v6023_v9  ;;  %v2999_v9 = vld [vmem:[%s6605_s4 + $0xf0] sm:$0xff]  ;;  %3770 = vmatpush3.msra.mxu0 %v2984_v43 }
 0x776   :  { %3728 = vmatpush3.msra.mxu1 %v6027_v21  ;;  %v2983_v21 = vld [vmem:[%s6605_s4 + $0x70] sm:$0xff]  ;;  %3771 = vmatprep.subr.mxu0 %v2999_v9 }
 0x777   :  { %3729 = vmatprep.subr.mxu1 %v6031_v57  ;;  %v2998_v57 = vld [vmem:[%s6605_s4 + $0xe8] sm:$0xff]  ;;  %3772 = vmatpush3.msra.mxu0 %v2983_v21 }
 0x778   :  { %3730 = vmatpush3.msra.mxu1 %v6035_v48  ;;  %3773 = vmatprep.subr.mxu0 %v2998_v57  ;;  %v2982_v48 = vld [vmem:[%s6605_s4 + $0x68] sm:$0xff] }
 0x779   :  { %3731 = vmatprep.subr.mxu1 %v6039_v34  ;;  %3774 = vmatpush3.msra.mxu0 %v2982_v48  ;;  %v2997_v34 = vld [vmem:[%s6605_s4 + $0xe0] sm:$0xff] }
 0x77a   :  { %3732 = vmatpush3.msra.mxu1 %v6043_v38  ;;  %3775 = vmatprep.subr.mxu0 %v2997_v34  ;;  %v2981_v38 = vld [vmem:[%s6605_s4 + $0x60] sm:$0xff] }
 0x77b   :  { %3733 = vmatprep.subr.mxu1 %v6047_v55  ;;  %3776 = vmatpush3.msra.mxu0 %v2981_v38  ;;  %v2996_v55 = vld [vmem:[%s6605_s4 + $0xd8] sm:$0xff] }
 0x77c   :  { %3734 = vmatpush3.msra.mxu1 %v6051_v52  ;;  %3777 = vmatprep.subr.mxu0 %v2996_v55  ;;  %v2980_v52 = vld [vmem:[%s6605_s4 + $0x58] sm:$0xff] }
 0x77d   :  { %3735 = vmatprep.subr.mxu1 %v6055_v31  ;;  %3778 = vmatpush3.msra.mxu0 %v2980_v52  ;;  %v2995_v31 = vld [vmem:[%s6605_s4 + $0xd0] sm:$0xff] }
 0x77e   :  { %3736 = vmatpush3.msra.mxu1 %v6059_v39  ;;  %3779 = vmatprep.subr.mxu0 %v2995_v31  ;;  %v2979_v39 = vld [vmem:[%s6605_s4 + $0x50] sm:$0xff] }
 0x77f   :  { %3737 = vmatprep.subr.mxu1 %v6063_v63  ;;  %3780 = vmatpush3.msra.mxu0 %v2979_v39  ;;  %v2994_v63 = vld [vmem:[%s6605_s4 + $0xc8] sm:$0xff] }
 0x780   :  { %3738 = vmatpush3.msra.mxu1 %v6067_v58  ;;  %3781 = vmatprep.subr.mxu0 %v2994_v63  ;;  %v2978_v58 = vld [vmem:[%s6605_s4 + $0x48] sm:$0xff] }
 0x781   :  { %3739 = vmatprep.subr.mxu1 %v6071_v56  ;;  %3782 = vmatpush3.msra.mxu0 %v2978_v58  ;;  %v2993_v56 = vld [vmem:[%s6605_s4 + $0xc0] sm:$0xff] }
 0x782   :  { %3740 = vmatpush3.msra.mxu1 %v6075_v28  ;;  %3783 = vmatprep.subr.mxu0 %v2993_v56  ;;  %v2977_v28 = vld [vmem:[%s6605_s4 + $0x40] sm:$0xff] }
 0x783   :  { %3741 = vmatprep.subr.mxu1 %v6079_v25  ;;  %v2992_v25 = vld [vmem:[%s6605_s4 + $0xb8] sm:$0xff]  ;;  %3784 = vmatpush3.msra.mxu0 %v2977_v28 }
 0x784   :  { %3742 = vmatpush3.msra.mxu1 %v6083_v6  ;;  %v2976_v6 = vld [vmem:[%s6605_s4 + $0x38] sm:$0xff]  ;;  %3785 = vmatprep.subr.mxu0 %v2992_v25 }
 0x785   :  { %3743 = vmatprep.subr.mxu1 %v6087_v8  ;;  %v2991_v8 = vld [vmem:[%s6605_s4 + $0xb0] sm:$0xff]  ;;  %3786 = vmatpush3.msra.mxu0 %v2976_v6 }
 0x786   :  { %3744 = vmatpush3.msra.mxu1 %v6091_v50  ;;  %v2975_v50 = vld [vmem:[%s6605_s4 + $0x30] sm:$0xff]  ;;  %3787 = vmatprep.subr.mxu0 %v2991_v8 }
 0x787   :  { %3745 = vmatprep.subr.mxu1 %v6095_v2  ;;  %v2990_v2 = vld [vmem:[%s6605_s4 + $0xa8] sm:$0xff]  ;;  %3788 = vmatpush3.msra.mxu0 %v2975_v50 }
 0x788   :  { %3746 = vmatpush3.msra.mxu1 %v6098_v36  ;;  %v2974_v36 = vld [vmem:[%s6605_s4 + $0x28] sm:$0xff]  ;;  %3789 = vmatprep.subr.mxu0 %v2990_v2  ;;  %v3181_v2 = vld [vmem:[%s6607_s6 + $0x30] sm:$0xff] }
 0x789   :  { %3747 = vmatprep.subr.mxu1 %v6101_v42  ;;  %v2989_v42 = vld [vmem:[%s6605_s4 + $0xa0] sm:$0xff]  ;;  %3790 = vmatpush3.msra.mxu0 %v2974_v36  ;;  %v3184_v50 = vld [vmem:[%s6607_s6 + $0x48] sm:$0xff] }
 0x78a   :  { %3748 = vmatpush3.msra.mxu1 %v6248_v18  ;;  %v2973_v18 = vld [vmem:[%s6605_s4 + $0x20] sm:$0xff]  ;;  %3791 = vmatprep.subr.mxu0 %v2989_v42  ;;  %v3180_v36 = vld [vmem:[%s6607_s6 + $0x28] sm:$0xff] }
 0x78b   :  { %3749 = vmatprep.subr.mxu1 %v6251_v19  ;;  %v2988_v19 = vld [vmem:[%s6605_s4 + $0x98] sm:$0xff]  ;;  %3792 = vmatpush3.msra.mxu0 %v2973_v18  ;;  %v3179_v42 = vld [vmem:[%s6607_s6 + $0x20] sm:$0xff] }
 0x78c   :  { %3750 = vmatpush3.msra.mxu1 %v6254_v20  ;;  %v2972_v20 = vld [vmem:[%s6605_s4 + $0x18] sm:$0xff]  ;;  %3793 = vmatprep.subr.mxu0 %v2988_v19  ;;  %v3177_v19 = vld [vmem:[%s6607_s6 + $0x10] sm:$0xff] }
 0x78d   :  { %3751 = vmatprep.subr.mxu1 %v6257_v24  ;;  %v2987_v24 = vld [vmem:[%s6605_s4 + $0x90] sm:$0xff]  ;;  %3794 = vmatpush3.msra.mxu0 %v2972_v20  ;;  %v3178_v18 = vld [vmem:[%s6607_s6 + $0x18] sm:$0xff]  ;;  %v3176_v20 = vld [vmem:[%s6607_s6 + $0x8] sm:$0xff] }
 0x78e   :  { %3752 = vmatpush3.msra.mxu1 %v6260_v53  ;;  %v2971_v53 = vld [vmem:[%s6605_s4 + $0x10] sm:$0xff]  ;;  %3795 = vmatprep.subr.mxu0 %v2987_v24  ;;  %v3175_v24 = vld [vmem:[%s6607_s6] sm:$0xff] }
 0x78f   :  { %3753 = vmatprep.subr.mxu1 %v6263_v12  ;;  %v2986_v12 = vld [vmem:[%s6605_s4 + $0x88] sm:$0xff]  ;;  %3796 = vmatpush3.msra.mxu0 %v2971_v53  ;;  %v3268_v53 = vld [vmem:[%s6609_s8 + $0x10] sm:$0xf] }
 0x790   :  { %3754 = vmatpush3.msra.mxu1 %v6266_v14  ;;  %v2970_v14 = vld [vmem:[%s6605_s4 + $0x8] sm:$0xff]  ;;  %3797 = vmatprep.subr.mxu0 %v2986_v12 }
 0x791   :  { %3755 = vmatprep.subr.mxu1 %v6269_v29  ;;  %v2985_v29 = vld [vmem:[%s6605_s4 + $0x80] sm:$0xff]  ;;  %3798 = vmatpush3.msra.mxu0 %v2970_v14 }
 0x792   :  { %3756 = vmatpush3.msra.mxu1 %v6272_v60  ;;  %v2969_v60 = vld [vmem:[%s6605_s4] sm:$0xff]  ;;  %3799 = vmatprep.subr.mxu0 %v2985_v29 }
 0x793   :  { %2867 = vmatmul.mubr.f32.vlgmr.msra.gmra.mxu1 %v2649_v59  ;;  %3980 = vmatprep.subr.mxu1 %v7348_v22 }
 0x794   :  { %3981 = vmatpush3.msra.mxu1 %v6277_v16  ;;  %3996 = vmatprep.mubr.msk.f32.mxu1 %vm4444_vm1, %v7348_v22  ;;  %v3008_v16 = vld [vmem:[%s6605_s4 + $0x138] sm:$0xff] }
 0x795   :  { %3982 = vmatprep.subr.mxu1 %v7348_v22  ;;  %3800 = vmatpush3.msra.mxu0 %v2969_v60  ;;  %v3400_v60 = vld [vmem:[%s6606_s5] ss:$0 sm:$0xff] }
 0x796   :  { %3983 = vmatpush3.msra.mxu1 %v6283_v1  ;;  %4041 = vmatprep.subr.mxu0 %v7348_v22  ;;  %v3007_v1 = vld [vmem:[%s6605_s4 + $0x130] sm:$0xff] }
 0x797   :  { %3984 = vmatprep.subr.mxu1 %v7348_v22 }
 0x798   :  { %3985 = vmatpush3.msra.mxu1 %v6287_v13  ;;  %v3006_v13 = vld [vmem:[%s6605_s4 + $0x128] sm:$0xff] }
 0x799   :  { %3986 = vmatprep.subr.mxu1 %v7348_v22 }
 0x79a   :  { %3987 = vmatpush3.msra.mxu1 %v6291_v41  ;;  %v3005_v41 = vld [vmem:[%s6605_s4 + $0x120] sm:$0xff] }
 0x79b   :  { %3988 = vmatprep.subr.mxu1 %v7348_v22 }
 0x79c   :  { %3989 = vmatpush3.msra.mxu1 %v6295_v46  ;;  %v3004_v46 = vld [vmem:[%s6605_s4 + $0x118] sm:$0xff] }
 0x79d   :  { %3990 = vmatprep.subr.mxu1 %v7348_v22 }
 0x79e   :  { %3991 = vmatpush3.msra.mxu1 %v6299_v3  ;;  %v3003_v3 = vld [vmem:[%s6605_s4 + $0x110] sm:$0xff] }
 0x79f   :  { %3992 = vmatprep.subr.mxu1 %v7348_v22 }
 0x7a0   :  { %3993 = vmatpush3.msra.mxu1 %v6303_v26  ;;  %v3002_v26 = vld [vmem:[%s6605_s4 + $0x108] sm:$0xff] }
 0x7a1   :  { %3994 = vmatprep.subr.mxu1 %v7348_v22 }
 0x7a2   :  { %3995 = vmatpush3.msra.mxu1 %v6307_v61  ;;  %v3001_v61 = vld [vmem:[%s6605_s4 + $0x100] sm:$0xff] }
 0x7a3   :  { %3997 = vmatmul.mubr.msk.f32.vlgmr.msra.gmra.mxu1 %vm93_vm0, %v2655_v47  ;;  %3999 = vmatprep.subr.mxu1 %v7348_v22 }
 0x7a4   :  { %4015 = vmatprep.mubr.msk.f32.mxu1 %vm4444_vm1, %v7348_v22  ;;  %4000 = vmatpush3.msra.mxu1 %v3008_v16 }
 0x7a5   :  { %4001 = vmatprep.subr.mxu1 %v7348_v22 }
 0x7a6   :  { %4002 = vmatpush3.msra.mxu1 %v3007_v1 }
 0x7a7   :  { %4003 = vmatprep.subr.mxu1 %v7348_v22 }
 0x7a8   :  { %4004 = vmatpush3.msra.mxu1 %v3006_v13 }
 0x7a9   :  { %4005 = vmatprep.subr.mxu1 %v7348_v22 }
 0x7aa   :  { %4006 = vmatpush3.msra.mxu1 %v3005_v41 }
 0x7ab   :  { %4007 = vmatprep.subr.mxu1 %v7348_v22 }
 0x7ac   :  { %4008 = vmatpush3.msra.mxu1 %v3004_v46  ;;  %v3267_v46 = vld [vmem:[%s6609_s8 + $0x8] sm:$0xff] }
 0x7ad   :  { %4009 = vmatprep.subr.mxu1 %v7348_v22 }
 0x7ae   :  { %4010 = vmatpush3.msra.mxu1 %v3003_v3  ;;  %v3266_v3 = vld [vmem:[%s6609_s8] sm:$0xff] }
 0x7af   :  { %4011 = vmatprep.subr.mxu1 %v7348_v22 }
 0x7b0   :  { %4012 = vmatpush3.msra.mxu1 %v3002_v26  ;;  %v3402_v26 = vld [vmem:[%s6608_s7] ss:$0 sm:$0xff]  ;;  %s4445_s7 = smov [#allocation5]  }
 0x7b1   :  { %4013 = vmatprep.subr.mxu1 %v7348_v22  ;;  %s3373_s8 = sshll.u32 %s4445_s7, 4  ;;  %s3374_s8 = int_to_ptr.vmem [resolvable:$true] %s3373_s8 }
 0x7b2   :  { %4014 = vmatpush3.msra.mxu1 %v3001_v61  ;;  %p4421_p6 = scmp.lt.s32.totalorder %s3374_s8, %s3374_s8 }
 0x7b3   :  { %4018 = vmatprep.subr.mxu1 %v7348_v22 }
 0x806   :  { %v2726_v54 = vpop.f32.mrf.mxu0 }
 0x808   :  { %v2728_v59 = vpop.f32.mrf.mxu0 }
 0x833   :  { %v2797_v49 = vpop.f32.mrf.mxu1 }
 0x834   :  { %v2798_v0 = vadd.f32 %v2797_v49, %v2726_v54 }
 0x835   :  { %v2799_v17 = vpop.f32.mrf.mxu1 }
 0x836   :  { %v2945_v35 = vrot.slane %v2798_v0, 1  ;;  %v2948_v40 = vrot.slane %v2798_v0, 2  ;;  %v2800_v4 = vadd.f32 %v2799_v17, %v2728_v59  ;;  %v3404_v0 = vld [vmem:[%s6610_s9] ss:$0 sm:$0xff]  ;;  %s4416_s9 = scalar_lea.vmem %s3374_s8, 32 }
 0x837   :  { %p4417_p5 = scmp.ne.s32.totalorder %s3374_s8, %s4416_s9  ;;  %p4422_p7 = scmp.lt.s32.totalorder %s4416_s9, %s4416_s9 }
 0x838   :  { %v2957_v62 = vadd.f32 %v2945_v35, %v5069_v37  ;;  %v2960_v11 = vadd.f32 %v2948_v40, %v5055_v51  ;;  %v2946_v45 = vrot.slane %v2800_v4, 1  ;;  %v2949_v32 = vrot.slane %v2800_v4, 2 }
 0x839   :  { %p4423_p8 = por %p4422_p7, %p4421_p6 }
 0x83a   :  { %4140 = vtanh.f32 %v2957_v62  ;;  %v2958_v15 = vadd.f32 %v2946_v45, %v5065_v7  ;;  %v2961_v10 = vadd.f32 %v2949_v32, %v7379_v5 }
 0x83b   :  { %4142 = vtanh.f32 %v2960_v11  ;;  %p4424_p9 = pnand %p4423_p8, %p4417_p5 }
 0x83c   :  { %4144 = vtanh.f32 %v2958_v15 }
 0x83d   :  { %4146 = vtanh.f32 %v2961_v10 }
 0x847   :  { %v4141_v27 = vpop.eup %4140 }
 0x848   :  { %v4143_v44 = vpop.eup %4142  ;;  %v3022_v9 = vrot.slane %v4141_v27, 7 }
 0x849   :  { %v4145_v47 = vpop.eup %4144  ;;  %v3023_v21 = vrot.slane %v4143_v44, 6 }
 0x84a   :  { %v4147_v23 = vpop.eup %4146  ;;  %v3025_v43 = vrot.slane %v4145_v47, 7 }
 0x84b   :  { %v3026_v37 = vrot.slane %v4147_v23, 6  ;;  %v3024_v57 = vsel %vm688_vm2, %v3023_v21, %v3022_v9 }
 0x84d   :  { %v3027_v51 = vsel %vm688_vm2, %v3026_v37, %v3025_v43 }
 0x84e   :  { %3099 = vmatprep.mubr.f32.mxu0 %v3027_v51 }
 0x84f   :  { %3100 = vmatmul.mubr.f32.vlgmr.msra.gmra.mxu0 %v3024_v57 }
 0x850   :  { %4047 = vmatprep.mubr.msk.f32.mxu0 %vm4444_vm1, %v7348_v22  ;;  %4042 = vmatpush3.msk.msra.mxu0 %vm3280_vm3, %v3268_v53 }
 0x851   :  { %4043 = vmatprep.subr.mxu0 %v7348_v22 }
 0x852   :  { %4044 = vmatpush3.msra.mxu0 %v3267_v46 }
 0x853   :  { %v3757_v7 = vpop.f32.mrf.mxu1  ;;  %4045 = vmatprep.subr.mxu0 %v7348_v22 }
 0x854   :  { %4046 = vmatpush3.msra.mxu0 %v3266_v3 }
 0x855   :  { %v3758_v48 = vpop.f32.mrf.mxu1 }
 0x856   :  { %v3759_v34 = vadd.f32 %v3758_v48, %v3757_v7 }
 0x863   :  { %v2938_v38 = vpop.f32.mrf.mxu1 }
 0x864   :  { %v2939_v55 = vadd.f32 %v3759_v34, %v2938_v38 }
 0x865   :  { %v3998_v52 = vpop.f32.mrf.mxu1 }
 0x866   :  { %v2947_v31 = vrot.slane %v2939_v55, 1  ;;  %v2950_v39 = vrot.slane %v2939_v55, 2 }
 0x868   :  { %v2959_v63 = vadd.f32 %v2947_v31, %v7255_v30  ;;  %v2962_v58 = vadd.f32 %v2950_v39, %v7256_v33  ;;  %v3183_v30 = vld [vmem:[%s6607_s6 + $0x40] sm:$0xff]  ;;  %v3182_v33 = vld [vmem:[%s6607_s6 + $0x38] sm:$0xff] }
 0x86a   :  { %4148 = vtanh.f32 %v2959_v63 }
 0x86b   :  { %4150 = vtanh.f32 %v2962_v58 }
 0x877   :  { %v4149_v56 = vpop.eup %4148 }
 0x878   :  { %v4151_v28 = vpop.eup %4150  ;;  %v3028_v25 = vrot.slane %v4149_v56, 7 }
 0x879   :  { %v3029_v6 = vrot.slane %v4151_v28, 6 }
 0x87b   :  { %v3030_v8 = vsel %vm688_vm2, %v3029_v6, %v3028_v25 }
 0x87c   :  { %4016 = vmatmul.mubr.msk.f32.vlgmr.msra.gmra.mxu1 %vm93_vm0, %v3030_v8 }
 0x87d   :  { %4038 = vmatprep.mubr.msk.f32.mxu1 %vm4444_vm1, %v7348_v22  ;;  %4019 = vmatpush3.msra.mxu1 %v3184_v50 }
 0x87e   :  { %4020 = vmatprep.subr.mxu1 %v7348_v22 }
 0x87f   :  { %4021 = vmatpush3.msra.mxu1 %v3183_v30 }
 0x880   :  { %4022 = vmatprep.subr.mxu1 %v7348_v22 }
 0x881   :  { %4023 = vmatpush3.msra.mxu1 %v3182_v33 }
 0x882   :  { %4024 = vmatprep.subr.mxu1 %v7348_v22 }
 0x883   :  { %4025 = vmatpush3.msra.mxu1 %v3181_v2 }
 0x884   :  { %4026 = vmatprep.subr.mxu1 %v7348_v22 }
 0x885   :  { %4027 = vmatpush3.msra.mxu1 %v3180_v36 }
 0x886   :  { %4028 = vmatprep.subr.mxu1 %v7348_v22 }
 0x887   :  { %4029 = vmatpush3.msra.mxu1 %v3179_v42 }
 0x888   :  { %4030 = vmatprep.subr.mxu1 %v7348_v22 }
 0x889   :  { %4031 = vmatpush3.msra.mxu1 %v3178_v18 }
 0x88a   :  { %4032 = vmatprep.subr.mxu1 %v7348_v22 }
 0x88b   :  { %4033 = vmatpush3.msra.mxu1 %v3177_v19 }
 0x88c   :  { %4034 = vmatprep.subr.mxu1 %v7348_v22 }
 0x88d   :  { %4035 = vmatpush3.msra.mxu1 %v3176_v20 }
 0x88e   :  { %4036 = vmatprep.subr.mxu1 %v7348_v22 }
 0x88f   :  { %4037 = vmatpush3.msra.mxu1 %v3175_v24 }
 0x90f   :  { %v3801_v12 = vpop.f32.mrf.mxu0 }
 0x911   :  { %v3802_v14 = vpop.f32.mrf.mxu0 }
 0x912   :  { %v3803_v29 = vadd.f32 %v3802_v14, %v3801_v12 }
 0x914   :  { %v3102_v16 = vadd.f32 %v3803_v29, %v3400_v60 }
 0x93c   :  { %v3171_v1 = vpop.f32.mrf.mxu1 }
 0x93d   :  { %v3172_v13 = vadd.f32 %v3171_v1, %v3102_v16 }
 0x93e   :  { %v4017_v41 = vpop.f32.mrf.mxu1 }
 0x93f   :  { %4039 = vmatmul.mubr.msk.f32.vlgmr.msra.gmra.mxu1 %vm3192_vm4, %v3172_v13 }
 0x9ff   :  { %v3262_v61 = vpop.f32.mrf.mxu1 }
 0xa00   :  { %v3263_v54 = vadd.f32 %v3402_v26, %v3262_v61 }
 0xa01   :  { %v4040_v49 = vpop.f32.mrf.mxu1 }
 0xa02   :  { %4048 = vmatmul.mubr.msk.f32.vlgmr.msra.gmra.mxu0 %vm3276_vm5, %v3263_v54 }
 0xac2   :  { %v3350_v59 = vpop.f32.mrf.mxu0 }
 0xac3   :  { %v3351_v22 = vadd.f32 %v3404_v0, %v3350_v59 }
 0xac4   :  { %v4049_v17 = vpop.f32.mrf.mxu0 }
 0xac5   :  { %v3355_v35 = vsel %vm3354_vm6, %v3351_v22, -inf }
 0xac6   :  { %3356 = vmax.xlane.f32.xlu0 %v3355_v35 }
 0xb4f   :  { %v3357_v40 = vpop.xlane.xlu0 %3356 }
 0xb50   :  { %v3358_v4 = vsub.f32 %v3351_v22, %v3357_v40 }
 0xb52   :  { %v3359_v62 = vmul.f32 1.442695, %v3358_v4 }
 0xb54   :  { %4152 = vpow2.f32 %v3359_v62 }
 0xb61   :  { %v4153_v11 = vpop.eup %4152 }
 0xb62   :  { %v3361_v45 = vsel %vm3354_vm6, %v4153_v11, 0.0 }
 0xb63   :  { %3362 = vadd.xlane.f32.xlu0 %v3361_v45 }
 0xbec   :  { %v3363_v32 = vpop.xlane.xlu0 %3362 }
 0xbed   :  { %4154 = vrcp.f32 %v3363_v32 }
 0xbfa   :  { %v4155_v15 = vpop.eup %4154 }
 0xbfb   :  { %v3365_v5 = vmul.f32 %v4155_v15, %v4153_v11 }
 0xbfd   :  { %3366 = vst.msk [vmem:[#allocation5] sm:$0x3] %vm3354_vm6, %v3365_v5 }
 0xbfe   :  { %4427 = shalt.err (!%p4424_p9)
}
 0xbff   :  { %3376 = dma.vmem_to_hbm [thread:$0]  %s3374_s8, 32, %s6611_s10, [#allocation4]  }
 0xc00   :  { %4438 = dma.done.wait [#allocation4], 32  }
 0xc01   :  { %4439 = vsyncadd [#allocation4], 4294967264 }
 0xc02   :  { %3380 = vsyncpa [#allocation3], 1 }
 0xc03   :  { %3381 = vsyncpa [#allocation4], 1 }

</bundles_post_ra>
